<compile_context>
chip_gen: v5e
topology: v5e:2x2
jax: 0.10.0
libtpu: 0.0.40
codegen_flags: <defaults>
</compile_context>

<pallas_src>
import functools

import numpy as np
import jax
import jax.numpy as jnp
from jax.experimental import pallas as pl
from jax.experimental.pallas import tpu as pltpu

# ----------------------------- config ---------------------------------------
BATCH = 2
N_SAMPLES = 1024
MODEL_DIM = 32
KERNEL_SIZE = 64                 # filter-bank kernel size
N_FRAMES = 16
STEP = N_SAMPLES // N_FRAMES     # 64 samples per frame
N_EVENTS = 4
EVENT_LATENT = MODEL_DIM
POS_FREQS = 16                   # -> 2*16 + 1 = 33 positional channels
POS_CH = 2 * POS_FREQS + 1
DILATIONS = (1, 3, 9, 27, 1)
MAX_D = max(DILATIONS)
WEIGHT_INIT = 0.05
LEAK = 0.2
UP_SIZES = (4, 8)                # conv-upsample sizes before each x2 stage (4->8->16)
N_UP = len(UP_SIZES)

# two-block decomposition in the frontend kernel needs the conv kernel to fit
# inside one pooling step (+1); holds for this config.
assert KERNEL_SIZE <= STEP + 1
assert UP_SIZES[-1] * 2 == N_FRAMES


# ----------------------------- static constants ------------------------------
def _upsample_tap_mats(t):
    """A_k (2t, t): (A_k @ h) == nearest-x2-upsampled h, zero-padded by 1, tap k."""
    mats = np.zeros((3, 2 * t, t), np.float32)
    for k in range(3):
        for j in range(2 * t):
            src = j + k - 1
            if 0 <= src < 2 * t:
                mats[k, j, src // 2] = 1.0
    return mats


def _shift_tap_mats(t):
    """S_k (t, t): (S_k @ h) == h shifted by (k-1) rows with zero padding."""
    mats = np.zeros((3, t, t), np.float32)
    for k in range(3):
        for j in range(t):
            src = j + k - 1
            if 0 <= src < t:
                mats[k, j, src] = 1.0
    return mats


def _pos_encoding():
    pos = np.linspace(-1.0, 1.0, N_FRAMES, dtype=np.float32)[:, None]
    feats = [pos]
    for i in range(POS_FREQS):
        feats.append(np.sin(pos * (2.0 ** i) * np.pi))
        feats.append(np.cos(pos * (2.0 ** i) * np.pi))
    return np.concatenate(feats, axis=-1).astype(np.float32)          # (16, 33)


A_UP0 = jnp.asarray(_upsample_tap_mats(UP_SIZES[0]))                  # (3, 8, 4)
A_UP1 = jnp.asarray(_upsample_tap_mats(UP_SIZES[1]))                  # (3, 16, 8)
A_FIN = jnp.asarray(_shift_tap_mats(N_FRAMES))                        # (3, 16, 16)
POS_ENC = jnp.asarray(_pos_encoding())                                # (16, 33)


# ----------------------------- kernel helpers --------------------------------
def _leaky(x):
    return jnp.where(x > 0, x, LEAK * x)


def _example_norm(h, n):
    mean = jnp.sum(h) / n
    var = jnp.sum((h - mean) ** 2) / (n - 1)          # unbiased, like torch.std
    return (h - mean) / (jnp.sqrt(var) + 1e-8)


# ----------------------------- 1. frontend kernel -----------------------------
def _frontend_kernel(xr_ref, g_ref, o_ref):
    # xr: (1, F+1, STEP) frame-blocked padded audio, g: (2, STEP, C) pooled filters
    xa = xr_ref[0, 0:N_FRAMES, :]                      # (F, STEP)
    xb = xr_ref[0, 1:N_FRAMES + 1, :]                  # (F, STEP)
    pooled = (jnp.dot(xa, g_ref[0], preferred_element_type=jnp.float32)
              + jnp.dot(xb, g_ref[1], preferred_element_type=jnp.float32)) * (1.0 / STEP)
    o_ref[0] = _example_norm(pooled, N_FRAMES * MODEL_DIM)


def frontend(x, fb_w):
    """Fused filter-bank conv + temporal pooling + ExampleNorm -> (B, F, C)."""
    # TODO(synk): original fb.temporal_pooling uses an overlapping avg_pool1d window;
    # approximated here with window == stride == STEP.
    B = x.shape[0]
    total = (N_FRAMES + 1) * STEP
    left = KERNEL_SIZE // 2
    xpad = jnp.pad(x.astype(jnp.float32), ((0, 0), (left, total - N_SAMPLES - left)))
    xr = xpad.reshape(B, N_FRAMES + 1, STEP)

    # Fold the mean-pooling window into the filter weights (linearity):
    #   pooled[f, c] = (1/STEP) * sum_t xpad[f*STEP + t] * g[t, c]
    #   g[t, c] = sum_{k+j == t, 0<=k<K, 0<=j<STEP} fb_w[k, c]
    cs = jnp.concatenate([jnp.zeros((1, MODEL_DIM), jnp.float32),
                          jnp.cumsum(fb_w, axis=0)], axis=0)           # (K+1, C)
    n_taps = KERNEL_SIZE + STEP - 1
    t = jnp.arange(n_taps)
    lo = jnp.maximum(t - (STEP - 1), 0)
    hi = jnp.minimum(t, KERNEL_SIZE - 1)
    g = cs[hi + 1] - cs[lo]                                            # (n_taps, C)
    g = jnp.concatenate(
        [g, jnp.zeros((2 * STEP - n_taps, MODEL_DIM), jnp.float32)], axis=0)
    g = g.reshape(2, STEP, MODEL_DIM)

    return pl.pallas_call(
        _frontend_kernel,
        out_shape=jax.ShapeDtypeStruct((B, N_FRAMES, MODEL_DIM), jnp.float32),
        grid=(B,),
        in_specs=[
            pl.BlockSpec((1, N_FRAMES + 1, STEP), lambda b: (b, 0, 0)),
            pl.BlockSpec((2, STEP, MODEL_DIM), lambda b: (0, 0, 0)),
        ],
        out_specs=pl.BlockSpec((1, N_FRAMES, MODEL_DIM), lambda b: (b, 0, 0)),
        compiler_params=pltpu.CompilerParams(dimension_semantics=("parallel",)),
    )(xr, g)


# ----------------------------- 2. context kernel ------------------------------
def _context_kernel(x_ref, pos_ref, rw_ref, rb_ref, wd_ref, bd_ref, w1_ref, b1_ref,
                    aw_ref, ab_ref, xw_ref, attn_ref, hpad_ref):
    F, C = N_FRAMES, MODEL_DIM
    # 1x1 "reduce" conv over [pooled features ; positional encoding] channels
    h = (jnp.dot(x_ref[0], rw_ref[0:C, :], preferred_element_type=jnp.float32)
         + jnp.dot(pos_ref[...], rw_ref[C:C + POS_CH, :],
                   preferred_element_type=jnp.float32)
         + rb_ref[...])

    # DilatedStack: activation stays resident in a zero-padded VMEM scratch;
    # dilated taps are static slices of the padded buffer.
    hpad_ref[...] = jnp.zeros((F + 2 * MAX_D, C), jnp.float32)
    hpad_ref[MAX_D:MAX_D + F, :] = h
    for l, d in enumerate(DILATIONS):
        h = hpad_ref[MAX_D:MAX_D + F, :]
        acc = None
        for k in range(3):
            shift = (k - 1) * d
            if abs(shift) >= F:
                continue                      # tap reads only zero padding: skip statically
            xs = hpad_ref[MAX_D + shift:MAX_D + shift + F, :]
            term = jnp.dot(xs, wd_ref[l, k], preferred_element_type=jnp.float32)
            acc = term if acc is None else acc + term
        y = jnp.dot(acc + bd_ref[l], w1_ref[l],
                    preferred_element_type=jnp.float32) + b1_ref[l]
        hpad_ref[MAX_D:MAX_D + F, :] = _leaky(h + y)

    hn = _example_norm(hpad_ref[MAX_D:MAX_D + F, :], F * C)

    # VectorwiseSparsity attention head folded in: Linear(C->1) + softmax over frames
    a = jnp.dot(hn, aw_ref[...], preferred_element_type=jnp.float32) + ab_ref[...]
    a = a - jnp.max(a, axis=0, keepdims=True)
    e = jnp.exp(a)
    attn = e / jnp.sum(e, axis=0, keepdims=True)       # (F, 1)
    attn_ref[0] = attn
    xw_ref[0] = hn * attn


def context(x, p):
    B, C, L = x.shape[0], MODEL_DIM, len(DILATIONS)
    return pl.pallas_call(
        _context_kernel,
        out_shape=(jax.ShapeDtypeStruct((B, N_FRAMES, C), jnp.float32),
                   jax.ShapeDtypeStruct((B, N_FRAMES, 1), jnp.float32)),
        grid=(B,),
        in_specs=[
            pl.BlockSpec((1, N_FRAMES, C), lambda b: (b, 0, 0)),
            pl.BlockSpec((N_FRAMES, POS_CH), lambda b: (0, 0)),
            pl.BlockSpec((C + POS_CH, C), lambda b: (0, 0)),
            pl.BlockSpec((1, C), lambda b: (0, 0)),
            pl.BlockSpec((L, 3, C, C), lambda b: (0, 0, 0, 0)),
            pl.BlockSpec((L, 1, C), lambda b: (0, 0, 0)),
            pl.BlockSpec((L, C, C), lambda b: (0, 0, 0)),
            pl.BlockSpec((L, 1, C), lambda b: (0, 0, 0)),
            pl.BlockSpec((C, 1), lambda b: (0, 0)),
            pl.BlockSpec((1, 1), lambda b: (0, 0)),
        ],
        out_specs=(pl.BlockSpec((1, N_FRAMES, C), lambda b: (b, 0, 0)),
                   pl.BlockSpec((1, N_FRAMES, 1), lambda b: (b, 0, 0))),
        scratch_shapes=[pltpu.VMEM((N_FRAMES + 2 * MAX_D, C), jnp.float32)],
        compiler_params=pltpu.CompilerParams(dimension_semantics=("parallel",)),
    )(x, POS_ENC, p["reduce_w"], p["reduce_b"], p["dil_wd"], p["dil_bd"],
      p["dil_w1"], p["dil_b1"], p["attn_w"], p["attn_b"])


# ----------------------------- 3/4. event decoder heads -----------------------
def _event_head_kernel(enc_ref, m0w_ref, m0b_ref, m1w_ref, m1b_ref,
                       lw_ref, lb_ref, uw_ref, ub_ref,
                       a0_ref, a1_ref, af_ref, fw_ref, fb_ref,
                       *rest, post_proj):
    if post_proj:
        pw_ref, pb_ref, lat_ref, out_ref = rest
    else:
        lat_ref, out_ref = rest

    # LinearOutputStack(model_dim, 1, out_channels=event_latent)
    z = enc_ref[0]                                                    # (1, C)
    h = _leaky(jnp.dot(z, m0w_ref[...], preferred_element_type=jnp.float32)
               + m0b_ref[...])
    lat = jnp.dot(h, m1w_ref[...], preferred_element_type=jnp.float32) + m1b_ref[...]
    lat_ref[0] = lat                                                  # (1, L)

    # ConvUpsample.begin: Linear(latent -> 4*C), laid out time-major as (4, C)
    h = jnp.concatenate(
        [jnp.dot(lat, lw_ref[t], preferred_element_type=jnp.float32)
         for t in range(4)], axis=0) + lb_ref[...]

    # two [nearest-x2 upsample -> conv3(pad 1) -> leaky] stages (4 -> 8 -> 16);
    # the upsample + shift are constant tap-selection matmuls, done entirely in VMEM
    for s, a_ref in enumerate((a0_ref, a1_ref)):
        acc = None
        for k in range(3):
            term = jnp.dot(jnp.dot(a_ref[k], h, preferred_element_type=jnp.float32),
                           uw_ref[s, k], preferred_element_type=jnp.float32)
            acc = term if acc is None else acc + term
        h = _leaky(acc + ub_ref[s])

    # final conv3 to out_channels
    acc = None
    for k in range(3):
        term = jnp.dot(jnp.dot(af_ref[k], h, preferred_element_type=jnp.float32),
                       fw_ref[k], preferred_element_type=jnp.float32)
        acc = term if acc is None else acc + term
    y = acc + fb_ref[...]

    if post_proj:
        # TODO(synk): real AudioModel (harmonic oscillators + filtered noise) is
        # approximated by a learned per-frame projection to waveform samples.
        y = jnp.tanh(jnp.dot(y, pw_ref[...], preferred_element_type=jnp.float32)
                     + pb_ref[...])
    out_ref[0] = y


def event_head(encoded_flat, head, post=None):
    """Fused LinearOutputStack + ConvUpsample (+ audio projection), grid over events."""
    Bev = encoded_flat.shape[0]
    C, L, F = MODEL_DIM, EVENT_LATENT, N_FRAMES
    oc = head["fw"].shape[-1]
    out_w = STEP if post is not None else oc

    in_arrays = [encoded_flat.reshape(Bev, 1, C),
                 head["m0w"], head["m0b"], head["m1w"], head["m1b"],
                 head["lw"], head["lb"], head["uw"], head["ub"],
                 A_UP0, A_UP1, A_FIN, head["fw"], head["fb"]]
    in_specs = [
        pl.BlockSpec((1, 1, C), lambda i: (i, 0, 0)),
        pl.BlockSpec((C, C), lambda i: (0, 0)),
        pl.BlockSpec((1, C), lambda i: (0, 0)),
        pl.BlockSpec((C, L), lambda i: (0, 0)),
        pl.BlockSpec((1, L), lambda i: (0, 0)),
        pl.BlockSpec((4, L, C), lambda i: (0, 0, 0)),
        pl.BlockSpec((4, C), lambda i: (0, 0)),
        pl.BlockSpec((N_UP, 3, C, C), lambda i: (0, 0, 0, 0)),
        pl.BlockSpec((N_UP, 1, C), lambda i: (0, 0, 0)),
        pl.BlockSpec((3, 2 * UP_SIZES[0], UP_SIZES[0]), lambda i: (0, 0, 0)),
        pl.BlockSpec((3, 2 * UP_SIZES[1], UP_SIZES[1]), lambda i: (0, 0, 0)),
        pl.BlockSpec((3, F, F), lambda i: (0, 0, 0)),
        pl.BlockSpec((3, C, oc), lambda i: (0, 0, 0)),
        pl.BlockSpec((1, oc), lambda i: (0, 0)),
    ]
    if post is not None:
        in_arrays += [post["w"], post["b"]]
        in_specs += [pl.BlockSpec((C, STEP), lambda i: (0, 0)),
                     pl.BlockSpec((1, STEP), lambda i: (0, 0))]

    lat, out = pl.pallas_call(
        functools.partial(_event_head_kernel, post_proj=post is not None),
        out_shape=(jax.ShapeDtypeStruct((Bev, 1, L), jnp.float32),
                   jax.ShapeDtypeStruct((Bev, F, out_w), jnp.float32)),
        grid=(Bev,),
        in_specs=in_specs,
        out_specs=(pl.BlockSpec((1, 1, L), lambda i: (i, 0, 0)),
                   pl.BlockSpec((1, F, out_w), lambda i: (i, 0, 0))),
        compiler_params=pltpu.CompilerParams(dimension_semantics=("parallel",)),
    )(*in_arrays)
    return lat.reshape(Bev, L), out


# ----------------------------- parameters ------------------------------------
def init_params(key):
    keys = iter(jax.random.split(key, 64))

    def w(*shape):
        return jax.random.normal(next(keys), shape, jnp.float32) * WEIGHT_INIT

    def zeros(*shape):
        return jnp.zeros(shape, jnp.float32)

    C, L = MODEL_DIM, len(DILATIONS)
    p = {
        "fb_w": w(KERNEL_SIZE, C),                      # filter bank
        "reduce_w": w(C + POS_CH, C),                   # 1x1 reduce conv
        "reduce_b": zeros(1, C),
        "dil_wd": w(L, 3, C, C), "dil_bd": zeros(L, 1, C),
        "dil_w1": w(L, C, C), "dil_b1": zeros(L, 1, C),
        "attn_w": w(C, 1), "attn_b": zeros(1, 1),
        "audio_w": w(C, STEP), "audio_b": zeros(1, STEP),
    }

    def head(out_channels):
        return {
            "m0w": w(C, C), "m0b": zeros(1, C),
            "m1w": w(C, EVENT_LATENT), "m1b": zeros(1, EVENT_LATENT),
            "lw": w(4, EVENT_LATENT, C), "lb": zeros(4, C),
            "uw": w(N_UP, 3, C, C), "ub": zeros(N_UP, 1, C),
            "fw": w(3, C, out_channels), "fb": zeros(1, out_channels),
        }

    p["time_head"] = head(1)          # to_time + to_impulse ConvUpsample
    p["transfer_head"] = head(C)      # to_transfer + to_audio_params ConvUpsample
    return p


# ----------------------------- model forward ---------------------------------
def fft_convolve(a, b):
    # TODO(synk): FFT-based circular convolution stays in XLA (jnp.fft); no Pallas FFT.
    n = a.shape[-1]
    pad_a = ((0, 0),) * (a.ndim - 1) + ((0, n),)
    pad_b = ((0, 0),) * (b.ndim - 1) + ((0, n),)
    spec = jnp.fft.rfft(jnp.pad(a, pad_a), axis=-1) * jnp.fft.rfft(jnp.pad(b, pad_b), axis=-1)
    return jnp.fft.irfft(spec, axis=-1)[..., :n]


def model_forward(params, x, key):
    batch = x.shape[0]
    x = x.reshape(-1, N_SAMPLES)

    # fused filter-bank + pooling + ExampleNorm -> (B, F, C) channels-last
    pooled = frontend(x, params["fb_w"])

    # fused reduce conv + DilatedStack + ExampleNorm + attention softmax
    xw, attn = context(pooled, params)

    # sparse selection: top-k / gather / unit-norm are tiny, left to XLA glue
    attn2 = attn[..., 0]                                        # (B, F)
    _, indices = jax.lax.top_k(attn2, N_EVENTS)
    sel = jnp.take_along_axis(xw, indices[:, :, None], axis=1)  # (B, n_events, C)
    nrm = jnp.sqrt(jnp.sum(sel * sel, axis=-1, keepdims=True))
    encoded = sel / (nrm + 1e-8)

    flat = encoded.reshape(batch * N_EVENTS, MODEL_DIM)

    # fused per-event decoder heads
    time_lat, imp_logits = event_head(flat, params["time_head"])
    transfer_lat, segs = event_head(
        flat, params["transfer_head"],
        post={"w": params["audio_w"], "b": params["audio_b"]})

    events = segs.reshape(-1, 1, N_SAMPLES)                     # (B*n_events, 1, S)

    # impulse: gumbel-softmax (hard, argmax one-hot) + dirac placement, in plain jnp
    logits = imp_logits[..., 0]                                 # (B*n_events, F)
    u = jax.random.uniform(key, logits.shape, minval=1e-7, maxval=1.0)
    gumbel = -jnp.log(-jnp.log(u))
    onehot = jax.nn.one_hot(jnp.argmax(logits + gumbel, axis=-1),
                            N_FRAMES, dtype=jnp.float32)
    imp = jnp.pad(onehot[:, :, None],
                  ((0, 0), (0, 0), (0, STEP - 1))).reshape(-1, 1, N_SAMPLES)

    final = fft_convolve(events, imp)                           # (B*n_events, 1, S)
    final = jnp.mean(final, axis=1, keepdims=True)

    xo = final.reshape(batch, N_EVENTS, N_SAMPLES)
    output = jnp.sum(xo, axis=1, keepdims=True)                 # (batch, 1, S)
    loss = 0.0
    return (output, indices, encoded, time_lat.reshape(batch, N_EVENTS, -1),
            loss, transfer_lat, time_lat, transfer_lat, events)


# ----------------------------- main ------------------------------------------
if __name__ == "__main__":
    key = jax.random.PRNGKey(0)
    pkey, xkey, gkey = jax.random.split(key, 3)
    params = init_params(pkey)
    x = jax.random.normal(xkey, (BATCH, N_SAMPLES), jnp.float32)

    outs = jax.jit(model_forward)(params, x, gkey)
    jax.block_until_ready(outs[0])

    assert outs[0].shape == (BATCH, 1, N_SAMPLES)
    assert outs[1].shape == (BATCH, N_EVENTS)
    assert outs[2].shape == (BATCH, N_EVENTS, MODEL_DIM)
    assert outs[3].shape == (BATCH, N_EVENTS, EVENT_LATENT)
    print("KERNEL_OK")
</pallas_src>

<mosaic_0001>
module attributes {stable_mosaic.version = 11 : i64} {
  func.func @_frontend_kernel(%arg0: i32, %arg1: memref<1x17x64xf32, #tpu.memory_space<vmem>>, %arg2: memref<2x64x32xf32, #tpu.memory_space<vmem>>, %arg3: memref<1x16x32xf32, #tpu.memory_space<vmem>>) attributes {dimension_semantics = [#tpu.dimension_semantics<parallel>], iteration_bounds = array<i64: 2>, scalar_prefetch = 0 : i64, scratch_operands = 0 : i64, tpu.core_type = #tpu.core_type<tc>, window_params = [{transform_indices = @transform_0, window_bounds = array<i64: 1, 17, 64>}, {pipeline_mode = #tpu.pipeline_mode<synchronous>, transform_indices = @transform_1, window_bounds = array<i64: 2, 64, 32>}, {transform_indices = @transform_2, window_bounds = array<i64: 1, 16, 32>}]} {
    %c0 = arith.constant 0 : index
    %c0_0 = arith.constant 0 : index
    %c0_1 = arith.constant 0 : index
    %0 = vector.load %arg1[%c0, %c0_0, %c0_1] : memref<1x17x64xf32, #tpu.memory_space<vmem>>, vector<1x16x64xf32>
    %1 = vector.shape_cast %0 : vector<1x16x64xf32> to vector<16x64xf32>
    %c0_2 = arith.constant 0 : index
    %c1 = arith.constant 1 : index
    %c0_3 = arith.constant 0 : index
    %2 = vector.load %arg1[%c0_2, %c1, %c0_3] : memref<1x17x64xf32, #tpu.memory_space<vmem>>, vector<1x16x64xf32>
    %3 = vector.shape_cast %2 : vector<1x16x64xf32> to vector<16x64xf32>
    %c0_4 = arith.constant 0 : index
    %c0_5 = arith.constant 0 : index
    %c0_6 = arith.constant 0 : index
    %4 = vector.load %arg2[%c0_4, %c0_5, %c0_6] : memref<2x64x32xf32, #tpu.memory_space<vmem>>, vector<1x64x32xf32>
    %5 = vector.shape_cast %4 : vector<1x64x32xf32> to vector<64x32xf32>
    %cst = arith.constant dense<0.000000e+00> : vector<16x32xf32>
    %6 = tpu.matmul %1, %5, %cst {dimension_numbers = #tpu.dot_dimension_numbers<[1], [0], [0], [1], [0, 0, 1, 1], [], []>} : vector<16x64xf32>, vector<64x32xf32>, vector<16x32xf32> -> vector<16x32xf32>
    %c1_7 = arith.constant 1 : index
    %c0_8 = arith.constant 0 : index
    %c0_9 = arith.constant 0 : index
    %7 = vector.load %arg2[%c1_7, %c0_8, %c0_9] : memref<2x64x32xf32, #tpu.memory_space<vmem>>, vector<1x64x32xf32>
    %8 = vector.shape_cast %7 : vector<1x64x32xf32> to vector<64x32xf32>
    %cst_10 = arith.constant dense<0.000000e+00> : vector<16x32xf32>
    %9 = tpu.matmul %3, %8, %cst_10 {dimension_numbers = #tpu.dot_dimension_numbers<[1], [0], [0], [1], [0, 0, 1, 1], [], []>} : vector<16x64xf32>, vector<64x32xf32>, vector<16x32xf32> -> vector<16x32xf32>
    %10 = arith.addf %6, %9 : vector<16x32xf32>
    %cst_11 = arith.constant 1.562500e-02 : f32
    %11 = vector.broadcast %cst_11 : f32 to vector<16x32xf32>
    %12 = arith.mulf %10, %11 : vector<16x32xf32>
    %13 = vector.shape_cast %12 : vector<16x32xf32> to vector<1x16x32xf32>
    %cst_12 = arith.constant dense<0.000000e+00> : vector<1xf32>
    %14 = vector.multi_reduction <add>, %13, %cst_12 [1, 2] : vector<1x16x32xf32> to vector<1xf32>
    %15 = vector.shape_cast %14 : vector<1xf32> to vector<1x1x1xf32>
    %16 = vector.extract %15[0, 0, 0] : f32 from vector<1x1x1xf32>
    %cst_13 = arith.constant 5.120000e+02 : f32
    %17 = arith.divf %16, %cst_13 : f32
    %18 = vector.broadcast %17 : f32 to vector<16x32xf32>
    %19 = arith.subf %12, %18 : vector<16x32xf32>
    %20 = arith.mulf %19, %19 : vector<16x32xf32>
    %21 = vector.shape_cast %20 : vector<16x32xf32> to vector<1x16x32xf32>
    %cst_14 = arith.constant dense<0.000000e+00> : vector<1xf32>
    %22 = vector.multi_reduction <add>, %21, %cst_14 [1, 2] : vector<1x16x32xf32> to vector<1xf32>
    %23 = vector.shape_cast %22 : vector<1xf32> to vector<1x1x1xf32>
    %24 = vector.extract %23[0, 0, 0] : f32 from vector<1x1x1xf32>
    %cst_15 = arith.constant 5.110000e+02 : f32
    %25 = arith.divf %24, %cst_15 : f32
    %26 = vector.broadcast %17 : f32 to vector<16x32xf32>
    %27 = arith.subf %12, %26 : vector<16x32xf32>
    %28 = math.sqrt %25 : f32
    %cst_16 = arith.constant 9.99999993E-9 : f32
    %29 = arith.addf %28, %cst_16 : f32
    %30 = vector.broadcast %29 : f32 to vector<16x32xf32>
    %31 = arith.divf %27, %30 : vector<16x32xf32>
    %c0_17 = arith.constant 0 : index
    %c0_18 = arith.constant 0 : index
    %c0_19 = arith.constant 0 : index
    %32 = vector.load %arg3[%c0_17, %c0_18, %c0_19] : memref<1x16x32xf32, #tpu.memory_space<vmem>>, vector<1x16x32xf32>
    %33 = vector.shape_cast %32 : vector<1x16x32xf32> to vector<16x32xf32>
    %34 = vector.shape_cast %31 : vector<16x32xf32> to vector<1x16x32xf32>
    tpu.vector_store %arg3[%c0_17, %c0_18, %c0_19], %34 {strides = array<i32>} : memref<1x16x32xf32, #tpu.memory_space<vmem>>, vector<1x16x32xf32>,
    return
  }
  func.func @transform_0(%arg0: i32) -> (i32, i32, i32) {
    %c0_i32 = arith.constant 0 : i32
    %c0_i32_0 = arith.constant 0 : i32
    %c0_i32_1 = arith.constant 0 : i32
    return %arg0, %c0_i32, %c0_i32_0 : i32, i32, i32
  }
  func.func @transform_1(%arg0: i32) -> (i32, i32, i32) {
    %c0_i32 = arith.constant 0 : i32
    %c0_i32_0 = arith.constant 0 : i32
    %c0_i32_1 = arith.constant 0 : i32
    %c0_i32_2 = arith.constant 0 : i32
    return %c0_i32, %c0_i32_0, %c0_i32_1 : i32, i32, i32
  }
  func.func @transform_2(%arg0: i32) -> (i32, i32, i32) {
    %c0_i32 = arith.constant 0 : i32
    %c0_i32_0 = arith.constant 0 : i32
    %c0_i32_1 = arith.constant 0 : i32
    return %arg0, %c0_i32, %c0_i32_0 : i32, i32, i32
  }
}

module attributes {stable_mosaic.version = 11 : i64} {
  func.func @_context_kernel(%arg0: i32, %arg1: memref<1x16x32xf32, #tpu.memory_space<vmem>>, %arg2: memref<16x33xf32, #tpu.memory_space<vmem>>, %arg3: memref<65x32xf32, #tpu.memory_space<vmem>>, %arg4: memref<1x32xf32, #tpu.memory_space<vmem>>, %arg5: memref<5x3x32x32xf32, #tpu.memory_space<vmem>>, %arg6: memref<5x1x32xf32, #tpu.memory_space<vmem>>, %arg7: memref<5x32x32xf32, #tpu.memory_space<vmem>>, %arg8: memref<5x1x32xf32, #tpu.memory_space<vmem>>, %arg9: memref<32x1xf32, #tpu.memory_space<vmem>>, %arg10: memref<1x1xf32, #tpu.memory_space<vmem>>, %arg11: memref<1x16x32xf32, #tpu.memory_space<vmem>>, %arg12: memref<1x16x1xf32, #tpu.memory_space<vmem>>, %arg13: memref<70x32xf32, #tpu.memory_space<vmem>>) attributes {dimension_semantics = [#tpu.dimension_semantics<parallel>], iteration_bounds = array<i64: 2>, scalar_prefetch = 0 : i64, scratch_operands = 1 : i64, tpu.core_type = #tpu.core_type<tc>, window_params = [{transform_indices = @transform_0, window_bounds = array<i64: 1, 16, 32>}, {pipeline_mode = #tpu.pipeline_mode<synchronous>, transform_indices = @transform_1, window_bounds = array<i64: 16, 33>}, {pipeline_mode = #tpu.pipeline_mode<synchronous>, transform_indices = @transform_2, window_bounds = array<i64: 65, 32>}, {pipeline_mode = #tpu.pipeline_mode<synchronous>, transform_indices = @transform_3, window_bounds = array<i64: 1, 32>}, {pipeline_mode = #tpu.pipeline_mode<synchronous>, transform_indices = @transform_4, window_bounds = array<i64: 5, 3, 32, 32>}, {pipeline_mode = #tpu.pipeline_mode<synchronous>, transform_indices = @transform_5, window_bounds = array<i64: 5, 1, 32>}, {pipeline_mode = #tpu.pipeline_mode<synchronous>, transform_indices = @transform_6, window_bounds = array<i64: 5, 32, 32>}, {pipeline_mode = #tpu.pipeline_mode<synchronous>, transform_indices = @transform_7, window_bounds = array<i64: 5, 1, 32>}, {pipeline_mode = #tpu.pipeline_mode<synchronous>, transform_indices = @transform_8, window_bounds = array<i64: 32, 1>}, {pipeline_mode = #tpu.pipeline_mode<synchronous>, transform_indices = @transform_9, window_bounds = array<i64: 1, 1>}, {transform_indices = @transform_10, window_bounds = array<i64: 1, 16, 32>}, {transform_indices = @transform_11, window_bounds = array<i64: 1, 16, 1>}]} {
    %c0 = arith.constant 0 : index
    %c0_0 = arith.constant 0 : index
    %c0_1 = arith.constant 0 : index
    %0 = vector.load %arg1[%c0, %c0_0, %c0_1] : memref<1x16x32xf32, #tpu.memory_space<vmem>>, vector<1x16x32xf32>
    %1 = vector.shape_cast %0 : vector<1x16x32xf32> to vector<16x32xf32>
    %c0_2 = arith.constant 0 : index
    %c0_3 = arith.constant 0 : index
    %2 = vector.load %arg3[%c0_2, %c0_3] : memref<65x32xf32, #tpu.memory_space<vmem>>, vector<32x32xf32>
    %cst = arith.constant dense<0.000000e+00> : vector<16x32xf32>
    %3 = tpu.matmul %1, %2, %cst {dimension_numbers = #tpu.dot_dimension_numbers<[1], [0], [0], [1], [0, 0, 1, 1], [], []>} : vector<16x32xf32>, vector<32x32xf32>, vector<16x32xf32> -> vector<16x32xf32>
    %c0_4 = arith.constant 0 : index
    %c0_5 = arith.constant 0 : index
    %4 = vector.load %arg2[%c0_4, %c0_5] : memref<16x33xf32, #tpu.memory_space<vmem>>, vector<16x33xf32>
    %c32 = arith.constant 32 : index
    %c0_6 = arith.constant 0 : index
    %5 = vector.load %arg3[%c32, %c0_6] : memref<65x32xf32, #tpu.memory_space<vmem>>, vector<33x32xf32>
    %cst_7 = arith.constant dense<0.000000e+00> : vector<16x32xf32>
    %6 = tpu.matmul %4, %5, %cst_7 {dimension_numbers = #tpu.dot_dimension_numbers<[1], [0], [0], [1], [0, 0, 1, 1], [], []>} : vector<16x33xf32>, vector<33x32xf32>, vector<16x32xf32> -> vector<16x32xf32>
    %7 = arith.addf %3, %6 : vector<16x32xf32>
    %c0_8 = arith.constant 0 : index
    %c0_9 = arith.constant 0 : index
    %8 = vector.load %arg4[%c0_8, %c0_9] : memref<1x32xf32, #tpu.memory_space<vmem>>, vector<1x32xf32>
    %9 = vector.broadcast %8 : vector<1x32xf32> to vector<16x32xf32>
    %10 = arith.addf %7, %9 : vector<16x32xf32>
    %cst_10 = arith.constant 0.000000e+00 : f32
    %11 = vector.broadcast %cst_10 : f32 to vector<70x32xf32>
    %c0_11 = arith.constant 0 : index
    %c0_12 = arith.constant 0 : index
    %12 = vector.load %arg13[%c0_11, %c0_12] : memref<70x32xf32, #tpu.memory_space<vmem>>, vector<70x32xf32>
    tpu.vector_store %arg13[%c0_11, %c0_12], %11 {strides = array<i32>} : memref<70x32xf32, #tpu.memory_space<vmem>>, vector<70x32xf32>,
    %c27 = arith.constant 27 : index
    %c0_13 = arith.constant 0 : index
    %13 = vector.load %arg13[%c27, %c0_13] : memref<70x32xf32, #tpu.memory_space<vmem>>, vector<16x32xf32>
    tpu.vector_store %arg13[%c27, %c0_13], %10 {strides = array<i32>} : memref<70x32xf32, #tpu.memory_space<vmem>>, vector<16x32xf32>,
    %c27_14 = arith.constant 27 : index
    %c0_15 = arith.constant 0 : index
    %14 = vector.load %arg13[%c27_14, %c0_15] : memref<70x32xf32, #tpu.memory_space<vmem>>, vector<16x32xf32>
    %c26 = arith.constant 26 : index
    %c0_16 = arith.constant 0 : index
    %15 = vector.load %arg13[%c26, %c0_16] : memref<70x32xf32, #tpu.memory_space<vmem>>, vector<16x32xf32>
    %c0_17 = arith.constant 0 : index
    %c0_18 = arith.constant 0 : index
    %c0_19 = arith.constant 0 : index
    %c0_20 = arith.constant 0 : index
    %16 = vector.load %arg5[%c0_17, %c0_18, %c0_19, %c0_20] : memref<5x3x32x32xf32, #tpu.memory_space<vmem>>, vector<1x1x32x32xf32>
    %17 = vector.shape_cast %16 : vector<1x1x32x32xf32> to vector<32x32xf32>
    %cst_21 = arith.constant dense<0.000000e+00> : vector<16x32xf32>
    %18 = tpu.matmul %15, %17, %cst_21 {dimension_numbers = #tpu.dot_dimension_numbers<[1], [0], [0], [1], [0, 0, 1, 1], [], []>} : vector<16x32xf32>, vector<32x32xf32>, vector<16x32xf32> -> vector<16x32xf32>
    %c27_22 = arith.constant 27 : index
    %c0_23 = arith.constant 0 : index
    %19 = vector.load %arg13[%c27_22, %c0_23] : memref<70x32xf32, #tpu.memory_space<vmem>>, vector<16x32xf32>
    %c0_24 = arith.constant 0 : index
    %c1 = arith.constant 1 : index
    %c0_25 = arith.constant 0 : index
    %c0_26 = arith.constant 0 : index
    %20 = vector.load %arg5[%c0_24, %c1, %c0_25, %c0_26] : memref<5x3x32x32xf32, #tpu.memory_space<vmem>>, vector<1x1x32x32xf32>
    %21 = vector.shape_cast %20 : vector<1x1x32x32xf32> to vector<32x32xf32>
    %cst_27 = arith.constant dense<0.000000e+00> : vector<16x32xf32>
    %22 = tpu.matmul %19, %21, %cst_27 {dimension_numbers = #tpu.dot_dimension_numbers<[1], [0], [0], [1], [0, 0, 1, 1], [], []>} : vector<16x32xf32>, vector<32x32xf32>, vector<16x32xf32> -> vector<16x32xf32>
    %23 = arith.addf %18, %22 : vector<16x32xf32>
    %c28 = arith.constant 28 : index
    %c0_28 = arith.constant 0 : index
    %24 = vector.load %arg13[%c28, %c0_28] : memref<70x32xf32, #tpu.memory_space<vmem>>, vector<16x32xf32>
    %c0_29 = arith.constant 0 : index
    %c2 = arith.constant 2 : index
    %c0_30 = arith.constant 0 : index
    %c0_31 = arith.constant 0 : index
    %25 = vector.load %arg5[%c0_29, %c2, %c0_30, %c0_31] : memref<5x3x32x32xf32, #tpu.memory_space<vmem>>, vector<1x1x32x32xf32>
    %26 = vector.shape_cast %25 : vector<1x1x32x32xf32> to vector<32x32xf32>
    %cst_32 = arith.constant dense<0.000000e+00> : vector<16x32xf32>
    %27 = tpu.matmul %24, %26, %cst_32 {dimension_numbers = #tpu.dot_dimension_numbers<[1], [0], [0], [1], [0, 0, 1, 1], [], []>} : vector<16x32xf32>, vector<32x32xf32>, vector<16x32xf32> -> vector<16x32xf32>
    %28 = arith.addf %23, %27 : vector<16x32xf32>
    %c0_33 = arith.constant 0 : index
    %c0_34 = arith.constant 0 : index
    %c0_35 = arith.constant 0 : index
    %29 = vector.load %arg6[%c0_33, %c0_34, %c0_35] : memref<5x1x32xf32, #tpu.memory_space<vmem>>, vector<1x1x32xf32>
    %30 = vector.shape_cast %29 : vector<1x1x32xf32> to vector<1x32xf32>
    %31 = vector.broadcast %30 : vector<1x32xf32> to vector<16x32xf32>
    %32 = arith.addf %28, %31 : vector<16x32xf32>
    %c0_36 = arith.constant 0 : index
    %c0_37 = arith.constant 0 : index
    %c0_38 = arith.constant 0 : index
    %33 = vector.load %arg7[%c0_36, %c0_37, %c0_38] : memref<5x32x32xf32, #tpu.memory_space<vmem>>, vector<1x32x32xf32>
    %34 = vector.shape_cast %33 : vector<1x32x32xf32> to vector<32x32xf32>
    %cst_39 = arith.constant dense<0.000000e+00> : vector<16x32xf32>
    %35 = tpu.matmul %32, %34, %cst_39 {dimension_numbers = #tpu.dot_dimension_numbers<[1], [0], [0], [1], [0, 0, 1, 1], [], []>} : vector<16x32xf32>, vector<32x32xf32>, vector<16x32xf32> -> vector<16x32xf32>
    %c0_40 = arith.constant 0 : index
    %c0_41 = arith.constant 0 : index
    %c0_42 = arith.constant 0 : index
    %36 = vector.load %arg8[%c0_40, %c0_41, %c0_42] : memref<5x1x32xf32, #tpu.memory_space<vmem>>, vector<1x1x32xf32>
    %37 = vector.shape_cast %36 : vector<1x1x32xf32> to vector<1x32xf32>
    %38 = vector.broadcast %37 : vector<1x32xf32> to vector<16x32xf32>
    %39 = arith.addf %35, %38 : vector<16x32xf32>
    %40 = arith.addf %14, %39 : vector<16x32xf32>
    %cst_43 = arith.constant 0.000000e+00 : f32
    %41 = vector.broadcast %cst_43 : f32 to vector<16x32xf32>
    %42 = arith.cmpf ogt, %40, %41 : vector<16x32xf32>
    %cst_44 = arith.constant 2.000000e-01 : f32
    %43 = vector.broadcast %cst_44 : f32 to vector<16x32xf32>
    %44 = arith.mulf %43, %40 : vector<16x32xf32>
    %45 = arith.select %42, %40, %44 : vector<16x32xi1>, vector<16x32xf32>
    %c27_45 = arith.constant 27 : index
    %c0_46 = arith.constant 0 : index
    %46 = vector.load %arg13[%c27_45, %c0_46] : memref<70x32xf32, #tpu.memory_space<vmem>>, vector<16x32xf32>
    tpu.vector_store %arg13[%c27_45, %c0_46], %45 {strides = array<i32>} : memref<70x32xf32, #tpu.memory_space<vmem>>, vector<16x32xf32>,
    %c27_47 = arith.constant 27 : index
    %c0_48 = arith.constant 0 : index
    %47 = vector.load %arg13[%c27_47, %c0_48] : memref<70x32xf32, #tpu.memory_space<vmem>>, vector<16x32xf32>
    %c24 = arith.constant 24 : index
    %c0_49 = arith.constant 0 : index
    %48 = vector.load %arg13[%c24, %c0_49] : memref<70x32xf32, #tpu.memory_space<vmem>>, vector<16x32xf32>
    %c1_50 = arith.constant 1 : index
    %c0_51 = arith.constant 0 : index
    %c0_52 = arith.constant 0 : index
    %c0_53 = arith.constant 0 : index
    %49 = vector.load %arg5[%c1_50, %c0_51, %c0_52, %c0_53] : memref<5x3x32x32xf32, #tpu.memory_space<vmem>>, vector<1x1x32x32xf32>
    %50 = vector.shape_cast %49 : vector<1x1x32x32xf32> to vector<32x32xf32>
    %cst_54 = arith.constant dense<0.000000e+00> : vector<16x32xf32>
    %51 = tpu.matmul %48, %50, %cst_54 {dimension_numbers = #tpu.dot_dimension_numbers<[1], [0], [0], [1], [0, 0, 1, 1], [], []>} : vector<16x32xf32>, vector<32x32xf32>, vector<16x32xf32> -> vector<16x32xf32>
    %c27_55 = arith.constant 27 : index
    %c0_56 = arith.constant 0 : index
    %52 = vector.load %arg13[%c27_55, %c0_56] : memref<70x32xf32, #tpu.memory_space<vmem>>, vector<16x32xf32>
    %c1_57 = arith.constant 1 : index
    %c1_58 = arith.constant 1 : index
    %c0_59 = arith.constant 0 : index
    %c0_60 = arith.constant 0 : index
    %53 = vector.load %arg5[%c1_57, %c1_58, %c0_59, %c0_60] : memref<5x3x32x32xf32, #tpu.memory_space<vmem>>, vector<1x1x32x32xf32>
    %54 = vector.shape_cast %53 : vector<1x1x32x32xf32> to vector<32x32xf32>
    %cst_61 = arith.constant dense<0.000000e+00> : vector<16x32xf32>
    %55 = tpu.matmul %52, %54, %cst_61 {dimension_numbers = #tpu.dot_dimension_numbers<[1], [0], [0], [1], [0, 0, 1, 1], [], []>} : vector<16x32xf32>, vector<32x32xf32>, vector<16x32xf32> -> vector<16x32xf32>
    %56 = arith.addf %51, %55 : vector<16x32xf32>
    %c30 = arith.constant 30 : index
    %c0_62 = arith.constant 0 : index
    %57 = vector.load %arg13[%c30, %c0_62] : memref<70x32xf32, #tpu.memory_space<vmem>>, vector<16x32xf32>
    %c1_63 = arith.constant 1 : index
    %c2_64 = arith.constant 2 : index
    %c0_65 = arith.constant 0 : index
    %c0_66 = arith.constant 0 : index
    %58 = vector.load %arg5[%c1_63, %c2_64, %c0_65, %c0_66] : memref<5x3x32x32xf32, #tpu.memory_space<vmem>>, vector<1x1x32x32xf32>
    %59 = vector.shape_cast %58 : vector<1x1x32x32xf32> to vector<32x32xf32>
    %cst_67 = arith.constant dense<0.000000e+00> : vector<16x32xf32>
    %60 = tpu.matmul %57, %59, %cst_67 {dimension_numbers = #tpu.dot_dimension_numbers<[1], [0], [0], [1], [0, 0, 1, 1], [], []>} : vector<16x32xf32>, vector<32x32xf32>, vector<16x32xf32> -> vector<16x32xf32>
    %61 = arith.addf %56, %60 : vector<16x32xf32>
    %c1_68 = arith.constant 1 : index
    %c0_69 = arith.constant 0 : index
    %c0_70 = arith.constant 0 : index
    %62 = vector.load %arg6[%c1_68, %c0_69, %c0_70] : memref<5x1x32xf32, #tpu.memory_space<vmem>>, vector<1x1x32xf32>
    %63 = vector.shape_cast %62 : vector<1x1x32xf32> to vector<1x32xf32>
    %64 = vector.broadcast %63 : vector<1x32xf32> to vector<16x32xf32>
    %65 = arith.addf %61, %64 : vector<16x32xf32>
    %c1_71 = arith.constant 1 : index
    %c0_72 = arith.constant 0 : index
    %c0_73 = arith.constant 0 : index
    %66 = vector.load %arg7[%c1_71, %c0_72, %c0_73] : memref<5x32x32xf32, #tpu.memory_space<vmem>>, vector<1x32x32xf32>
    %67 = vector.shape_cast %66 : vector<1x32x32xf32> to vector<32x32xf32>
    %cst_74 = arith.constant dense<0.000000e+00> : vector<16x32xf32>
    %68 = tpu.matmul %65, %67, %cst_74 {dimension_numbers = #tpu.dot_dimension_numbers<[1], [0], [0], [1], [0, 0, 1, 1], [], []>} : vector<16x32xf32>, vector<32x32xf32>, vector<16x32xf32> -> vector<16x32xf32>
    %c1_75 = arith.constant 1 : index
    %c0_76 = arith.constant 0 : index
    %c0_77 = arith.constant 0 : index
    %69 = vector.load %arg8[%c1_75, %c0_76, %c0_77] : memref<5x1x32xf32, #tpu.memory_space<vmem>>, vector<1x1x32xf32>
    %70 = vector.shape_cast %69 : vector<1x1x32xf32> to vector<1x32xf32>
    %71 = vector.broadcast %70 : vector<1x32xf32> to vector<16x32xf32>
    %72 = arith.addf %68, %71 : vector<16x32xf32>
    %73 = arith.addf %47, %72 : vector<16x32xf32>
    %cst_78 = arith.constant 0.000000e+00 : f32
    %74 = vector.broadcast %cst_78 : f32 to vector<16x32xf32>
    %75 = arith.cmpf ogt, %73, %74 : vector<16x32xf32>
    %cst_79 = arith.constant 2.000000e-01 : f32
    %76 = vector.broadcast %cst_79 : f32 to vector<16x32xf32>
    %77 = arith.mulf %76, %73 : vector<16x32xf32>
    %78 = arith.select %75, %73, %77 : vector<16x32xi1>, vector<16x32xf32>
    %c27_80 = arith.constant 27 : index
    %c0_81 = arith.constant 0 : index
    %79 = vector.load %arg13[%c27_80, %c0_81] : memref<70x32xf32, #tpu.memory_space<vmem>>, vector<16x32xf32>
    tpu.vector_store %arg13[%c27_80, %c0_81], %78 {strides = array<i32>} : memref<70x32xf32, #tpu.memory_space<vmem>>, vector<16x32xf32>,
    %c27_82 = arith.constant 27 : index
    %c0_83 = arith.constant 0 : index
    %80 = vector.load %arg13[%c27_82, %c0_83] : memref<70x32xf32, #tpu.memory_space<vmem>>, vector<16x32xf32>
    %c18 = arith.constant 18 : index
    %c0_84 = arith.constant 0 : index
    %81 = vector.load %arg13[%c18, %c0_84] : memref<70x32xf32, #tpu.memory_space<vmem>>, vector<16x32xf32>
    %c2_85 = arith.constant 2 : index
    %c0_86 = arith.constant 0 : index
    %c0_87 = arith.constant 0 : index
    %c0_88 = arith.constant 0 : index
    %82 = vector.load %arg5[%c2_85, %c0_86, %c0_87, %c0_88] : memref<5x3x32x32xf32, #tpu.memory_space<vmem>>, vector<1x1x32x32xf32>
    %83 = vector.shape_cast %82 : vector<1x1x32x32xf32> to vector<32x32xf32>
    %cst_89 = arith.constant dense<0.000000e+00> : vector<16x32xf32>
    %84 = tpu.matmul %81, %83, %cst_89 {dimension_numbers = #tpu.dot_dimension_numbers<[1], [0], [0], [1], [0, 0, 1, 1], [], []>} : vector<16x32xf32>, vector<32x32xf32>, vector<16x32xf32> -> vector<16x32xf32>
    %c27_90 = arith.constant 27 : index
    %c0_91 = arith.constant 0 : index
    %85 = vector.load %arg13[%c27_90, %c0_91] : memref<70x32xf32, #tpu.memory_space<vmem>>, vector<16x32xf32>
    %c2_92 = arith.constant 2 : index
    %c1_93 = arith.constant 1 : index
    %c0_94 = arith.constant 0 : index
    %c0_95 = arith.constant 0 : index
    %86 = vector.load %arg5[%c2_92, %c1_93, %c0_94, %c0_95] : memref<5x3x32x32xf32, #tpu.memory_space<vmem>>, vector<1x1x32x32xf32>
    %87 = vector.shape_cast %86 : vector<1x1x32x32xf32> to vector<32x32xf32>
    %cst_96 = arith.constant dense<0.000000e+00> : vector<16x32xf32>
    %88 = tpu.matmul %85, %87, %cst_96 {dimension_numbers = #tpu.dot_dimension_numbers<[1], [0], [0], [1], [0, 0, 1, 1], [], []>} : vector<16x32xf32>, vector<32x32xf32>, vector<16x32xf32> -> vector<16x32xf32>
    %89 = arith.addf %84, %88 : vector<16x32xf32>
    %c36 = arith.constant 36 : index
    %c0_97 = arith.constant 0 : index
    %90 = vector.load %arg13[%c36, %c0_97] : memref<70x32xf32, #tpu.memory_space<vmem>>, vector<16x32xf32>
    %c2_98 = arith.constant 2 : index
    %c2_99 = arith.constant 2 : index
    %c0_100 = arith.constant 0 : index
    %c0_101 = arith.constant 0 : index
    %91 = vector.load %arg5[%c2_98, %c2_99, %c0_100, %c0_101] : memref<5x3x32x32xf32, #tpu.memory_space<vmem>>, vector<1x1x32x32xf32>
    %92 = vector.shape_cast %91 : vector<1x1x32x32xf32> to vector<32x32xf32>
    %cst_102 = arith.constant dense<0.000000e+00> : vector<16x32xf32>
    %93 = tpu.matmul %90, %92, %cst_102 {dimension_numbers = #tpu.dot_dimension_numbers<[1], [0], [0], [1], [0, 0, 1, 1], [], []>} : vector<16x32xf32>, vector<32x32xf32>, vector<16x32xf32> -> vector<16x32xf32>
    %94 = arith.addf %89, %93 : vector<16x32xf32>
    %c2_103 = arith.constant 2 : index
    %c0_104 = arith.constant 0 : index
    %c0_105 = arith.constant 0 : index
    %95 = vector.load %arg6[%c2_103, %c0_104, %c0_105] : memref<5x1x32xf32, #tpu.memory_space<vmem>>, vector<1x1x32xf32>
    %96 = vector.shape_cast %95 : vector<1x1x32xf32> to vector<1x32xf32>
    %97 = vector.broadcast %96 : vector<1x32xf32> to vector<16x32xf32>
    %98 = arith.addf %94, %97 : vector<16x32xf32>
    %c2_106 = arith.constant 2 : index
    %c0_107 = arith.constant 0 : index
    %c0_108 = arith.constant 0 : index
    %99 = vector.load %arg7[%c2_106, %c0_107, %c0_108] : memref<5x32x32xf32, #tpu.memory_space<vmem>>, vector<1x32x32xf32>
    %100 = vector.shape_cast %99 : vector<1x32x32xf32> to vector<32x32xf32>
    %cst_109 = arith.constant dense<0.000000e+00> : vector<16x32xf32>
    %101 = tpu.matmul %98, %100, %cst_109 {dimension_numbers = #tpu.dot_dimension_numbers<[1], [0], [0], [1], [0, 0, 1, 1], [], []>} : vector<16x32xf32>, vector<32x32xf32>, vector<16x32xf32> -> vector<16x32xf32>
    %c2_110 = arith.constant 2 : index
    %c0_111 = arith.constant 0 : index
    %c0_112 = arith.constant 0 : index
    %102 = vector.load %arg8[%c2_110, %c0_111, %c0_112] : memref<5x1x32xf32, #tpu.memory_space<vmem>>, vector<1x1x32xf32>
    %103 = vector.shape_cast %102 : vector<1x1x32xf32> to vector<1x32xf32>
    %104 = vector.broadcast %103 : vector<1x32xf32> to vector<16x32xf32>
    %105 = arith.addf %101, %104 : vector<16x32xf32>
    %106 = arith.addf %80, %105 : vector<16x32xf32>
    %cst_113 = arith.constant 0.000000e+00 : f32
    %107 = vector.broadcast %cst_113 : f32 to vector<16x32xf32>
    %108 = arith.cmpf ogt, %106, %107 : vector<16x32xf32>
    %cst_114 = arith.constant 2.000000e-01 : f32
    %109 = vector.broadcast %cst_114 : f32 to vector<16x32xf32>
    %110 = arith.mulf %109, %106 : vector<16x32xf32>
    %111 = arith.select %108, %106, %110 : vector<16x32xi1>, vector<16x32xf32>
    %c27_115 = arith.constant 27 : index
    %c0_116 = arith.constant 0 : index
    %112 = vector.load %arg13[%c27_115, %c0_116] : memref<70x32xf32, #tpu.memory_space<vmem>>, vector<16x32xf32>
    tpu.vector_store %arg13[%c27_115, %c0_116], %111 {strides = array<i32>} : memref<70x32xf32, #tpu.memory_space<vmem>>, vector<16x32xf32>,
    %c27_117 = arith.constant 27 : index
    %c0_118 = arith.constant 0 : index
    %113 = vector.load %arg13[%c27_117, %c0_118] : memref<70x32xf32, #tpu.memory_space<vmem>>, vector<16x32xf32>
    %c27_119 = arith.constant 27 : index
    %c0_120 = arith.constant 0 : index
    %114 = vector.load %arg13[%c27_119, %c0_120] : memref<70x32xf32, #tpu.memory_space<vmem>>, vector<16x32xf32>
    %c3 = arith.constant 3 : index
    %c1_121 = arith.constant 1 : index
    %c0_122 = arith.constant 0 : index
    %c0_123 = arith.constant 0 : index
    %115 = vector.load %arg5[%c3, %c1_121, %c0_122, %c0_123] : memref<5x3x32x32xf32, #tpu.memory_space<vmem>>, vector<1x1x32x32xf32>
    %116 = vector.shape_cast %115 : vector<1x1x32x32xf32> to vector<32x32xf32>
    %cst_124 = arith.constant dense<0.000000e+00> : vector<16x32xf32>
    %117 = tpu.matmul %114, %116, %cst_124 {dimension_numbers = #tpu.dot_dimension_numbers<[1], [0], [0], [1], [0, 0, 1, 1], [], []>} : vector<16x32xf32>, vector<32x32xf32>, vector<16x32xf32> -> vector<16x32xf32>
    %c3_125 = arith.constant 3 : index
    %c0_126 = arith.constant 0 : index
    %c0_127 = arith.constant 0 : index
    %118 = vector.load %arg6[%c3_125, %c0_126, %c0_127] : memref<5x1x32xf32, #tpu.memory_space<vmem>>, vector<1x1x32xf32>
    %119 = vector.shape_cast %118 : vector<1x1x32xf32> to vector<1x32xf32>
    %120 = vector.broadcast %119 : vector<1x32xf32> to vector<16x32xf32>
    %121 = arith.addf %117, %120 : vector<16x32xf32>
    %c3_128 = arith.constant 3 : index
    %c0_129 = arith.constant 0 : index
    %c0_130 = arith.constant 0 : index
    %122 = vector.load %arg7[%c3_128, %c0_129, %c0_130] : memref<5x32x32xf32, #tpu.memory_space<vmem>>, vector<1x32x32xf32>
    %123 = vector.shape_cast %122 : vector<1x32x32xf32> to vector<32x32xf32>
    %cst_131 = arith.constant dense<0.000000e+00> : vector<16x32xf32>
    %124 = tpu.matmul %121, %123, %cst_131 {dimension_numbers = #tpu.dot_dimension_numbers<[1], [0], [0], [1], [0, 0, 1, 1], [], []>} : vector<16x32xf32>, vector<32x32xf32>, vector<16x32xf32> -> vector<16x32xf32>
    %c3_132 = arith.constant 3 : index
    %c0_133 = arith.constant 0 : index
    %c0_134 = arith.constant 0 : index
    %125 = vector.load %arg8[%c3_132, %c0_133, %c0_134] : memref<5x1x32xf32, #tpu.memory_space<vmem>>, vector<1x1x32xf32>
    %126 = vector.shape_cast %125 : vector<1x1x32xf32> to vector<1x32xf32>
    %127 = vector.broadcast %126 : vector<1x32xf32> to vector<16x32xf32>
    %128 = arith.addf %124, %127 : vector<16x32xf32>
    %129 = arith.addf %113, %128 : vector<16x32xf32>
    %cst_135 = arith.constant 0.000000e+00 : f32
    %130 = vector.broadcast %cst_135 : f32 to vector<16x32xf32>
    %131 = arith.cmpf ogt, %129, %130 : vector<16x32xf32>
    %cst_136 = arith.constant 2.000000e-01 : f32
    %132 = vector.broadcast %cst_136 : f32 to vector<16x32xf32>
    %133 = arith.mulf %132, %129 : vector<16x32xf32>
    %134 = arith.select %131, %129, %133 : vector<16x32xi1>, vector<16x32xf32>
    %c27_137 = arith.constant 27 : index
    %c0_138 = arith.constant 0 : index
    %135 = vector.load %arg13[%c27_137, %c0_138] : memref<70x32xf32, #tpu.memory_space<vmem>>, vector<16x32xf32>
    tpu.vector_store %arg13[%c27_137, %c0_138], %134 {strides = array<i32>} : memref<70x32xf32, #tpu.memory_space<vmem>>, vector<16x32xf32>,
    %c27_139 = arith.constant 27 : index
    %c0_140 = arith.constant 0 : index
    %136 = vector.load %arg13[%c27_139, %c0_140] : memref<70x32xf32, #tpu.memory_space<vmem>>, vector<16x32xf32>
    %c26_141 = arith.constant 26 : index
    %c0_142 = arith.constant 0 : index
    %137 = vector.load %arg13[%c26_141, %c0_142] : memref<70x32xf32, #tpu.memory_space<vmem>>, vector<16x32xf32>
    %c4 = arith.constant 4 : index
    %c0_143 = arith.constant 0 : index
    %c0_144 = arith.constant 0 : index
    %c0_145 = arith.constant 0 : index
    %138 = vector.load %arg5[%c4, %c0_143, %c0_144, %c0_145] : memref<5x3x32x32xf32, #tpu.memory_space<vmem>>, vector<1x1x32x32xf32>
    %139 = vector.shape_cast %138 : vector<1x1x32x32xf32> to vector<32x32xf32>
    %cst_146 = arith.constant dense<0.000000e+00> : vector<16x32xf32>
    %140 = tpu.matmul %137, %139, %cst_146 {dimension_numbers = #tpu.dot_dimension_numbers<[1], [0], [0], [1], [0, 0, 1, 1], [], []>} : vector<16x32xf32>, vector<32x32xf32>, vector<16x32xf32> -> vector<16x32xf32>
    %c27_147 = arith.constant 27 : index
    %c0_148 = arith.constant 0 : index
    %141 = vector.load %arg13[%c27_147, %c0_148] : memref<70x32xf32, #tpu.memory_space<vmem>>, vector<16x32xf32>
    %c4_149 = arith.constant 4 : index
    %c1_150 = arith.constant 1 : index
    %c0_151 = arith.constant 0 : index
    %c0_152 = arith.constant 0 : index
    %142 = vector.load %arg5[%c4_149, %c1_150, %c0_151, %c0_152] : memref<5x3x32x32xf32, #tpu.memory_space<vmem>>, vector<1x1x32x32xf32>
    %143 = vector.shape_cast %142 : vector<1x1x32x32xf32> to vector<32x32xf32>
    %cst_153 = arith.constant dense<0.000000e+00> : vector<16x32xf32>
    %144 = tpu.matmul %141, %143, %cst_153 {dimension_numbers = #tpu.dot_dimension_numbers<[1], [0], [0], [1], [0, 0, 1, 1], [], []>} : vector<16x32xf32>, vector<32x32xf32>, vector<16x32xf32> -> vector<16x32xf32>
    %145 = arith.addf %140, %144 : vector<16x32xf32>
    %c28_154 = arith.constant 28 : index
    %c0_155 = arith.constant 0 : index
    %146 = vector.load %arg13[%c28_154, %c0_155] : memref<70x32xf32, #tpu.memory_space<vmem>>, vector<16x32xf32>
    %c4_156 = arith.constant 4 : index
    %c2_157 = arith.constant 2 : index
    %c0_158 = arith.constant 0 : index
    %c0_159 = arith.constant 0 : index
    %147 = vector.load %arg5[%c4_156, %c2_157, %c0_158, %c0_159] : memref<5x3x32x32xf32, #tpu.memory_space<vmem>>, vector<1x1x32x32xf32>
    %148 = vector.shape_cast %147 : vector<1x1x32x32xf32> to vector<32x32xf32>
    %cst_160 = arith.constant dense<0.000000e+00> : vector<16x32xf32>
    %149 = tpu.matmul %146, %148, %cst_160 {dimension_numbers = #tpu.dot_dimension_numbers<[1], [0], [0], [1], [0, 0, 1, 1], [], []>} : vector<16x32xf32>, vector<32x32xf32>, vector<16x32xf32> -> vector<16x32xf32>
    %150 = arith.addf %145, %149 : vector<16x32xf32>
    %c4_161 = arith.constant 4 : index
    %c0_162 = arith.constant 0 : index
    %c0_163 = arith.constant 0 : index
    %151 = vector.load %arg6[%c4_161, %c0_162, %c0_163] : memref<5x1x32xf32, #tpu.memory_space<vmem>>, vector<1x1x32xf32>
    %152 = vector.shape_cast %151 : vector<1x1x32xf32> to vector<1x32xf32>
    %153 = vector.broadcast %152 : vector<1x32xf32> to vector<16x32xf32>
    %154 = arith.addf %150, %153 : vector<16x32xf32>
    %c4_164 = arith.constant 4 : index
    %c0_165 = arith.constant 0 : index
    %c0_166 = arith.constant 0 : index
    %155 = vector.load %arg7[%c4_164, %c0_165, %c0_166] : memref<5x32x32xf32, #tpu.memory_space<vmem>>, vector<1x32x32xf32>
    %156 = vector.shape_cast %155 : vector<1x32x32xf32> to vector<32x32xf32>
    %cst_167 = arith.constant dense<0.000000e+00> : vector<16x32xf32>
    %157 = tpu.matmul %154, %156, %cst_167 {dimension_numbers = #tpu.dot_dimension_numbers<[1], [0], [0], [1], [0, 0, 1, 1], [], []>} : vector<16x32xf32>, vector<32x32xf32>, vector<16x32xf32> -> vector<16x32xf32>
    %c4_168 = arith.constant 4 : index
    %c0_169 = arith.constant 0 : index
    %c0_170 = arith.constant 0 : index
    %158 = vector.load %arg8[%c4_168, %c0_169, %c0_170] : memref<5x1x32xf32, #tpu.memory_space<vmem>>, vector<1x1x32xf32>
    %159 = vector.shape_cast %158 : vector<1x1x32xf32> to vector<1x32xf32>
    %160 = vector.broadcast %159 : vector<1x32xf32> to vector<16x32xf32>
    %161 = arith.addf %157, %160 : vector<16x32xf32>
    %162 = arith.addf %136, %161 : vector<16x32xf32>
    %cst_171 = arith.constant 0.000000e+00 : f32
    %163 = vector.broadcast %cst_171 : f32 to vector<16x32xf32>
    %164 = arith.cmpf ogt, %162, %163 : vector<16x32xf32>
    %cst_172 = arith.constant 2.000000e-01 : f32
    %165 = vector.broadcast %cst_172 : f32 to vector<16x32xf32>
    %166 = arith.mulf %165, %162 : vector<16x32xf32>
    %167 = arith.select %164, %162, %166 : vector<16x32xi1>, vector<16x32xf32>
    %c27_173 = arith.constant 27 : index
    %c0_174 = arith.constant 0 : index
    %168 = vector.load %arg13[%c27_173, %c0_174] : memref<70x32xf32, #tpu.memory_space<vmem>>, vector<16x32xf32>
    tpu.vector_store %arg13[%c27_173, %c0_174], %167 {strides = array<i32>} : memref<70x32xf32, #tpu.memory_space<vmem>>, vector<16x32xf32>,
    %c27_175 = arith.constant 27 : index
    %c0_176 = arith.constant 0 : index
    %169 = vector.load %arg13[%c27_175, %c0_176] : memref<70x32xf32, #tpu.memory_space<vmem>>, vector<16x32xf32>
    %170 = vector.shape_cast %169 : vector<16x32xf32> to vector<1x16x32xf32>
    %cst_177 = arith.constant dense<0.000000e+00> : vector<1xf32>
    %171 = vector.multi_reduction <add>, %170, %cst_177 [1, 2] : vector<1x16x32xf32> to vector<1xf32>
    %172 = vector.shape_cast %171 : vector<1xf32> to vector<1x1x1xf32>
    %173 = vector.extract %172[0, 0, 0] : f32 from vector<1x1x1xf32>
    %cst_178 = arith.constant 5.120000e+02 : f32
    %174 = arith.divf %173, %cst_178 : f32
    %175 = vector.broadcast %174 : f32 to vector<16x32xf32>
    %176 = arith.subf %169, %175 : vector<16x32xf32>
    %177 = arith.mulf %176, %176 : vector<16x32xf32>
    %178 = vector.shape_cast %177 : vector<16x32xf32> to vector<1x16x32xf32>
    %cst_179 = arith.constant dense<0.000000e+00> : vector<1xf32>
    %179 = vector.multi_reduction <add>, %178, %cst_179 [1, 2] : vector<1x16x32xf32> to vector<1xf32>
    %180 = vector.shape_cast %179 : vector<1xf32> to vector<1x1x1xf32>
    %181 = vector.extract %180[0, 0, 0] : f32 from vector<1x1x1xf32>
    %cst_180 = arith.constant 5.110000e+02 : f32
    %182 = arith.divf %181, %cst_180 : f32
    %183 = vector.broadcast %174 : f32 to vector<16x32xf32>
    %184 = arith.subf %169, %183 : vector<16x32xf32>
    %185 = math.sqrt %182 : f32
    %cst_181 = arith.constant 9.99999993E-9 : f32
    %186 = arith.addf %185, %cst_181 : f32
    %187 = vector.broadcast %186 : f32 to vector<16x32xf32>
    %188 = arith.divf %184, %187 : vector<16x32xf32>
    %c0_182 = arith.constant 0 : index
    %c0_183 = arith.constant 0 : index
    %189 = vector.load %arg9[%c0_182, %c0_183] : memref<32x1xf32, #tpu.memory_space<vmem>>, vector<32x1xf32>
    %cst_184 = arith.constant dense<0.000000e+00> : vector<16x1xf32>
    %190 = tpu.matmul %188, %189, %cst_184 {dimension_numbers = #tpu.dot_dimension_numbers<[1], [0], [0], [1], [0, 0, 1, 1], [], []>} : vector<16x32xf32>, vector<32x1xf32>, vector<16x1xf32> -> vector<16x1xf32>
    %c0_185 = arith.constant 0 : index
    %c0_186 = arith.constant 0 : index
    %191 = vector.load %arg10[%c0_185, %c0_186] : memref<1x1xf32, #tpu.memory_space<vmem>>, vector<1x1xf32>
    %192 = vector.broadcast %191 : vector<1x1xf32> to vector<16x1xf32>
    %193 = arith.addf %190, %192 : vector<16x1xf32>
    %cst_187 = arith.constant dense<0xFF800000> : vector<1xf32>
    %194 = vector.multi_reduction <maximumf>, %193, %cst_187 [0] : vector<16x1xf32> to vector<1xf32>
    %195 = vector.shape_cast %194 : vector<1xf32> to vector<1x1xf32>
    %196 = vector.broadcast %195 : vector<1x1xf32> to vector<16x1xf32>
    %197 = arith.subf %193, %196 : vector<16x1xf32>
    %198 = math.exp %197 : vector<16x1xf32>
    %cst_188 = arith.constant dense<0.000000e+00> : vector<1xf32>
    %199 = vector.multi_reduction <add>, %198, %cst_188 [0] : vector<16x1xf32> to vector<1xf32>
    %200 = vector.shape_cast %199 : vector<1xf32> to vector<1x1xf32>
    %201 = vector.broadcast %200 : vector<1x1xf32> to vector<16x1xf32>
    %202 = arith.divf %198, %201 : vector<16x1xf32>
    %c0_189 = arith.constant 0 : index
    %c0_190 = arith.constant 0 : index
    %c0_191 = arith.constant 0 : index
    %203 = vector.load %arg12[%c0_189, %c0_190, %c0_191] : memref<1x16x1xf32, #tpu.memory_space<vmem>>, vector<1x16x1xf32>
    %204 = vector.shape_cast %203 : vector<1x16x1xf32> to vector<16x1xf32>
    %205 = vector.shape_cast %202 : vector<16x1xf32> to vector<1x16x1xf32>
    tpu.vector_store %arg12[%c0_189, %c0_190, %c0_191], %205 {strides = array<i32>} : memref<1x16x1xf32, #tpu.memory_space<vmem>>, vector<1x16x1xf32>,
    %206 = vector.broadcast %202 : vector<16x1xf32> to vector<16x32xf32>
    %207 = arith.mulf %188, %206 : vector<16x32xf32>
    %c0_192 = arith.constant 0 : index
    %c0_193 = arith.constant 0 : index
    %c0_194 = arith.constant 0 : index
    %208 = vector.load %arg11[%c0_192, %c0_193, %c0_194] : memref<1x16x32xf32, #tpu.memory_space<vmem>>, vector<1x16x32xf32>
    %209 = vector.shape_cast %208 : vector<1x16x32xf32> to vector<16x32xf32>
    %210 = vector.shape_cast %207 : vector<16x32xf32> to vector<1x16x32xf32>
    tpu.vector_store %arg11[%c0_192, %c0_193, %c0_194], %210 {strides = array<i32>} : memref<1x16x32xf32, #tpu.memory_space<vmem>>, vector<1x16x32xf32>,
    return
  }
  func.func @transform_0(%arg0: i32) -> (i32, i32, i32) {
    %c0_i32 = arith.constant 0 : i32
    %c0_i32_0 = arith.constant 0 : i32
    %c0_i32_1 = arith.constant 0 : i32
    return %arg0, %c0_i32, %c0_i32_0 : i32, i32, i32
  }
  func.func @transform_1(%arg0: i32) -> (i32, i32) {
    %c0_i32 = arith.constant 0 : i32
    %c0_i32_0 = arith.constant 0 : i32
    %c0_i32_1 = arith.constant 0 : i32
    return %c0_i32, %c0_i32_0 : i32, i32
  }
  func.func @transform_2(%arg0: i32) -> (i32, i32) {
    %c0_i32 = arith.constant 0 : i32
    %c0_i32_0 = arith.constant 0 : i32
    %c0_i32_1 = arith.constant 0 : i32
    return %c0_i32, %c0_i32_0 : i32, i32
  }
  func.func @transform_3(%arg0: i32) -> (i32, i32) {
    %c0_i32 = arith.constant 0 : i32
    %c0_i32_0 = arith.constant 0 : i32
    %c0_i32_1 = arith.constant 0 : i32
    return %c0_i32, %c0_i32_0 : i32, i32
  }
  func.func @transform_4(%arg0: i32) -> (i32, i32, i32, i32) {
    %c0_i32 = arith.constant 0 : i32
    %c0_i32_0 = arith.constant 0 : i32
    %c0_i32_1 = arith.constant 0 : i32
    %c0_i32_2 = arith.constant 0 : i32
    %c0_i32_3 = arith.constant 0 : i32
    return %c0_i32, %c0_i32_0, %c0_i32_1, %c0_i32_2 : i32, i32, i32, i32
  }
  func.func @transform_5(%arg0: i32) -> (i32, i32, i32) {
    %c0_i32 = arith.constant 0 : i32
    %c0_i32_0 = arith.constant 0 : i32
    %c0_i32_1 = arith.constant 0 : i32
    %c0_i32_2 = arith.constant 0 : i32
    return %c0_i32, %c0_i32_0, %c0_i32_1 : i32, i32, i32
  }
  func.func @transform_6(%arg0: i32) -> (i32, i32, i32) {
    %c0_i32 = arith.constant 0 : i32
    %c0_i32_0 = arith.constant 0 : i32
    %c0_i32_1 = arith.constant 0 : i32
    %c0_i32_2 = arith.constant 0 : i32
    return %c0_i32, %c0_i32_0, %c0_i32_1 : i32, i32, i32
  }
  func.func @transform_7(%arg0: i32) -> (i32, i32, i32) {
    %c0_i32 = arith.constant 0 : i32
    %c0_i32_0 = arith.constant 0 : i32
    %c0_i32_1 = arith.constant 0 : i32
    %c0_i32_2 = arith.constant 0 : i32
    return %c0_i32, %c0_i32_0, %c0_i32_1 : i32, i32, i32
  }
  func.func @transform_8(%arg0: i32) -> (i32, i32) {
    %c0_i32 = arith.constant 0 : i32
    %c0_i32_0 = arith.constant 0 : i32
    %c0_i32_1 = arith.constant 0 : i32
    return %c0_i32, %c0_i32_0 : i32, i32
  }
  func.func @transform_9(%arg0: i32) -> (i32, i32) {
    %c0_i32 = arith.constant 0 : i32
    %c0_i32_0 = arith.constant 0 : i32
    %c0_i32_1 = arith.constant 0 : i32
    return %c0_i32, %c0_i32_0 : i32, i32
  }
  func.func @transform_10(%arg0: i32) -> (i32, i32, i32) {
    %c0_i32 = arith.constant 0 : i32
    %c0_i32_0 = arith.constant 0 : i32
    %c0_i32_1 = arith.constant 0 : i32
    return %arg0, %c0_i32, %c0_i32_0 : i32, i32, i32
  }
  func.func @transform_11(%arg0: i32) -> (i32, i32, i32) {
    %c0_i32 = arith.constant 0 : i32
    %c0_i32_0 = arith.constant 0 : i32
    %c0_i32_1 = arith.constant 0 : i32
    return %arg0, %c0_i32, %c0_i32_0 : i32, i32, i32
  }
}

module attributes {stable_mosaic.version = 11 : i64} {
  func.func @_event_head_kernel(%arg0: i32, %arg1: memref<1x1x32xf32, #tpu.memory_space<vmem>>, %arg2: memref<32x32xf32, #tpu.memory_space<vmem>>, %arg3: memref<1x32xf32, #tpu.memory_space<vmem>>, %arg4: memref<32x32xf32, #tpu.memory_space<vmem>>, %arg5: memref<1x32xf32, #tpu.memory_space<vmem>>, %arg6: memref<4x32x32xf32, #tpu.memory_space<vmem>>, %arg7: memref<4x32xf32, #tpu.memory_space<vmem>>, %arg8: memref<2x3x32x32xf32, #tpu.memory_space<vmem>>, %arg9: memref<2x1x32xf32, #tpu.memory_space<vmem>>, %arg10: memref<3x8x4xf32, #tpu.memory_space<vmem>>, %arg11: memref<3x16x8xf32, #tpu.memory_space<vmem>>, %arg12: memref<3x16x16xf32, #tpu.memory_space<vmem>>, %arg13: memref<3x32x1xf32, #tpu.memory_space<vmem>>, %arg14: memref<1x1xf32, #tpu.memory_space<vmem>>, %arg15: memref<1x1x32xf32, #tpu.memory_space<vmem>>, %arg16: memref<1x16x1xf32, #tpu.memory_space<vmem>>) attributes {dimension_semantics = [#tpu.dimension_semantics<parallel>], iteration_bounds = array<i64: 8>, scalar_prefetch = 0 : i64, scratch_operands = 0 : i64, tpu.core_type = #tpu.core_type<tc>, window_params = [{transform_indices = @transform_0, window_bounds = array<i64: 1, 1, 32>}, {pipeline_mode = #tpu.pipeline_mode<synchronous>, transform_indices = @transform_1, window_bounds = array<i64: 32, 32>}, {pipeline_mode = #tpu.pipeline_mode<synchronous>, transform_indices = @transform_2, window_bounds = array<i64: 1, 32>}, {pipeline_mode = #tpu.pipeline_mode<synchronous>, transform_indices = @transform_3, window_bounds = array<i64: 32, 32>}, {pipeline_mode = #tpu.pipeline_mode<synchronous>, transform_indices = @transform_4, window_bounds = array<i64: 1, 32>}, {pipeline_mode = #tpu.pipeline_mode<synchronous>, transform_indices = @transform_5, window_bounds = array<i64: 4, 32, 32>}, {pipeline_mode = #tpu.pipeline_mode<synchronous>, transform_indices = @transform_6, window_bounds = array<i64: 4, 32>}, {pipeline_mode = #tpu.pipeline_mode<synchronous>, transform_indices = @transform_7, window_bounds = array<i64: 2, 3, 32, 32>}, {pipeline_mode = #tpu.pipeline_mode<synchronous>, transform_indices = @transform_8, window_bounds = array<i64: 2, 1, 32>}, {pipeline_mode = #tpu.pipeline_mode<synchronous>, transform_indices = @transform_9, window_bounds = array<i64: 3, 8, 4>}, {pipeline_mode = #tpu.pipeline_mode<synchronous>, transform_indices = @transform_10, window_bounds = array<i64: 3, 16, 8>}, {pipeline_mode = #tpu.pipeline_mode<synchronous>, transform_indices = @transform_11, window_bounds = array<i64: 3, 16, 16>}, {pipeline_mode = #tpu.pipeline_mode<synchronous>, transform_indices = @transform_12, window_bounds = array<i64: 3, 32, 1>}, {pipeline_mode = #tpu.pipeline_mode<synchronous>, transform_indices = @transform_13, window_bounds = array<i64: 1, 1>}, {transform_indices = @transform_14, window_bounds = array<i64: 1, 1, 32>}, {transform_indices = @transform_15, window_bounds = array<i64: 1, 16, 1>}]} {
    %c0 = arith.constant 0 : index
    %c0_0 = arith.constant 0 : index
    %c0_1 = arith.constant 0 : index
    %0 = vector.load %arg1[%c0, %c0_0, %c0_1] : memref<1x1x32xf32, #tpu.memory_space<vmem>>, vector<1x1x32xf32>
    %1 = vector.shape_cast %0 : vector<1x1x32xf32> to vector<1x32xf32>
    %c0_2 = arith.constant 0 : index
    %c0_3 = arith.constant 0 : index
    %2 = vector.load %arg2[%c0_2, %c0_3] : memref<32x32xf32, #tpu.memory_space<vmem>>, vector<32x32xf32>
    %cst = arith.constant dense<0.000000e+00> : vector<1x32xf32>
    %3 = tpu.matmul %1, %2, %cst {dimension_numbers = #tpu.dot_dimension_numbers<[1], [0], [0], [1], [0, 0, 1, 1], [], []>} : vector<1x32xf32>, vector<32x32xf32>, vector<1x32xf32> -> vector<1x32xf32>
    %c0_4 = arith.constant 0 : index
    %c0_5 = arith.constant 0 : index
    %4 = vector.load %arg3[%c0_4, %c0_5] : memref<1x32xf32, #tpu.memory_space<vmem>>, vector<1x32xf32>
    %5 = arith.addf %3, %4 : vector<1x32xf32>
    %cst_6 = arith.constant 0.000000e+00 : f32
    %6 = vector.broadcast %cst_6 : f32 to vector<1x32xf32>
    %7 = arith.cmpf ogt, %5, %6 : vector<1x32xf32>
    %cst_7 = arith.constant 2.000000e-01 : f32
    %8 = vector.broadcast %cst_7 : f32 to vector<1x32xf32>
    %9 = arith.mulf %8, %5 : vector<1x32xf32>
    %10 = arith.select %7, %5, %9 : vector<1x32xi1>, vector<1x32xf32>
    %c0_8 = arith.constant 0 : index
    %c0_9 = arith.constant 0 : index
    %11 = vector.load %arg4[%c0_8, %c0_9] : memref<32x32xf32, #tpu.memory_space<vmem>>, vector<32x32xf32>
    %cst_10 = arith.constant dense<0.000000e+00> : vector<1x32xf32>
    %12 = tpu.matmul %10, %11, %cst_10 {dimension_numbers = #tpu.dot_dimension_numbers<[1], [0], [0], [1], [0, 0, 1, 1], [], []>} : vector<1x32xf32>, vector<32x32xf32>, vector<1x32xf32> -> vector<1x32xf32>
    %c0_11 = arith.constant 0 : index
    %c0_12 = arith.constant 0 : index
    %13 = vector.load %arg5[%c0_11, %c0_12] : memref<1x32xf32, #tpu.memory_space<vmem>>, vector<1x32xf32>
    %14 = arith.addf %12, %13 : vector<1x32xf32>
    %c0_13 = arith.constant 0 : index
    %c0_14 = arith.constant 0 : index
    %c0_15 = arith.constant 0 : index
    %15 = vector.load %arg15[%c0_13, %c0_14, %c0_15] : memref<1x1x32xf32, #tpu.memory_space<vmem>>, vector<1x1x32xf32>
    %16 = vector.shape_cast %15 : vector<1x1x32xf32> to vector<1x32xf32>
    %17 = vector.shape_cast %14 : vector<1x32xf32> to vector<1x1x32xf32>
    tpu.vector_store %arg15[%c0_13, %c0_14, %c0_15], %17 {strides = array<i32>} : memref<1x1x32xf32, #tpu.memory_space<vmem>>, vector<1x1x32xf32>,
    %c0_16 = arith.constant 0 : index
    %c0_17 = arith.constant 0 : index
    %c0_18 = arith.constant 0 : index
    %18 = vector.load %arg6[%c0_16, %c0_17, %c0_18] : memref<4x32x32xf32, #tpu.memory_space<vmem>>, vector<1x32x32xf32>
    %19 = vector.shape_cast %18 : vector<1x32x32xf32> to vector<32x32xf32>
    %cst_19 = arith.constant dense<0.000000e+00> : vector<1x32xf32>
    %20 = tpu.matmul %14, %19, %cst_19 {dimension_numbers = #tpu.dot_dimension_numbers<[1], [0], [0], [1], [0, 0, 1, 1], [], []>} : vector<1x32xf32>, vector<32x32xf32>, vector<1x32xf32> -> vector<1x32xf32>
    %c1 = arith.constant 1 : index
    %c0_20 = arith.constant 0 : index
    %c0_21 = arith.constant 0 : index
    %21 = vector.load %arg6[%c1, %c0_20, %c0_21] : memref<4x32x32xf32, #tpu.memory_space<vmem>>, vector<1x32x32xf32>
    %22 = vector.shape_cast %21 : vector<1x32x32xf32> to vector<32x32xf32>
    %cst_22 = arith.constant dense<0.000000e+00> : vector<1x32xf32>
    %23 = tpu.matmul %14, %22, %cst_22 {dimension_numbers = #tpu.dot_dimension_numbers<[1], [0], [0], [1], [0, 0, 1, 1], [], []>} : vector<1x32xf32>, vector<32x32xf32>, vector<1x32xf32> -> vector<1x32xf32>
    %c2 = arith.constant 2 : index
    %c0_23 = arith.constant 0 : index
    %c0_24 = arith.constant 0 : index
    %24 = vector.load %arg6[%c2, %c0_23, %c0_24] : memref<4x32x32xf32, #tpu.memory_space<vmem>>, vector<1x32x32xf32>
    %25 = vector.shape_cast %24 : vector<1x32x32xf32> to vector<32x32xf32>
    %cst_25 = arith.constant dense<0.000000e+00> : vector<1x32xf32>
    %26 = tpu.matmul %14, %25, %cst_25 {dimension_numbers = #tpu.dot_dimension_numbers<[1], [0], [0], [1], [0, 0, 1, 1], [], []>} : vector<1x32xf32>, vector<32x32xf32>, vector<1x32xf32> -> vector<1x32xf32>
    %c3 = arith.constant 3 : index
    %c0_26 = arith.constant 0 : index
    %c0_27 = arith.constant 0 : index
    %27 = vector.load %arg6[%c3, %c0_26, %c0_27] : memref<4x32x32xf32, #tpu.memory_space<vmem>>, vector<1x32x32xf32>
    %28 = vector.shape_cast %27 : vector<1x32x32xf32> to vector<32x32xf32>
    %cst_28 = arith.constant dense<0.000000e+00> : vector<1x32xf32>
    %29 = tpu.matmul %14, %28, %cst_28 {dimension_numbers = #tpu.dot_dimension_numbers<[1], [0], [0], [1], [0, 0, 1, 1], [], []>} : vector<1x32xf32>, vector<32x32xf32>, vector<1x32xf32> -> vector<1x32xf32>
    %30 = tpu.concatenate %20, %23, %26, %29 in 0 : vector<1x32xf32>, vector<1x32xf32>, vector<1x32xf32>, vector<1x32xf32> -> vector<4x32xf32>
    %c0_29 = arith.constant 0 : index
    %c0_30 = arith.constant 0 : index
    %31 = vector.load %arg7[%c0_29, %c0_30] : memref<4x32xf32, #tpu.memory_space<vmem>>, vector<4x32xf32>
    %32 = arith.addf %30, %31 : vector<4x32xf32>
    %c0_31 = arith.constant 0 : index
    %c0_32 = arith.constant 0 : index
    %c0_33 = arith.constant 0 : index
    %33 = vector.load %arg10[%c0_31, %c0_32, %c0_33] : memref<3x8x4xf32, #tpu.memory_space<vmem>>, vector<1x8x4xf32>
    %34 = vector.shape_cast %33 : vector<1x8x4xf32> to vector<8x4xf32>
    %cst_34 = arith.constant dense<0.000000e+00> : vector<8x32xf32>
    %35 = tpu.matmul %34, %32, %cst_34 {dimension_numbers = #tpu.dot_dimension_numbers<[1], [0], [0], [1], [0, 0, 1, 1], [], []>} : vector<8x4xf32>, vector<4x32xf32>, vector<8x32xf32> -> vector<8x32xf32>
    %c0_35 = arith.constant 0 : index
    %c0_36 = arith.constant 0 : index
    %c0_37 = arith.constant 0 : index
    %c0_38 = arith.constant 0 : index
    %36 = vector.load %arg8[%c0_35, %c0_36, %c0_37, %c0_38] : memref<2x3x32x32xf32, #tpu.memory_space<vmem>>, vector<1x1x32x32xf32>
    %37 = vector.shape_cast %36 : vector<1x1x32x32xf32> to vector<32x32xf32>
    %cst_39 = arith.constant dense<0.000000e+00> : vector<8x32xf32>
    %38 = tpu.matmul %35, %37, %cst_39 {dimension_numbers = #tpu.dot_dimension_numbers<[1], [0], [0], [1], [0, 0, 1, 1], [], []>} : vector<8x32xf32>, vector<32x32xf32>, vector<8x32xf32> -> vector<8x32xf32>
    %c1_40 = arith.constant 1 : index
    %c0_41 = arith.constant 0 : index
    %c0_42 = arith.constant 0 : index
    %39 = vector.load %arg10[%c1_40, %c0_41, %c0_42] : memref<3x8x4xf32, #tpu.memory_space<vmem>>, vector<1x8x4xf32>
    %40 = vector.shape_cast %39 : vector<1x8x4xf32> to vector<8x4xf32>
    %cst_43 = arith.constant dense<0.000000e+00> : vector<8x32xf32>
    %41 = tpu.matmul %40, %32, %cst_43 {dimension_numbers = #tpu.dot_dimension_numbers<[1], [0], [0], [1], [0, 0, 1, 1], [], []>} : vector<8x4xf32>, vector<4x32xf32>, vector<8x32xf32> -> vector<8x32xf32>
    %c0_44 = arith.constant 0 : index
    %c1_45 = arith.constant 1 : index
    %c0_46 = arith.constant 0 : index
    %c0_47 = arith.constant 0 : index
    %42 = vector.load %arg8[%c0_44, %c1_45, %c0_46, %c0_47] : memref<2x3x32x32xf32, #tpu.memory_space<vmem>>, vector<1x1x32x32xf32>
    %43 = vector.shape_cast %42 : vector<1x1x32x32xf32> to vector<32x32xf32>
    %cst_48 = arith.constant dense<0.000000e+00> : vector<8x32xf32>
    %44 = tpu.matmul %41, %43, %cst_48 {dimension_numbers = #tpu.dot_dimension_numbers<[1], [0], [0], [1], [0, 0, 1, 1], [], []>} : vector<8x32xf32>, vector<32x32xf32>, vector<8x32xf32> -> vector<8x32xf32>
    %45 = arith.addf %38, %44 : vector<8x32xf32>
    %c2_49 = arith.constant 2 : index
    %c0_50 = arith.constant 0 : index
    %c0_51 = arith.constant 0 : index
    %46 = vector.load %arg10[%c2_49, %c0_50, %c0_51] : memref<3x8x4xf32, #tpu.memory_space<vmem>>, vector<1x8x4xf32>
    %47 = vector.shape_cast %46 : vector<1x8x4xf32> to vector<8x4xf32>
    %cst_52 = arith.constant dense<0.000000e+00> : vector<8x32xf32>
    %48 = tpu.matmul %47, %32, %cst_52 {dimension_numbers = #tpu.dot_dimension_numbers<[1], [0], [0], [1], [0, 0, 1, 1], [], []>} : vector<8x4xf32>, vector<4x32xf32>, vector<8x32xf32> -> vector<8x32xf32>
    %c0_53 = arith.constant 0 : index
    %c2_54 = arith.constant 2 : index
    %c0_55 = arith.constant 0 : index
    %c0_56 = arith.constant 0 : index
    %49 = vector.load %arg8[%c0_53, %c2_54, %c0_55, %c0_56] : memref<2x3x32x32xf32, #tpu.memory_space<vmem>>, vector<1x1x32x32xf32>
    %50 = vector.shape_cast %49 : vector<1x1x32x32xf32> to vector<32x32xf32>
    %cst_57 = arith.constant dense<0.000000e+00> : vector<8x32xf32>
    %51 = tpu.matmul %48, %50, %cst_57 {dimension_numbers = #tpu.dot_dimension_numbers<[1], [0], [0], [1], [0, 0, 1, 1], [], []>} : vector<8x32xf32>, vector<32x32xf32>, vector<8x32xf32> -> vector<8x32xf32>
    %52 = arith.addf %45, %51 : vector<8x32xf32>
    %c0_58 = arith.constant 0 : index
    %c0_59 = arith.constant 0 : index
    %c0_60 = arith.constant 0 : index
    %53 = vector.load %arg9[%c0_58, %c0_59, %c0_60] : memref<2x1x32xf32, #tpu.memory_space<vmem>>, vector<1x1x32xf32>
    %54 = vector.shape_cast %53 : vector<1x1x32xf32> to vector<1x32xf32>
    %55 = vector.broadcast %54 : vector<1x32xf32> to vector<8x32xf32>
    %56 = arith.addf %52, %55 : vector<8x32xf32>
    %cst_61 = arith.constant 0.000000e+00 : f32
    %57 = vector.broadcast %cst_61 : f32 to vector<8x32xf32>
    %58 = arith.cmpf ogt, %56, %57 : vector<8x32xf32>
    %cst_62 = arith.constant 2.000000e-01 : f32
    %59 = vector.broadcast %cst_62 : f32 to vector<8x32xf32>
    %60 = arith.mulf %59, %56 : vector<8x32xf32>
    %61 = arith.select %58, %56, %60 : vector<8x32xi1>, vector<8x32xf32>
    %c0_63 = arith.constant 0 : index
    %c0_64 = arith.constant 0 : index
    %c0_65 = arith.constant 0 : index
    %62 = vector.load %arg11[%c0_63, %c0_64, %c0_65] : memref<3x16x8xf32, #tpu.memory_space<vmem>>, vector<1x16x8xf32>
    %63 = vector.shape_cast %62 : vector<1x16x8xf32> to vector<16x8xf32>
    %cst_66 = arith.constant dense<0.000000e+00> : vector<16x32xf32>
    %64 = tpu.matmul %63, %61, %cst_66 {dimension_numbers = #tpu.dot_dimension_numbers<[1], [0], [0], [1], [0, 0, 1, 1], [], []>} : vector<16x8xf32>, vector<8x32xf32>, vector<16x32xf32> -> vector<16x32xf32>
    %c1_67 = arith.constant 1 : index
    %c0_68 = arith.constant 0 : index
    %c0_69 = arith.constant 0 : index
    %c0_70 = arith.constant 0 : index
    %65 = vector.load %arg8[%c1_67, %c0_68, %c0_69, %c0_70] : memref<2x3x32x32xf32, #tpu.memory_space<vmem>>, vector<1x1x32x32xf32>
    %66 = vector.shape_cast %65 : vector<1x1x32x32xf32> to vector<32x32xf32>
    %cst_71 = arith.constant dense<0.000000e+00> : vector<16x32xf32>
    %67 = tpu.matmul %64, %66, %cst_71 {dimension_numbers = #tpu.dot_dimension_numbers<[1], [0], [0], [1], [0, 0, 1, 1], [], []>} : vector<16x32xf32>, vector<32x32xf32>, vector<16x32xf32> -> vector<16x32xf32>
    %c1_72 = arith.constant 1 : index
    %c0_73 = arith.constant 0 : index
    %c0_74 = arith.constant 0 : index
    %68 = vector.load %arg11[%c1_72, %c0_73, %c0_74] : memref<3x16x8xf32, #tpu.memory_space<vmem>>, vector<1x16x8xf32>
    %69 = vector.shape_cast %68 : vector<1x16x8xf32> to vector<16x8xf32>
    %cst_75 = arith.constant dense<0.000000e+00> : vector<16x32xf32>
    %70 = tpu.matmul %69, %61, %cst_75 {dimension_numbers = #tpu.dot_dimension_numbers<[1], [0], [0], [1], [0, 0, 1, 1], [], []>} : vector<16x8xf32>, vector<8x32xf32>, vector<16x32xf32> -> vector<16x32xf32>
    %c1_76 = arith.constant 1 : index
    %c1_77 = arith.constant 1 : index
    %c0_78 = arith.constant 0 : index
    %c0_79 = arith.constant 0 : index
    %71 = vector.load %arg8[%c1_76, %c1_77, %c0_78, %c0_79] : memref<2x3x32x32xf32, #tpu.memory_space<vmem>>, vector<1x1x32x32xf32>
    %72 = vector.shape_cast %71 : vector<1x1x32x32xf32> to vector<32x32xf32>
    %cst_80 = arith.constant dense<0.000000e+00> : vector<16x32xf32>
    %73 = tpu.matmul %70, %72, %cst_80 {dimension_numbers = #tpu.dot_dimension_numbers<[1], [0], [0], [1], [0, 0, 1, 1], [], []>} : vector<16x32xf32>, vector<32x32xf32>, vector<16x32xf32> -> vector<16x32xf32>
    %74 = arith.addf %67, %73 : vector<16x32xf32>
    %c2_81 = arith.constant 2 : index
    %c0_82 = arith.constant 0 : index
    %c0_83 = arith.constant 0 : index
    %75 = vector.load %arg11[%c2_81, %c0_82, %c0_83] : memref<3x16x8xf32, #tpu.memory_space<vmem>>, vector<1x16x8xf32>
    %76 = vector.shape_cast %75 : vector<1x16x8xf32> to vector<16x8xf32>
    %cst_84 = arith.constant dense<0.000000e+00> : vector<16x32xf32>
    %77 = tpu.matmul %76, %61, %cst_84 {dimension_numbers = #tpu.dot_dimension_numbers<[1], [0], [0], [1], [0, 0, 1, 1], [], []>} : vector<16x8xf32>, vector<8x32xf32>, vector<16x32xf32> -> vector<16x32xf32>
    %c1_85 = arith.constant 1 : index
    %c2_86 = arith.constant 2 : index
    %c0_87 = arith.constant 0 : index
    %c0_88 = arith.constant 0 : index
    %78 = vector.load %arg8[%c1_85, %c2_86, %c0_87, %c0_88] : memref<2x3x32x32xf32, #tpu.memory_space<vmem>>, vector<1x1x32x32xf32>
    %79 = vector.shape_cast %78 : vector<1x1x32x32xf32> to vector<32x32xf32>
    %cst_89 = arith.constant dense<0.000000e+00> : vector<16x32xf32>
    %80 = tpu.matmul %77, %79, %cst_89 {dimension_numbers = #tpu.dot_dimension_numbers<[1], [0], [0], [1], [0, 0, 1, 1], [], []>} : vector<16x32xf32>, vector<32x32xf32>, vector<16x32xf32> -> vector<16x32xf32>
    %81 = arith.addf %74, %80 : vector<16x32xf32>
    %c1_90 = arith.constant 1 : index
    %c0_91 = arith.constant 0 : index
    %c0_92 = arith.constant 0 : index
    %82 = vector.load %arg9[%c1_90, %c0_91, %c0_92] : memref<2x1x32xf32, #tpu.memory_space<vmem>>, vector<1x1x32xf32>
    %83 = vector.shape_cast %82 : vector<1x1x32xf32> to vector<1x32xf32>
    %84 = vector.broadcast %83 : vector<1x32xf32> to vector<16x32xf32>
    %85 = arith.addf %81, %84 : vector<16x32xf32>
    %cst_93 = arith.constant 0.000000e+00 : f32
    %86 = vector.broadcast %cst_93 : f32 to vector<16x32xf32>
    %87 = arith.cmpf ogt, %85, %86 : vector<16x32xf32>
    %cst_94 = arith.constant 2.000000e-01 : f32
    %88 = vector.broadcast %cst_94 : f32 to vector<16x32xf32>
    %89 = arith.mulf %88, %85 : vector<16x32xf32>
    %90 = arith.select %87, %85, %89 : vector<16x32xi1>, vector<16x32xf32>
    %c0_95 = arith.constant 0 : index
    %c0_96 = arith.constant 0 : index
    %c0_97 = arith.constant 0 : index
    %91 = vector.load %arg12[%c0_95, %c0_96, %c0_97] : memref<3x16x16xf32, #tpu.memory_space<vmem>>, vector<1x16x16xf32>
    %92 = vector.shape_cast %91 : vector<1x16x16xf32> to vector<16x16xf32>
    %cst_98 = arith.constant dense<0.000000e+00> : vector<16x32xf32>
    %93 = tpu.matmul %92, %90, %cst_98 {dimension_numbers = #tpu.dot_dimension_numbers<[1], [0], [0], [1], [0, 0, 1, 1], [], []>} : vector<16x16xf32>, vector<16x32xf32>, vector<16x32xf32> -> vector<16x32xf32>
    %c0_99 = arith.constant 0 : index
    %c0_100 = arith.constant 0 : index
    %c0_101 = arith.constant 0 : index
    %94 = vector.load %arg13[%c0_99, %c0_100, %c0_101] : memref<3x32x1xf32, #tpu.memory_space<vmem>>, vector<1x32x1xf32>
    %95 = vector.shape_cast %94 : vector<1x32x1xf32> to vector<32x1xf32>
    %cst_102 = arith.constant dense<0.000000e+00> : vector<16x1xf32>
    %96 = tpu.matmul %93, %95, %cst_102 {dimension_numbers = #tpu.dot_dimension_numbers<[1], [0], [0], [1], [0, 0, 1, 1], [], []>} : vector<16x32xf32>, vector<32x1xf32>, vector<16x1xf32> -> vector<16x1xf32>
    %c1_103 = arith.constant 1 : index
    %c0_104 = arith.constant 0 : index
    %c0_105 = arith.constant 0 : index
    %97 = vector.load %arg12[%c1_103, %c0_104, %c0_105] : memref<3x16x16xf32, #tpu.memory_space<vmem>>, vector<1x16x16xf32>
    %98 = vector.shape_cast %97 : vector<1x16x16xf32> to vector<16x16xf32>
    %cst_106 = arith.constant dense<0.000000e+00> : vector<16x32xf32>
    %99 = tpu.matmul %98, %90, %cst_106 {dimension_numbers = #tpu.dot_dimension_numbers<[1], [0], [0], [1], [0, 0, 1, 1], [], []>} : vector<16x16xf32>, vector<16x32xf32>, vector<16x32xf32> -> vector<16x32xf32>
    %c1_107 = arith.constant 1 : index
    %c0_108 = arith.constant 0 : index
    %c0_109 = arith.constant 0 : index
    %100 = vector.load %arg13[%c1_107, %c0_108, %c0_109] : memref<3x32x1xf32, #tpu.memory_space<vmem>>, vector<1x32x1xf32>
    %101 = vector.shape_cast %100 : vector<1x32x1xf32> to vector<32x1xf32>
    %cst_110 = arith.constant dense<0.000000e+00> : vector<16x1xf32>
    %102 = tpu.matmul %99, %101, %cst_110 {dimension_numbers = #tpu.dot_dimension_numbers<[1], [0], [0], [1], [0, 0, 1, 1], [], []>} : vector<16x32xf32>, vector<32x1xf32>, vector<16x1xf32> -> vector<16x1xf32>
    %103 = arith.addf %96, %102 : vector<16x1xf32>
    %c2_111 = arith.constant 2 : index
    %c0_112 = arith.constant 0 : index
    %c0_113 = arith.constant 0 : index
    %104 = vector.load %arg12[%c2_111, %c0_112, %c0_113] : memref<3x16x16xf32, #tpu.memory_space<vmem>>, vector<1x16x16xf32>
    %105 = vector.shape_cast %104 : vector<1x16x16xf32> to vector<16x16xf32>
    %cst_114 = arith.constant dense<0.000000e+00> : vector<16x32xf32>
    %106 = tpu.matmul %105, %90, %cst_114 {dimension_numbers = #tpu.dot_dimension_numbers<[1], [0], [0], [1], [0, 0, 1, 1], [], []>} : vector<16x16xf32>, vector<16x32xf32>, vector<16x32xf32> -> vector<16x32xf32>
    %c2_115 = arith.constant 2 : index
    %c0_116 = arith.constant 0 : index
    %c0_117 = arith.constant 0 : index
    %107 = vector.load %arg13[%c2_115, %c0_116, %c0_117] : memref<3x32x1xf32, #tpu.memory_space<vmem>>, vector<1x32x1xf32>
    %108 = vector.shape_cast %107 : vector<1x32x1xf32> to vector<32x1xf32>
    %cst_118 = arith.constant dense<0.000000e+00> : vector<16x1xf32>
    %109 = tpu.matmul %106, %108, %cst_118 {dimension_numbers = #tpu.dot_dimension_numbers<[1], [0], [0], [1], [0, 0, 1, 1], [], []>} : vector<16x32xf32>, vector<32x1xf32>, vector<16x1xf32> -> vector<16x1xf32>
    %110 = arith.addf %103, %109 : vector<16x1xf32>
    %c0_119 = arith.constant 0 : index
    %c0_120 = arith.constant 0 : index
    %111 = vector.load %arg14[%c0_119, %c0_120] : memref<1x1xf32, #tpu.memory_space<vmem>>, vector<1x1xf32>
    %112 = vector.broadcast %111 : vector<1x1xf32> to vector<16x1xf32>
    %113 = arith.addf %110, %112 : vector<16x1xf32>
    %c0_121 = arith.constant 0 : index
    %c0_122 = arith.constant 0 : index
    %c0_123 = arith.constant 0 : index
    %114 = vector.load %arg16[%c0_121, %c0_122, %c0_123] : memref<1x16x1xf32, #tpu.memory_space<vmem>>, vector<1x16x1xf32>
    %115 = vector.shape_cast %114 : vector<1x16x1xf32> to vector<16x1xf32>
    %116 = vector.shape_cast %113 : vector<16x1xf32> to vector<1x16x1xf32>
    tpu.vector_store %arg16[%c0_121, %c0_122, %c0_123], %116 {strides = array<i32>} : memref<1x16x1xf32, #tpu.memory_space<vmem>>, vector<1x16x1xf32>,
    return
  }
  func.func @transform_0(%arg0: i32) -> (i32, i32, i32) {
    %c0_i32 = arith.constant 0 : i32
    %c0_i32_0 = arith.constant 0 : i32
    %c0_i32_1 = arith.constant 0 : i32
    return %arg0, %c0_i32, %c0_i32_0 : i32, i32, i32
  }
  func.func @transform_1(%arg0: i32) -> (i32, i32) {
    %c0_i32 = arith.constant 0 : i32
    %c0_i32_0 = arith.constant 0 : i32
    %c0_i32_1 = arith.constant 0 : i32
    return %c0_i32, %c0_i32_0 : i32, i32
  }
  func.func @transform_2(%arg0: i32) -> (i32, i32) {
    %c0_i32 = arith.constant 0 : i32
    %c0_i32_0 = arith.constant 0 : i32
    %c0_i32_1 = arith.constant 0 : i32
    return %c0_i32, %c0_i32_0 : i32, i32
  }
  func.func @transform_3(%arg0: i32) -> (i32, i32) {
    %c0_i32 = arith.constant 0 : i32
    %c0_i32_0 = arith.constant 0 : i32
    %c0_i32_1 = arith.constant 0 : i32
    return %c0_i32, %c0_i32_0 : i32, i32
  }
  func.func @transform_4(%arg0: i32) -> (i32, i32) {
    %c0_i32 = arith.constant 0 : i32
    %c0_i32_0 = arith.constant 0 : i32
    %c0_i32_1 = arith.constant 0 : i32
    return %c0_i32, %c0_i32_0 : i32, i32
  }
  func.func @transform_5(%arg0: i32) -> (i32, i32, i32) {
    %c0_i32 = arith.constant 0 : i32
    %c0_i32_0 = arith.constant 0 : i32
    %c0_i32_1 = arith.constant 0 : i32
    %c0_i32_2 = arith.constant 0 : i32
    return %c0_i32, %c0_i32_0, %c0_i32_1 : i32, i32, i32
  }
  func.func @transform_6(%arg0: i32) -> (i32, i32) {
    %c0_i32 = arith.constant 0 : i32
    %c0_i32_0 = arith.constant 0 : i32
    %c0_i32_1 = arith.constant 0 : i32
    return %c0_i32, %c0_i32_0 : i32, i32
  }
  func.func @transform_7(%arg0: i32) -> (i32, i32, i32, i32) {
    %c0_i32 = arith.constant 0 : i32
    %c0_i32_0 = arith.constant 0 : i32
    %c0_i32_1 = arith.constant 0 : i32
    %c0_i32_2 = arith.constant 0 : i32
    %c0_i32_3 = arith.constant 0 : i32
    return %c0_i32, %c0_i32_0, %c0_i32_1, %c0_i32_2 : i32, i32, i32, i32
  }
  func.func @transform_8(%arg0: i32) -> (i32, i32, i32) {
    %c0_i32 = arith.constant 0 : i32
    %c0_i32_0 = arith.constant 0 : i32
    %c0_i32_1 = arith.constant 0 : i32
    %c0_i32_2 = arith.constant 0 : i32
    return %c0_i32, %c0_i32_0, %c0_i32_1 : i32, i32, i32
  }
  func.func @transform_9(%arg0: i32) -> (i32, i32, i32) {
    %c0_i32 = arith.constant 0 : i32
    %c0_i32_0 = arith.constant 0 : i32
    %c0_i32_1 = arith.constant 0 : i32
    %c0_i32_2 = arith.constant 0 : i32
    return %c0_i32, %c0_i32_0, %c0_i32_1 : i32, i32, i32
  }
  func.func @transform_10(%arg0: i32) -> (i32, i32, i32) {
    %c0_i32 = arith.constant 0 : i32
    %c0_i32_0 = arith.constant 0 : i32
    %c0_i32_1 = arith.constant 0 : i32
    %c0_i32_2 = arith.constant 0 : i32
    return %c0_i32, %c0_i32_0, %c0_i32_1 : i32, i32, i32
  }
  func.func @transform_11(%arg0: i32) -> (i32, i32, i32) {
    %c0_i32 = arith.constant 0 : i32
    %c0_i32_0 = arith.constant 0 : i32
    %c0_i32_1 = arith.constant 0 : i32
    %c0_i32_2 = arith.constant 0 : i32
    return %c0_i32, %c0_i32_0, %c0_i32_1 : i32, i32, i32
  }
  func.func @transform_12(%arg0: i32) -> (i32, i32, i32) {
    %c0_i32 = arith.constant 0 : i32
    %c0_i32_0 = arith.constant 0 : i32
    %c0_i32_1 = arith.constant 0 : i32
    %c0_i32_2 = arith.constant 0 : i32
    return %c0_i32, %c0_i32_0, %c0_i32_1 : i32, i32, i32
  }
  func.func @transform_13(%arg0: i32) -> (i32, i32) {
    %c0_i32 = arith.constant 0 : i32
    %c0_i32_0 = arith.constant 0 : i32
    %c0_i32_1 = arith.constant 0 : i32
    return %c0_i32, %c0_i32_0 : i32, i32
  }
  func.func @transform_14(%arg0: i32) -> (i32, i32, i32) {
    %c0_i32 = arith.constant 0 : i32
    %c0_i32_0 = arith.constant 0 : i32
    %c0_i32_1 = arith.constant 0 : i32
    return %arg0, %c0_i32, %c0_i32_0 : i32, i32, i32
  }
  func.func @transform_15(%arg0: i32) -> (i32, i32, i32) {
    %c0_i32 = arith.constant 0 : i32
    %c0_i32_0 = arith.constant 0 : i32
    %c0_i32_1 = arith.constant 0 : i32
    return %arg0, %c0_i32, %c0_i32_0 : i32, i32, i32
  }
}

module attributes {stable_mosaic.version = 11 : i64} {
  func.func @_event_head_kernel(%arg0: i32, %arg1: memref<1x1x32xf32, #tpu.memory_space<vmem>>, %arg2: memref<32x32xf32, #tpu.memory_space<vmem>>, %arg3: memref<1x32xf32, #tpu.memory_space<vmem>>, %arg4: memref<32x32xf32, #tpu.memory_space<vmem>>, %arg5: memref<1x32xf32, #tpu.memory_space<vmem>>, %arg6: memref<4x32x32xf32, #tpu.memory_space<vmem>>, %arg7: memref<4x32xf32, #tpu.memory_space<vmem>>, %arg8: memref<2x3x32x32xf32, #tpu.memory_space<vmem>>, %arg9: memref<2x1x32xf32, #tpu.memory_space<vmem>>, %arg10: memref<3x8x4xf32, #tpu.memory_space<vmem>>, %arg11: memref<3x16x8xf32, #tpu.memory_space<vmem>>, %arg12: memref<3x16x16xf32, #tpu.memory_space<vmem>>, %arg13: memref<3x32x32xf32, #tpu.memory_space<vmem>>, %arg14: memref<1x32xf32, #tpu.memory_space<vmem>>, %arg15: memref<32x64xf32, #tpu.memory_space<vmem>>, %arg16: memref<1x64xf32, #tpu.memory_space<vmem>>, %arg17: memref<1x1x32xf32, #tpu.memory_space<vmem>>, %arg18: memref<1x16x64xf32, #tpu.memory_space<vmem>>) attributes {dimension_semantics = [#tpu.dimension_semantics<parallel>], iteration_bounds = array<i64: 8>, scalar_prefetch = 0 : i64, scratch_operands = 0 : i64, tpu.core_type = #tpu.core_type<tc>, window_params = [{transform_indices = @transform_0, window_bounds = array<i64: 1, 1, 32>}, {pipeline_mode = #tpu.pipeline_mode<synchronous>, transform_indices = @transform_1, window_bounds = array<i64: 32, 32>}, {pipeline_mode = #tpu.pipeline_mode<synchronous>, transform_indices = @transform_2, window_bounds = array<i64: 1, 32>}, {pipeline_mode = #tpu.pipeline_mode<synchronous>, transform_indices = @transform_3, window_bounds = array<i64: 32, 32>}, {pipeline_mode = #tpu.pipeline_mode<synchronous>, transform_indices = @transform_4, window_bounds = array<i64: 1, 32>}, {pipeline_mode = #tpu.pipeline_mode<synchronous>, transform_indices = @transform_5, window_bounds = array<i64: 4, 32, 32>}, {pipeline_mode = #tpu.pipeline_mode<synchronous>, transform_indices = @transform_6, window_bounds = array<i64: 4, 32>}, {pipeline_mode = #tpu.pipeline_mode<synchronous>, transform_indices = @transform_7, window_bounds = array<i64: 2, 3, 32, 32>}, {pipeline_mode = #tpu.pipeline_mode<synchronous>, transform_indices = @transform_8, window_bounds = array<i64: 2, 1, 32>}, {pipeline_mode = #tpu.pipeline_mode<synchronous>, transform_indices = @transform_9, window_bounds = array<i64: 3, 8, 4>}, {pipeline_mode = #tpu.pipeline_mode<synchronous>, transform_indices = @transform_10, window_bounds = array<i64: 3, 16, 8>}, {pipeline_mode = #tpu.pipeline_mode<synchronous>, transform_indices = @transform_11, window_bounds = array<i64: 3, 16, 16>}, {pipeline_mode = #tpu.pipeline_mode<synchronous>, transform_indices = @transform_12, window_bounds = array<i64: 3, 32, 32>}, {pipeline_mode = #tpu.pipeline_mode<synchronous>, transform_indices = @transform_13, window_bounds = array<i64: 1, 32>}, {pipeline_mode = #tpu.pipeline_mode<synchronous>, transform_indices = @transform_14, window_bounds = array<i64: 32, 64>}, {pipeline_mode = #tpu.pipeline_mode<synchronous>, transform_indices = @transform_15, window_bounds = array<i64: 1, 64>}, {transform_indices = @transform_16, window_bounds = array<i64: 1, 1, 32>}, {transform_indices = @transform_17, window_bounds = array<i64: 1, 16, 64>}]} {
    %c0 = arith.constant 0 : index
    %c0_0 = arith.constant 0 : index
    %c0_1 = arith.constant 0 : index
    %0 = vector.load %arg1[%c0, %c0_0, %c0_1] : memref<1x1x32xf32, #tpu.memory_space<vmem>>, vector<1x1x32xf32>
    %1 = vector.shape_cast %0 : vector<1x1x32xf32> to vector<1x32xf32>
    %c0_2 = arith.constant 0 : index
    %c0_3 = arith.constant 0 : index
    %2 = vector.load %arg2[%c0_2, %c0_3] : memref<32x32xf32, #tpu.memory_space<vmem>>, vector<32x32xf32>
    %cst = arith.constant dense<0.000000e+00> : vector<1x32xf32>
    %3 = tpu.matmul %1, %2, %cst {dimension_numbers = #tpu.dot_dimension_numbers<[1], [0], [0], [1], [0, 0, 1, 1], [], []>} : vector<1x32xf32>, vector<32x32xf32>, vector<1x32xf32> -> vector<1x32xf32>
    %c0_4 = arith.constant 0 : index
    %c0_5 = arith.constant 0 : index
    %4 = vector.load %arg3[%c0_4, %c0_5] : memref<1x32xf32, #tpu.memory_space<vmem>>, vector<1x32xf32>
    %5 = arith.addf %3, %4 : vector<1x32xf32>
    %cst_6 = arith.constant 0.000000e+00 : f32
    %6 = vector.broadcast %cst_6 : f32 to vector<1x32xf32>
    %7 = arith.cmpf ogt, %5, %6 : vector<1x32xf32>
    %cst_7 = arith.constant 2.000000e-01 : f32
    %8 = vector.broadcast %cst_7 : f32 to vector<1x32xf32>
    %9 = arith.mulf %8, %5 : vector<1x32xf32>
    %10 = arith.select %7, %5, %9 : vector<1x32xi1>, vector<1x32xf32>
    %c0_8 = arith.constant 0 : index
    %c0_9 = arith.constant 0 : index
    %11 = vector.load %arg4[%c0_8, %c0_9] : memref<32x32xf32, #tpu.memory_space<vmem>>, vector<32x32xf32>
    %cst_10 = arith.constant dense<0.000000e+00> : vector<1x32xf32>
    %12 = tpu.matmul %10, %11, %cst_10 {dimension_numbers = #tpu.dot_dimension_numbers<[1], [0], [0], [1], [0, 0, 1, 1], [], []>} : vector<1x32xf32>, vector<32x32xf32>, vector<1x32xf32> -> vector<1x32xf32>
    %c0_11 = arith.constant 0 : index
    %c0_12 = arith.constant 0 : index
    %13 = vector.load %arg5[%c0_11, %c0_12] : memref<1x32xf32, #tpu.memory_space<vmem>>, vector<1x32xf32>
    %14 = arith.addf %12, %13 : vector<1x32xf32>
    %c0_13 = arith.constant 0 : index
    %c0_14 = arith.constant 0 : index
    %c0_15 = arith.constant 0 : index
    %15 = vector.load %arg17[%c0_13, %c0_14, %c0_15] : memref<1x1x32xf32, #tpu.memory_space<vmem>>, vector<1x1x32xf32>
    %16 = vector.shape_cast %15 : vector<1x1x32xf32> to vector<1x32xf32>
    %17 = vector.shape_cast %14 : vector<1x32xf32> to vector<1x1x32xf32>
    tpu.vector_store %arg17[%c0_13, %c0_14, %c0_15], %17 {strides = array<i32>} : memref<1x1x32xf32, #tpu.memory_space<vmem>>, vector<1x1x32xf32>,
    %c0_16 = arith.constant 0 : index
    %c0_17 = arith.constant 0 : index
    %c0_18 = arith.constant 0 : index
    %18 = vector.load %arg6[%c0_16, %c0_17, %c0_18] : memref<4x32x32xf32, #tpu.memory_space<vmem>>, vector<1x32x32xf32>
    %19 = vector.shape_cast %18 : vector<1x32x32xf32> to vector<32x32xf32>
    %cst_19 = arith.constant dense<0.000000e+00> : vector<1x32xf32>
    %20 = tpu.matmul %14, %19, %cst_19 {dimension_numbers = #tpu.dot_dimension_numbers<[1], [0], [0], [1], [0, 0, 1, 1], [], []>} : vector<1x32xf32>, vector<32x32xf32>, vector<1x32xf32> -> vector<1x32xf32>
    %c1 = arith.constant 1 : index
    %c0_20 = arith.constant 0 : index
    %c0_21 = arith.constant 0 : index
    %21 = vector.load %arg6[%c1, %c0_20, %c0_21] : memref<4x32x32xf32, #tpu.memory_space<vmem>>, vector<1x32x32xf32>
    %22 = vector.shape_cast %21 : vector<1x32x32xf32> to vector<32x32xf32>
    %cst_22 = arith.constant dense<0.000000e+00> : vector<1x32xf32>
    %23 = tpu.matmul %14, %22, %cst_22 {dimension_numbers = #tpu.dot_dimension_numbers<[1], [0], [0], [1], [0, 0, 1, 1], [], []>} : vector<1x32xf32>, vector<32x32xf32>, vector<1x32xf32> -> vector<1x32xf32>
    %c2 = arith.constant 2 : index
    %c0_23 = arith.constant 0 : index
    %c0_24 = arith.constant 0 : index
    %24 = vector.load %arg6[%c2, %c0_23, %c0_24] : memref<4x32x32xf32, #tpu.memory_space<vmem>>, vector<1x32x32xf32>
    %25 = vector.shape_cast %24 : vector<1x32x32xf32> to vector<32x32xf32>
    %cst_25 = arith.constant dense<0.000000e+00> : vector<1x32xf32>
    %26 = tpu.matmul %14, %25, %cst_25 {dimension_numbers = #tpu.dot_dimension_numbers<[1], [0], [0], [1], [0, 0, 1, 1], [], []>} : vector<1x32xf32>, vector<32x32xf32>, vector<1x32xf32> -> vector<1x32xf32>
    %c3 = arith.constant 3 : index
    %c0_26 = arith.constant 0 : index
    %c0_27 = arith.constant 0 : index
    %27 = vector.load %arg6[%c3, %c0_26, %c0_27] : memref<4x32x32xf32, #tpu.memory_space<vmem>>, vector<1x32x32xf32>
    %28 = vector.shape_cast %27 : vector<1x32x32xf32> to vector<32x32xf32>
    %cst_28 = arith.constant dense<0.000000e+00> : vector<1x32xf32>
    %29 = tpu.matmul %14, %28, %cst_28 {dimension_numbers = #tpu.dot_dimension_numbers<[1], [0], [0], [1], [0, 0, 1, 1], [], []>} : vector<1x32xf32>, vector<32x32xf32>, vector<1x32xf32> -> vector<1x32xf32>
    %30 = tpu.concatenate %20, %23, %26, %29 in 0 : vector<1x32xf32>, vector<1x32xf32>, vector<1x32xf32>, vector<1x32xf32> -> vector<4x32xf32>
    %c0_29 = arith.constant 0 : index
    %c0_30 = arith.constant 0 : index
    %31 = vector.load %arg7[%c0_29, %c0_30] : memref<4x32xf32, #tpu.memory_space<vmem>>, vector<4x32xf32>
    %32 = arith.addf %30, %31 : vector<4x32xf32>
    %c0_31 = arith.constant 0 : index
    %c0_32 = arith.constant 0 : index
    %c0_33 = arith.constant 0 : index
    %33 = vector.load %arg10[%c0_31, %c0_32, %c0_33] : memref<3x8x4xf32, #tpu.memory_space<vmem>>, vector<1x8x4xf32>
    %34 = vector.shape_cast %33 : vector<1x8x4xf32> to vector<8x4xf32>
    %cst_34 = arith.constant dense<0.000000e+00> : vector<8x32xf32>
    %35 = tpu.matmul %34, %32, %cst_34 {dimension_numbers = #tpu.dot_dimension_numbers<[1], [0], [0], [1], [0, 0, 1, 1], [], []>} : vector<8x4xf32>, vector<4x32xf32>, vector<8x32xf32> -> vector<8x32xf32>
    %c0_35 = arith.constant 0 : index
    %c0_36 = arith.constant 0 : index
    %c0_37 = arith.constant 0 : index
    %c0_38 = arith.constant 0 : index
    %36 = vector.load %arg8[%c0_35, %c0_36, %c0_37, %c0_38] : memref<2x3x32x32xf32, #tpu.memory_space<vmem>>, vector<1x1x32x32xf32>
    %37 = vector.shape_cast %36 : vector<1x1x32x32xf32> to vector<32x32xf32>
    %cst_39 = arith.constant dense<0.000000e+00> : vector<8x32xf32>
    %38 = tpu.matmul %35, %37, %cst_39 {dimension_numbers = #tpu.dot_dimension_numbers<[1], [0], [0], [1], [0, 0, 1, 1], [], []>} : vector<8x32xf32>, vector<32x32xf32>, vector<8x32xf32> -> vector<8x32xf32>
    %c1_40 = arith.constant 1 : index
    %c0_41 = arith.constant 0 : index
    %c0_42 = arith.constant 0 : index
    %39 = vector.load %arg10[%c1_40, %c0_41, %c0_42] : memref<3x8x4xf32, #tpu.memory_space<vmem>>, vector<1x8x4xf32>
    %40 = vector.shape_cast %39 : vector<1x8x4xf32> to vector<8x4xf32>
    %cst_43 = arith.constant dense<0.000000e+00> : vector<8x32xf32>
    %41 = tpu.matmul %40, %32, %cst_43 {dimension_numbers = #tpu.dot_dimension_numbers<[1], [0], [0], [1], [0, 0, 1, 1], [], []>} : vector<8x4xf32>, vector<4x32xf32>, vector<8x32xf32> -> vector<8x32xf32>
    %c0_44 = arith.constant 0 : index
    %c1_45 = arith.constant 1 : index
    %c0_46 = arith.constant 0 : index
    %c0_47 = arith.constant 0 : index
    %42 = vector.load %arg8[%c0_44, %c1_45, %c0_46, %c0_47] : memref<2x3x32x32xf32, #tpu.memory_space<vmem>>, vector<1x1x32x32xf32>
    %43 = vector.shape_cast %42 : vector<1x1x32x32xf32> to vector<32x32xf32>
    %cst_48 = arith.constant dense<0.000000e+00> : vector<8x32xf32>
    %44 = tpu.matmul %41, %43, %cst_48 {dimension_numbers = #tpu.dot_dimension_numbers<[1], [0], [0], [1], [0, 0, 1, 1], [], []>} : vector<8x32xf32>, vector<32x32xf32>, vector<8x32xf32> -> vector<8x32xf32>
    %45 = arith.addf %38, %44 : vector<8x32xf32>
    %c2_49 = arith.constant 2 : index
    %c0_50 = arith.constant 0 : index
    %c0_51 = arith.constant 0 : index
    %46 = vector.load %arg10[%c2_49, %c0_50, %c0_51] : memref<3x8x4xf32, #tpu.memory_space<vmem>>, vector<1x8x4xf32>
    %47 = vector.shape_cast %46 : vector<1x8x4xf32> to vector<8x4xf32>
    %cst_52 = arith.constant dense<0.000000e+00> : vector<8x32xf32>
    %48 = tpu.matmul %47, %32, %cst_52 {dimension_numbers = #tpu.dot_dimension_numbers<[1], [0], [0], [1], [0, 0, 1, 1], [], []>} : vector<8x4xf32>, vector<4x32xf32>, vector<8x32xf32> -> vector<8x32xf32>
    %c0_53 = arith.constant 0 : index
    %c2_54 = arith.constant 2 : index
    %c0_55 = arith.constant 0 : index
    %c0_56 = arith.constant 0 : index
    %49 = vector.load %arg8[%c0_53, %c2_54, %c0_55, %c0_56] : memref<2x3x32x32xf32, #tpu.memory_space<vmem>>, vector<1x1x32x32xf32>
    %50 = vector.shape_cast %49 : vector<1x1x32x32xf32> to vector<32x32xf32>
    %cst_57 = arith.constant dense<0.000000e+00> : vector<8x32xf32>
    %51 = tpu.matmul %48, %50, %cst_57 {dimension_numbers = #tpu.dot_dimension_numbers<[1], [0], [0], [1], [0, 0, 1, 1], [], []>} : vector<8x32xf32>, vector<32x32xf32>, vector<8x32xf32> -> vector<8x32xf32>
    %52 = arith.addf %45, %51 : vector<8x32xf32>
    %c0_58 = arith.constant 0 : index
    %c0_59 = arith.constant 0 : index
    %c0_60 = arith.constant 0 : index
    %53 = vector.load %arg9[%c0_58, %c0_59, %c0_60] : memref<2x1x32xf32, #tpu.memory_space<vmem>>, vector<1x1x32xf32>
    %54 = vector.shape_cast %53 : vector<1x1x32xf32> to vector<1x32xf32>
    %55 = vector.broadcast %54 : vector<1x32xf32> to vector<8x32xf32>
    %56 = arith.addf %52, %55 : vector<8x32xf32>
    %cst_61 = arith.constant 0.000000e+00 : f32
    %57 = vector.broadcast %cst_61 : f32 to vector<8x32xf32>
    %58 = arith.cmpf ogt, %56, %57 : vector<8x32xf32>
    %cst_62 = arith.constant 2.000000e-01 : f32
    %59 = vector.broadcast %cst_62 : f32 to vector<8x32xf32>
    %60 = arith.mulf %59, %56 : vector<8x32xf32>
    %61 = arith.select %58, %56, %60 : vector<8x32xi1>, vector<8x32xf32>
    %c0_63 = arith.constant 0 : index
    %c0_64 = arith.constant 0 : index
    %c0_65 = arith.constant 0 : index
    %62 = vector.load %arg11[%c0_63, %c0_64, %c0_65] : memref<3x16x8xf32, #tpu.memory_space<vmem>>, vector<1x16x8xf32>
    %63 = vector.shape_cast %62 : vector<1x16x8xf32> to vector<16x8xf32>
    %cst_66 = arith.constant dense<0.000000e+00> : vector<16x32xf32>
    %64 = tpu.matmul %63, %61, %cst_66 {dimension_numbers = #tpu.dot_dimension_numbers<[1], [0], [0], [1], [0, 0, 1, 1], [], []>} : vector<16x8xf32>, vector<8x32xf32>, vector<16x32xf32> -> vector<16x32xf32>
    %c1_67 = arith.constant 1 : index
    %c0_68 = arith.constant 0 : index
    %c0_69 = arith.constant 0 : index
    %c0_70 = arith.constant 0 : index
    %65 = vector.load %arg8[%c1_67, %c0_68, %c0_69, %c0_70] : memref<2x3x32x32xf32, #tpu.memory_space<vmem>>, vector<1x1x32x32xf32>
    %66 = vector.shape_cast %65 : vector<1x1x32x32xf32> to vector<32x32xf32>
    %cst_71 = arith.constant dense<0.000000e+00> : vector<16x32xf32>
    %67 = tpu.matmul %64, %66, %cst_71 {dimension_numbers = #tpu.dot_dimension_numbers<[1], [0], [0], [1], [0, 0, 1, 1], [], []>} : vector<16x32xf32>, vector<32x32xf32>, vector<16x32xf32> -> vector<16x32xf32>
    %c1_72 = arith.constant 1 : index
    %c0_73 = arith.constant 0 : index
    %c0_74 = arith.constant 0 : index
    %68 = vector.load %arg11[%c1_72, %c0_73, %c0_74] : memref<3x16x8xf32, #tpu.memory_space<vmem>>, vector<1x16x8xf32>
    %69 = vector.shape_cast %68 : vector<1x16x8xf32> to vector<16x8xf32>
    %cst_75 = arith.constant dense<0.000000e+00> : vector<16x32xf32>
    %70 = tpu.matmul %69, %61, %cst_75 {dimension_numbers = #tpu.dot_dimension_numbers<[1], [0], [0], [1], [0, 0, 1, 1], [], []>} : vector<16x8xf32>, vector<8x32xf32>, vector<16x32xf32> -> vector<16x32xf32>
    %c1_76 = arith.constant 1 : index
    %c1_77 = arith.constant 1 : index
    %c0_78 = arith.constant 0 : index
    %c0_79 = arith.constant 0 : index
    %71 = vector.load %arg8[%c1_76, %c1_77, %c0_78, %c0_79] : memref<2x3x32x32xf32, #tpu.memory_space<vmem>>, vector<1x1x32x32xf32>
    %72 = vector.shape_cast %71 : vector<1x1x32x32xf32> to vector<32x32xf32>
    %cst_80 = arith.constant dense<0.000000e+00> : vector<16x32xf32>
    %73 = tpu.matmul %70, %72, %cst_80 {dimension_numbers = #tpu.dot_dimension_numbers<[1], [0], [0], [1], [0, 0, 1, 1], [], []>} : vector<16x32xf32>, vector<32x32xf32>, vector<16x32xf32> -> vector<16x32xf32>
    %74 = arith.addf %67, %73 : vector<16x32xf32>
    %c2_81 = arith.constant 2 : index
    %c0_82 = arith.constant 0 : index
    %c0_83 = arith.constant 0 : index
    %75 = vector.load %arg11[%c2_81, %c0_82, %c0_83] : memref<3x16x8xf32, #tpu.memory_space<vmem>>, vector<1x16x8xf32>
    %76 = vector.shape_cast %75 : vector<1x16x8xf32> to vector<16x8xf32>
    %cst_84 = arith.constant dense<0.000000e+00> : vector<16x32xf32>
    %77 = tpu.matmul %76, %61, %cst_84 {dimension_numbers = #tpu.dot_dimension_numbers<[1], [0], [0], [1], [0, 0, 1, 1], [], []>} : vector<16x8xf32>, vector<8x32xf32>, vector<16x32xf32> -> vector<16x32xf32>
    %c1_85 = arith.constant 1 : index
    %c2_86 = arith.constant 2 : index
    %c0_87 = arith.constant 0 : index
    %c0_88 = arith.constant 0 : index
    %78 = vector.load %arg8[%c1_85, %c2_86, %c0_87, %c0_88] : memref<2x3x32x32xf32, #tpu.memory_space<vmem>>, vector<1x1x32x32xf32>
    %79 = vector.shape_cast %78 : vector<1x1x32x32xf32> to vector<32x32xf32>
    %cst_89 = arith.constant dense<0.000000e+00> : vector<16x32xf32>
    %80 = tpu.matmul %77, %79, %cst_89 {dimension_numbers = #tpu.dot_dimension_numbers<[1], [0], [0], [1], [0, 0, 1, 1], [], []>} : vector<16x32xf32>, vector<32x32xf32>, vector<16x32xf32> -> vector<16x32xf32>
    %81 = arith.addf %74, %80 : vector<16x32xf32>
    %c1_90 = arith.constant 1 : index
    %c0_91 = arith.constant 0 : index
    %c0_92 = arith.constant 0 : index
    %82 = vector.load %arg9[%c1_90, %c0_91, %c0_92] : memref<2x1x32xf32, #tpu.memory_space<vmem>>, vector<1x1x32xf32>
    %83 = vector.shape_cast %82 : vector<1x1x32xf32> to vector<1x32xf32>
    %84 = vector.broadcast %83 : vector<1x32xf32> to vector<16x32xf32>
    %85 = arith.addf %81, %84 : vector<16x32xf32>
    %cst_93 = arith.constant 0.000000e+00 : f32
    %86 = vector.broadcast %cst_93 : f32 to vector<16x32xf32>
    %87 = arith.cmpf ogt, %85, %86 : vector<16x32xf32>
    %cst_94 = arith.constant 2.000000e-01 : f32
    %88 = vector.broadcast %cst_94 : f32 to vector<16x32xf32>
    %89 = arith.mulf %88, %85 : vector<16x32xf32>
    %90 = arith.select %87, %85, %89 : vector<16x32xi1>, vector<16x32xf32>
    %c0_95 = arith.constant 0 : index
    %c0_96 = arith.constant 0 : index
    %c0_97 = arith.constant 0 : index
    %91 = vector.load %arg12[%c0_95, %c0_96, %c0_97] : memref<3x16x16xf32, #tpu.memory_space<vmem>>, vector<1x16x16xf32>
    %92 = vector.shape_cast %91 : vector<1x16x16xf32> to vector<16x16xf32>
    %cst_98 = arith.constant dense<0.000000e+00> : vector<16x32xf32>
    %93 = tpu.matmul %92, %90, %cst_98 {dimension_numbers = #tpu.dot_dimension_numbers<[1], [0], [0], [1], [0, 0, 1, 1], [], []>} : vector<16x16xf32>, vector<16x32xf32>, vector<16x32xf32> -> vector<16x32xf32>
    %c0_99 = arith.constant 0 : index
    %c0_100 = arith.constant 0 : index
    %c0_101 = arith.constant 0 : index
    %94 = vector.load %arg13[%c0_99, %c0_100, %c0_101] : memref<3x32x32xf32, #tpu.memory_space<vmem>>, vector<1x32x32xf32>
    %95 = vector.shape_cast %94 : vector<1x32x32xf32> to vector<32x32xf32>
    %cst_102 = arith.constant dense<0.000000e+00> : vector<16x32xf32>
    %96 = tpu.matmul %93, %95, %cst_102 {dimension_numbers = #tpu.dot_dimension_numbers<[1], [0], [0], [1], [0, 0, 1, 1], [], []>} : vector<16x32xf32>, vector<32x32xf32>, vector<16x32xf32> -> vector<16x32xf32>
    %c1_103 = arith.constant 1 : index
    %c0_104 = arith.constant 0 : index
    %c0_105 = arith.constant 0 : index
    %97 = vector.load %arg12[%c1_103, %c0_104, %c0_105] : memref<3x16x16xf32, #tpu.memory_space<vmem>>, vector<1x16x16xf32>
    %98 = vector.shape_cast %97 : vector<1x16x16xf32> to vector<16x16xf32>
    %cst_106 = arith.constant dense<0.000000e+00> : vector<16x32xf32>
    %99 = tpu.matmul %98, %90, %cst_106 {dimension_numbers = #tpu.dot_dimension_numbers<[1], [0], [0], [1], [0, 0, 1, 1], [], []>} : vector<16x16xf32>, vector<16x32xf32>, vector<16x32xf32> -> vector<16x32xf32>
    %c1_107 = arith.constant 1 : index
    %c0_108 = arith.constant 0 : index
    %c0_109 = arith.constant 0 : index
    %100 = vector.load %arg13[%c1_107, %c0_108, %c0_109] : memref<3x32x32xf32, #tpu.memory_space<vmem>>, vector<1x32x32xf32>
    %101 = vector.shape_cast %100 : vector<1x32x32xf32> to vector<32x32xf32>
    %cst_110 = arith.constant dense<0.000000e+00> : vector<16x32xf32>
    %102 = tpu.matmul %99, %101, %cst_110 {dimension_numbers = #tpu.dot_dimension_numbers<[1], [0], [0], [1], [0, 0, 1, 1], [], []>} : vector<16x32xf32>, vector<32x32xf32>, vector<16x32xf32> -> vector<16x32xf32>
    %103 = arith.addf %96, %102 : vector<16x32xf32>
    %c2_111 = arith.constant 2 : index
    %c0_112 = arith.constant 0 : index
    %c0_113 = arith.constant 0 : index
    %104 = vector.load %arg12[%c2_111, %c0_112, %c0_113] : memref<3x16x16xf32, #tpu.memory_space<vmem>>, vector<1x16x16xf32>
    %105 = vector.shape_cast %104 : vector<1x16x16xf32> to vector<16x16xf32>
    %cst_114 = arith.constant dense<0.000000e+00> : vector<16x32xf32>
    %106 = tpu.matmul %105, %90, %cst_114 {dimension_numbers = #tpu.dot_dimension_numbers<[1], [0], [0], [1], [0, 0, 1, 1], [], []>} : vector<16x16xf32>, vector<16x32xf32>, vector<16x32xf32> -> vector<16x32xf32>
    %c2_115 = arith.constant 2 : index
    %c0_116 = arith.constant 0 : index
    %c0_117 = arith.constant 0 : index
    %107 = vector.load %arg13[%c2_115, %c0_116, %c0_117] : memref<3x32x32xf32, #tpu.memory_space<vmem>>, vector<1x32x32xf32>
    %108 = vector.shape_cast %107 : vector<1x32x32xf32> to vector<32x32xf32>
    %cst_118 = arith.constant dense<0.000000e+00> : vector<16x32xf32>
    %109 = tpu.matmul %106, %108, %cst_118 {dimension_numbers = #tpu.dot_dimension_numbers<[1], [0], [0], [1], [0, 0, 1, 1], [], []>} : vector<16x32xf32>, vector<32x32xf32>, vector<16x32xf32> -> vector<16x32xf32>
    %110 = arith.addf %103, %109 : vector<16x32xf32>
    %c0_119 = arith.constant 0 : index
    %c0_120 = arith.constant 0 : index
    %111 = vector.load %arg14[%c0_119, %c0_120] : memref<1x32xf32, #tpu.memory_space<vmem>>, vector<1x32xf32>
    %112 = vector.broadcast %111 : vector<1x32xf32> to vector<16x32xf32>
    %113 = arith.addf %110, %112 : vector<16x32xf32>
    %c0_121 = arith.constant 0 : index
    %c0_122 = arith.constant 0 : index
    %114 = vector.load %arg15[%c0_121, %c0_122] : memref<32x64xf32, #tpu.memory_space<vmem>>, vector<32x64xf32>
    %cst_123 = arith.constant dense<0.000000e+00> : vector<16x64xf32>
    %115 = tpu.matmul %113, %114, %cst_123 {dimension_numbers = #tpu.dot_dimension_numbers<[1], [0], [0], [1], [0, 0, 1, 1], [], []>} : vector<16x32xf32>, vector<32x64xf32>, vector<16x64xf32> -> vector<16x64xf32>
    %c0_124 = arith.constant 0 : index
    %c0_125 = arith.constant 0 : index
    %116 = vector.load %arg16[%c0_124, %c0_125] : memref<1x64xf32, #tpu.memory_space<vmem>>, vector<1x64xf32>
    %117 = vector.broadcast %116 : vector<1x64xf32> to vector<16x64xf32>
    %118 = arith.addf %115, %117 : vector<16x64xf32>
    %119 = math.tanh %118 : vector<16x64xf32>
    %c0_126 = arith.constant 0 : index
    %c0_127 = arith.constant 0 : index
    %c0_128 = arith.constant 0 : index
    %120 = vector.load %arg18[%c0_126, %c0_127, %c0_128] : memref<1x16x64xf32, #tpu.memory_space<vmem>>, vector<1x16x64xf32>
    %121 = vector.shape_cast %120 : vector<1x16x64xf32> to vector<16x64xf32>
    %122 = vector.shape_cast %119 : vector<16x64xf32> to vector<1x16x64xf32>
    tpu.vector_store %arg18[%c0_126, %c0_127, %c0_128], %122 {strides = array<i32>} : memref<1x16x64xf32, #tpu.memory_space<vmem>>, vector<1x16x64xf32>,
    return
  }
  func.func @transform_0(%arg0: i32) -> (i32, i32, i32) {
    %c0_i32 = arith.constant 0 : i32
    %c0_i32_0 = arith.constant 0 : i32
    %c0_i32_1 = arith.constant 0 : i32
    return %arg0, %c0_i32, %c0_i32_0 : i32, i32, i32
  }
  func.func @transform_1(%arg0: i32) -> (i32, i32) {
    %c0_i32 = arith.constant 0 : i32
    %c0_i32_0 = arith.constant 0 : i32
    %c0_i32_1 = arith.constant 0 : i32
    return %c0_i32, %c0_i32_0 : i32, i32
  }
  func.func @transform_2(%arg0: i32) -> (i32, i32) {
    %c0_i32 = arith.constant 0 : i32
    %c0_i32_0 = arith.constant 0 : i32
    %c0_i32_1 = arith.constant 0 : i32
    return %c0_i32, %c0_i32_0 : i32, i32
  }
  func.func @transform_3(%arg0: i32) -> (i32, i32) {
    %c0_i32 = arith.constant 0 : i32
    %c0_i32_0 = arith.constant 0 : i32
    %c0_i32_1 = arith.constant 0 : i32
    return %c0_i32, %c0_i32_0 : i32, i32
  }
  func.func @transform_4(%arg0: i32) -> (i32, i32) {
    %c0_i32 = arith.constant 0 : i32
    %c0_i32_0 = arith.constant 0 : i32
    %c0_i32_1 = arith.constant 0 : i32
    return %c0_i32, %c0_i32_0 : i32, i32
  }
  func.func @transform_5(%arg0: i32) -> (i32, i32, i32) {
    %c0_i32 = arith.constant 0 : i32
    %c0_i32_0 = arith.constant 0 : i32
    %c0_i32_1 = arith.constant 0 : i32
    %c0_i32_2 = arith.constant 0 : i32
    return %c0_i32, %c0_i32_0, %c0_i32_1 : i32, i32, i32
  }
  func.func @transform_6(%arg0: i32) -> (i32, i32) {
    %c0_i32 = arith.constant 0 : i32
    %c0_i32_0 = arith.constant 0 : i32
    %c0_i32_1 = arith.constant 0 : i32
    return %c0_i32, %c0_i32_0 : i32, i32
  }
  func.func @transform_7(%arg0: i32) -> (i32, i32, i32, i32) {
    %c0_i32 = arith.constant 0 : i32
    %c0_i32_0 = arith.constant 0 : i32
    %c0_i32_1 = arith.constant 0 : i32
    %c0_i32_2 = arith.constant 0 : i32
    %c0_i32_3 = arith.constant 0 : i32
    return %c0_i32, %c0_i32_0, %c0_i32_1, %c0_i32_2 : i32, i32, i32, i32
  }
  func.func @transform_8(%arg0: i32) -> (i32, i32, i32) {
    %c0_i32 = arith.constant 0 : i32
    %c0_i32_0 = arith.constant 0 : i32
    %c0_i32_1 = arith.constant 0 : i32
    %c0_i32_2 = arith.constant 0 : i32
    return %c0_i32, %c0_i32_0, %c0_i32_1 : i32, i32, i32
  }
  func.func @transform_9(%arg0: i32) -> (i32, i32, i32) {
    %c0_i32 = arith.constant 0 : i32
    %c0_i32_0 = arith.constant 0 : i32
    %c0_i32_1 = arith.constant 0 : i32
    %c0_i32_2 = arith.constant 0 : i32
    return %c0_i32, %c0_i32_0, %c0_i32_1 : i32, i32, i32
  }
  func.func @transform_10(%arg0: i32) -> (i32, i32, i32) {
    %c0_i32 = arith.constant 0 : i32
    %c0_i32_0 = arith.constant 0 : i32
    %c0_i32_1 = arith.constant 0 : i32
    %c0_i32_2 = arith.constant 0 : i32
    return %c0_i32, %c0_i32_0, %c0_i32_1 : i32, i32, i32
  }
  func.func @transform_11(%arg0: i32) -> (i32, i32, i32) {
    %c0_i32 = arith.constant 0 : i32
    %c0_i32_0 = arith.constant 0 : i32
    %c0_i32_1 = arith.constant 0 : i32
    %c0_i32_2 = arith.constant 0 : i32
    return %c0_i32, %c0_i32_0, %c0_i32_1 : i32, i32, i32
  }
  func.func @transform_12(%arg0: i32) -> (i32, i32, i32) {
    %c0_i32 = arith.constant 0 : i32
    %c0_i32_0 = arith.constant 0 : i32
    %c0_i32_1 = arith.constant 0 : i32
    %c0_i32_2 = arith.constant 0 : i32
    return %c0_i32, %c0_i32_0, %c0_i32_1 : i32, i32, i32
  }
  func.func @transform_13(%arg0: i32) -> (i32, i32) {
    %c0_i32 = arith.constant 0 : i32
    %c0_i32_0 = arith.constant 0 : i32
    %c0_i32_1 = arith.constant 0 : i32
    return %c0_i32, %c0_i32_0 : i32, i32
  }
  func.func @transform_14(%arg0: i32) -> (i32, i32) {
    %c0_i32 = arith.constant 0 : i32
    %c0_i32_0 = arith.constant 0 : i32
    %c0_i32_1 = arith.constant 0 : i32
    return %c0_i32, %c0_i32_0 : i32, i32
  }
  func.func @transform_15(%arg0: i32) -> (i32, i32) {
    %c0_i32 = arith.constant 0 : i32
    %c0_i32_0 = arith.constant 0 : i32
    %c0_i32_1 = arith.constant 0 : i32
    return %c0_i32, %c0_i32_0 : i32, i32
  }
  func.func @transform_16(%arg0: i32) -> (i32, i32, i32) {
    %c0_i32 = arith.constant 0 : i32
    %c0_i32_0 = arith.constant 0 : i32
    %c0_i32_1 = arith.constant 0 : i32
    return %arg0, %c0_i32, %c0_i32_0 : i32, i32, i32
  }
  func.func @transform_17(%arg0: i32) -> (i32, i32, i32) {
    %c0_i32 = arith.constant 0 : i32
    %c0_i32_0 = arith.constant 0 : i32
    %c0_i32_1 = arith.constant 0 : i32
    return %arg0, %c0_i32, %c0_i32_0 : i32, i32, i32
  }
}

</mosaic_0001>

<bundles_post_ra>
// kernel: sub.9
= control target key start
LH: loop header
LB: loop body
LE: loop exit
PB: predicated region body
PF: predicated region fallthrough
CT: control target
= control target key end

     0   :  { %s364_s0 = inlined_call_operand.vmem [shape: f32[127,32], index: 0, kind: input, shape index: {}]   ;;  %s365_s1 = inlined_call_operand.vmem [shape: f32[127,32], index: 1, kind: input, shape index: {}]   ;;  %s366_s2 = inlined_call_operand.vmem [shape: f32[127,32], index: 2, kind: output, shape index: {}]  }
   0x1   :  { %v3_v0 = vld [vmem:[%s364_s0] sm:$0xff]  ;;  %v160_v2 = vld [vmem:[%s364_s0 + $0x8] sm:$0xff]  ;;  %v163_v5 = vld [vmem:[%s364_s0 + $0x10] sm:$0xff] }
   0x2   :  { %v4_v1 = vld [vmem:[%s365_s1] sm:$0xff]  ;;  %v161_v4 = vld [vmem:[%s365_s1 + $0x8] sm:$0xff]  ;;  %v164_v6 = vld [vmem:[%s365_s1 + $0x10] sm:$0xff] }
   0x3   :  { %v7_v3 = vsub.f32 %v3_v0, %v4_v1  ;;  %v16_v7 = vsub.f32 %v160_v2, %v161_v4  ;;  %v26_v8 = vsub.f32 %v163_v5, %v164_v6  ;;  %v166_v9 = vld [vmem:[%s364_s0 + $0x18] sm:$0xff]  ;;  %v169_v11 = vld [vmem:[%s364_s0 + $0x20] sm:$0xff]  ;;  %v172_v14 = vld [vmem:[%s364_s0 + $0x28] sm:$0xff] }
   0x4   :  { %v167_v10 = vld [vmem:[%s365_s1 + $0x18] sm:$0xff]  ;;  %v170_v13 = vld [vmem:[%s365_s1 + $0x20] sm:$0xff]  ;;  %v173_v15 = vld [vmem:[%s365_s1 + $0x28] sm:$0xff] }
   0x5   :  { %9 = vst [vmem:[%s366_s2] sm:$0xff] %v7_v3  ;;  %v36_v12 = vsub.f32 %v166_v9, %v167_v10  ;;  %v46_v16 = vsub.f32 %v169_v11, %v170_v13  ;;  %v56_v17 = vsub.f32 %v172_v14, %v173_v15  ;;  %v175_v18 = vld [vmem:[%s364_s0 + $0x30] sm:$0xff]  ;;  %v178_v20 = vld [vmem:[%s364_s0 + $0x38] sm:$0xff]  ;;  %v181_v23 = vld [vmem:[%s364_s0 + $0x40] sm:$0xff] }
   0x6   :  { %162 = vst [vmem:[%s366_s2 + $0x8] sm:$0xff] %v16_v7  ;;  %v176_v19 = vld [vmem:[%s365_s1 + $0x30] sm:$0xff]  ;;  %v179_v22 = vld [vmem:[%s365_s1 + $0x38] sm:$0xff]  ;;  %v182_v24 = vld [vmem:[%s365_s1 + $0x40] sm:$0xff] }
   0x7   :  { %165 = vst [vmem:[%s366_s2 + $0x10] sm:$0xff] %v26_v8  ;;  %v66_v21 = vsub.f32 %v175_v18, %v176_v19  ;;  %v76_v25 = vsub.f32 %v178_v20, %v179_v22  ;;  %v86_v26 = vsub.f32 %v181_v23, %v182_v24  ;;  %v184_v27 = vld [vmem:[%s364_s0 + $0x48] sm:$0xff]  ;;  %v187_v29 = vld [vmem:[%s364_s0 + $0x50] sm:$0xff]  ;;  %v190_v32 = vld [vmem:[%s364_s0 + $0x58] sm:$0xff] }
   0x8   :  { %168 = vst [vmem:[%s366_s2 + $0x18] sm:$0xff] %v36_v12  ;;  %v185_v28 = vld [vmem:[%s365_s1 + $0x48] sm:$0xff]  ;;  %v188_v31 = vld [vmem:[%s365_s1 + $0x50] sm:$0xff]  ;;  %v191_v33 = vld [vmem:[%s365_s1 + $0x58] sm:$0xff] }
   0x9   :  { %171 = vst [vmem:[%s366_s2 + $0x20] sm:$0xff] %v46_v16  ;;  %v96_v30 = vsub.f32 %v184_v27, %v185_v28  ;;  %v106_v34 = vsub.f32 %v187_v29, %v188_v31  ;;  %v116_v35 = vsub.f32 %v190_v32, %v191_v33  ;;  %v193_v36 = vld [vmem:[%s364_s0 + $0x60] sm:$0xff]  ;;  %v196_v38 = vld [vmem:[%s364_s0 + $0x68] sm:$0xff]  ;;  %v199_v41 = vld [vmem:[%s364_s0 + $0x70] sm:$0xff] }
   0xa   :  { %174 = vst [vmem:[%s366_s2 + $0x28] sm:$0xff] %v56_v17  ;;  %v194_v37 = vld [vmem:[%s365_s1 + $0x60] sm:$0xff]  ;;  %v197_v40 = vld [vmem:[%s365_s1 + $0x68] sm:$0xff]  ;;  %v200_v42 = vld [vmem:[%s365_s1 + $0x70] sm:$0xff] }
   0xb   :  { %177 = vst [vmem:[%s366_s2 + $0x30] sm:$0xff] %v66_v21  ;;  %v126_v39 = vsub.f32 %v193_v36, %v194_v37  ;;  %v136_v43 = vsub.f32 %v196_v38, %v197_v40  ;;  %v146_v44 = vsub.f32 %v199_v41, %v200_v42  ;;  %v202_v45 = vld [vmem:[%s364_s0 + $0x78] sm:$0xff] }
   0xc   :  { %180 = vst [vmem:[%s366_s2 + $0x38] sm:$0xff] %v76_v25  ;;  %v203_v46 = vld [vmem:[%s365_s1 + $0x78] sm:$0xff] }
   0xd   :  { %183 = vst [vmem:[%s366_s2 + $0x40] sm:$0xff] %v86_v26  ;;  %v156_v47 = vsub.f32 %v202_v45, %v203_v46 }
   0xe   :  { %186 = vst [vmem:[%s366_s2 + $0x48] sm:$0xff] %v96_v30 }
   0xf   :  { %189 = vst [vmem:[%s366_s2 + $0x50] sm:$0xff] %v106_v34 }
  0x10   :  { %192 = vst [vmem:[%s366_s2 + $0x58] sm:$0xff] %v116_v35 }
  0x11   :  { %195 = vst [vmem:[%s366_s2 + $0x60] sm:$0xff] %v126_v39 }
  0x12   :  { %198 = vst [vmem:[%s366_s2 + $0x68] sm:$0xff] %v136_v43 }
  0x13   :  { %201 = vst [vmem:[%s366_s2 + $0x70] sm:$0xff] %v146_v44 }
  0x14   :  { %204 = vst [vmem:[%s366_s2 + $0x78] sm:$0xff] %v156_v47 }

// kernel: model_forward.4
= control target key start
LH: loop header
LB: loop body
LE: loop exit
PB: predicated region body
PF: predicated region fallthrough
CT: control target
= control target key end

     0   :  { %s456_s9 = smov 0   ;;  %s541_s0 = inlined_call_operand.vmem [shape: f32[2,17,64], index: 0, kind: input, shape index: {}]   ;;  %s542_s1 = inlined_call_operand.vmem [shape: f32[2,64,32], index: 1, kind: input, shape index: {}]   ;;  %s543_s2 = inlined_call_operand.vmem [shape: f32[2,16,32], index: 2, kind: output, shape index: {}]  }
   0x1 LB: > { %s363_s10 = sadd.s32 4294967295, %s437_s9   ;;  %p367_p0 = scmp.ge.s32.totalorder %s437_s9, 1  ;;  %s437_s9 = sphi %s456_s9, %s12_s9  }
   0x2   : > { %p112_p1 = scmp.lt.s32.totalorder %s437_s9, 3 }
   0x4   : > { %p113_p2 = pnand %p367_p0, %p112_p1 }
   0x5   : > { %p134_p3 = scmp.lt.s32.totalorder (!%p113_p2), %s363_s10, 1 }
   0x6   : > { %116 = sbr.rel (%p113_p2) target bundleno = 633 (0x279), region = 28 }
   0xb   : > { %v378_v0 = vld [vmem:[%s542_s1 + $0x78] sm:$0xff]  ;;  %v377_v2 = vld [vmem:[%s542_s1 + $0x70] sm:$0xff]  ;;  %v376_v4 = vld [vmem:[%s542_s1 + $0x68] sm:$0xff]  ;;  %s545_s10 = smov (!%p134_p3, %s363_s10), 1  ;;  %vm165_vm0 = vcmask 523264   ;;  %vm226_vm1 = vcmask 261120  }
   0xc   : > { %v155_v1 = vld [vmem:[%s542_s1 + $0x38] sm:$0xff]  ;;  %386 = vmatpush.msra.mxu2 %v378_v0  ;;  %v154_v3 = vld [vmem:[%s542_s1 + $0x30] sm:$0xff]  ;;  %v153_v5 = vld [vmem:[%s542_s1 + $0x28] sm:$0xff]  ;;  %180 = vmatpush.msra.mxu0 %v378_v0  ;;  %s402_s3 = smul.u32 24, %s545_s10  ;;  %v439_v31 = vmov 512.0   ;;  %v440_v53 = vmov 511.0  }
   0xd   : > { %394 = vmatpush.msra.mxu3 %v155_v1  ;;  %209 = vmatpush.msra.mxu1 %v155_v1  ;;  %v375_v6 = vld [vmem:[%s542_s1 + $0x60] sm:$0xff]  ;;  %v374_v8 = vld [vmem:[%s542_s1 + $0x58] sm:$0xff]  ;;  %v373_v10 = vld [vmem:[%s542_s1 + $0x50] sm:$0xff]  ;;  %423 = vrcp.f32 %v439_v31  ;;  %s385_s29 = sshll.u32 %s545_s10, 4 }
   0xe   : > { %387 = vmatpush.msra.mxu2 %v377_v2  ;;  %v152_v7 = vld [vmem:[%s542_s1 + $0x20] sm:$0xff]  ;;  %181 = vmatpush.msra.mxu0 %v377_v2  ;;  %v151_v9 = vld [vmem:[%s542_s1 + $0x18] sm:$0xff]  ;;  %v150_v11 = vld [vmem:[%s542_s1 + $0x10] sm:$0xff]  ;;  %s138_s16 = scalar_lea.vmem %s541_s0, %s402_s3  ;;  %425 = vrcp.f32 %v440_v53  ;;  %s143_s4 = scalar_lea.vmem %s543_s2, %s385_s29 }
   0xf   : > { %395 = vmatpush.msra.mxu3 %v154_v3  ;;  %210 = vmatpush.msra.mxu1 %v154_v3  ;;  %v372_v12 = vld [vmem:[%s542_s1 + $0x48] sm:$0xff]  ;;  %v371_v14 = vld [vmem:[%s542_s1 + $0x40] sm:$0xff] }
  0x10   : > { %388 = vmatpush.msra.mxu2 %v376_v4  ;;  %182 = vmatpush.msra.mxu0 %v376_v4  ;;  %v149_v13 = vld [vmem:[%s542_s1 + $0x8] sm:$0xff]  ;;  %v148_v15 = vld [vmem:[%s542_s1] sm:$0xff] }
  0x11   : > { %396 = vmatpush.msra.mxu3 %v153_v5  ;;  %211 = vmatpush.msra.mxu1 %v153_v5  ;;  %v147_v16 = vld [vmem:[%s138_s16 + $0x9] sm:$0xff]  ;;  %v146_v18 = vld [vmem:[%s138_s16 + $0x1] sm:$0xff] }
  0x12   : > { %389 = vmatpush.msra.mxu2 %v375_v6  ;;  %183 = vmatpush.msra.mxu0 %v375_v6  ;;  %v145_v17 = vld [vmem:[%s138_s16 + $0x8] sm:$0xff]  ;;  %v144_v19 = vld [vmem:[%s138_s16] sm:$0xff] }
  0x13   : > { %397 = vmatpush.msra.mxu3 %v152_v7  ;;  %212 = vmatpush.msra.mxu1 %v152_v7  ;;  %v424_v32 = vpop.eup %423 }
  0x14   : > { %390 = vmatpush.msra.mxu2 %v374_v8  ;;  %184 = vmatpush.msra.mxu0 %v374_v8  ;;  %v240_v33 = vmul.f32 512.0, %v424_v32  ;;  %vm244_vm2 = vweird.f32 %v424_v32  ;;  %v426_v54 = vpop.eup %425 }
  0x15   : > { %398 = vmatpush.msra.mxu3 %v151_v9  ;;  %213 = vmatpush.msra.mxu1 %v151_v9  ;;  %v266_v55 = vmul.f32 511.0, %v426_v54  ;;  %vm270_vm3 = vweird.f32 %v426_v54 }
  0x16   : > { %391 = vmatpush.msra.mxu2 %v373_v10  ;;  %185 = vmatpush.msra.mxu0 %v373_v10  ;;  %v241_v34 = vsub.f32 1.0, %v240_v33 }
  0x17   : > { %399 = vmatpush.msra.mxu3 %v150_v11  ;;  %214 = vmatpush.msra.mxu1 %v150_v11  ;;  %v267_v56 = vsub.f32 1.0, %v266_v55 }
  0x18   : > { %392 = vmatpush.msra.mxu2 %v372_v12  ;;  %186 = vmatpush.msra.mxu0 %v372_v12  ;;  %v242_v38 = vmul.f32 %v424_v32, %v241_v34 }
  0x19   : > { %400 = vmatpush.msra.mxu3 %v149_v13  ;;  %215 = vmatpush.msra.mxu1 %v149_v13  ;;  %v268_v60 = vmul.f32 %v426_v54, %v267_v56 }
  0x1a   : > { %393 = vmatpush.msra.mxu2 %v371_v14  ;;  %187 = vmatpush.msra.mxu0 %v371_v14  ;;  %v243_v41 = vadd.f32 %v424_v32, %v242_v38 }
  0x1b   : > { %401 = vmatpush.msra.mxu3 %v148_v15  ;;  %380 = vmatmul.msk.f32.vlgmr.msra.gmra.mxu2 %vm165_vm0, %v147_v16  ;;  %v269_v63 = vadd.f32 %v426_v54, %v268_v60 }
  0x1c   : > { %382 = vmatmul.msk.f32.vlgmr.msra.gmra.mxu3 %vm165_vm0, %v145_v17  ;;  %216 = vmatpush.msra.mxu1 %v148_v15  ;;  %v245_v44 = vsel %vm244_vm2, %v424_v32, %v243_v41 }
  0x1d   : > { %379 = vmatmul.msk.f32.vlgmr.msra.gmra.mxu0 %vm165_vm0, %v146_v18  ;;  %381 = vmatmul.msk.f32.vlgmr.msra.gmra.mxu1 %vm165_vm0, %v144_v19  ;;  %v271_v2 = vsel %vm270_vm3, %v426_v54, %v269_v63 }
  0x9a   : > { %v189_v20 = vpop.f32.mrf.mxu0  ;;  %v218_v21 = vpop.f32.mrf.mxu1 }
  0x9b   : > { %v219_v22 = vadd.f32 %v218_v21, %v189_v20 }
  0x9d   : > { %v224_v23 = vmul.f32 0.015625, %v219_v22 }
  0x9e   : > { %v192_v24 = vpop.f32.mrf.mxu2 }
  0x9f   : > { %v221_v25 = vpop.f32.mrf.mxu3  ;;  %v227_v28 = vsel %vm226_vm1, %v224_v23, 0.0 }
  0xa0   : > { %v222_v26 = vadd.f32 %v221_v25, %v192_v24 }
  0xa2   : > { %v225_v27 = vmul.f32 0.015625, %v222_v26 }
  0xa4   : > { %v228_v29 = vsel %vm226_vm1, %v225_v27, 0.0 }
  0xa5   : > { %v229_v30 = vadd.f32 %v228_v29, %v227_v28 }
  0xa7   : > { %230 = vadd.xlane.f32.xlu0 %v229_v30 }
 0x11a   : > { %v231_v35 = vpop.xlane.xlu0 %230 }
 0x11b   : > { %v232_v36 = vrot.slane %v231_v35, 4 }
 0x11d   : > { %v233_v37 = vadd.f32 %v232_v36, %v231_v35 }
 0x11f   : > { %v234_v39 = vrot.slane %v233_v37, 2 }
 0x121   : > { %v235_v40 = vadd.f32 %v234_v39, %v233_v37 }
 0x123   : > { %v236_v42 = vrot.slane %v235_v40, 1 }
 0x125   : > { %v237_v43 = vadd.f32 %v236_v42, %v235_v40 }
 0x127   : > { %403 = vpush %v237_v43 }
 0x128   : > { %405 = vpush %v245_v44 }
 0x158   : > { %s404_s21 = spop %403 }
 0x159   : > { %s406_s22 = spop %405 }
 0x15a   : > { %s247_s23 = smul.f32 %s406_s22, %s404_s21 }
 0x15c   : > { %v248_v45 = vstv %s247_s23 }
 0x15d   : > { %v520_v46 = vsub.f32 %v224_v23, %v248_v45  ;;  %v522_v47 = vsub.f32 %v225_v27, %v248_v45 }
 0x15f   : > { %v251_v48 = vmul.f32 %v520_v46, %v520_v46  ;;  %v252_v49 = vmul.f32 %v522_v47, %v522_v47 }
 0x161   : > { %v253_v50 = vsel %vm226_vm1, %v251_v48, 0.0  ;;  %v254_v51 = vsel %vm226_vm1, %v252_v49, 0.0 }
 0x162   : > { %v255_v52 = vadd.f32 %v254_v51, %v253_v50 }
 0x164   : > { %256 = vadd.xlane.f32.xlu0 %v255_v52 }
 0x1d7   : > { %v257_v57 = vpop.xlane.xlu0 %256 }
 0x1d8   : > { %v258_v58 = vrot.slane %v257_v57, 4 }
 0x1da   : > { %v259_v59 = vadd.f32 %v258_v58, %v257_v57 }
 0x1dc   : > { %v260_v61 = vrot.slane %v259_v59, 2 }
 0x1de   : > { %v261_v62 = vadd.f32 %v260_v61, %v259_v59 }
 0x1e0   : > { %v262_v0 = vrot.slane %v261_v62, 1 }
 0x1e2   : > { %v263_v1 = vadd.f32 %v262_v0, %v261_v62 }
 0x1e4   : > { %407 = vpush %v263_v1 }
 0x1e5   : > { %409 = vpush %v271_v2 }
 0x215   : > { %s408_s24 = spop %407 }
 0x216   : > { %s410_s25 = spop %409 }
 0x217   : > { %s273_s26 = smul.f32 %s410_s25, %s408_s24 }
 0x219   : > { %v274_v3 = vstv %s273_s26 }
 0x21a   : > { %427 = vrsqrt.f32 %v274_v3  ;;  %vm282_vm4 = vcmp.eq.f32.partialorder %v274_v3, inf  ;;  %v285_v11 = vand.u32 2147483648, %v274_v3  ;;  %vm284_vm5 = vcmp.eq.f32.partialorder %v274_v3, 0.0 }
 0x220   : > { %v428_v4 = vpop.eup %427 }
 0x221   : > { %v276_v5 = vmul.f32 %v428_v4, %v274_v3 }
 0x223   : > { %v277_v6 = vmul.f32 %v428_v4, %v276_v5 }
 0x225   : > { %v278_v7 = vmul.f32 0.5, %v277_v6 }
 0x227   : > { %v279_v8 = vsub.f32 1.5, %v278_v7 }
 0x229   : > { %v280_v9 = vmul.f32 %v428_v4, %v279_v8 }
 0x22b   : > { %v281_v10 = vmul.f32 %v280_v9, %v274_v3 }
 0x22d   : > { %v283_v12 = vsel %vm282_vm4, %v274_v3, %v281_v10 }
 0x22e   : > { %v286_v13 = vsel %vm284_vm5, %v285_v11, %v283_v12 }
 0x22f   : > { %411 = vpush %v286_v13 }
 0x260   : > { %s412_s27 = spop %411 }
 0x261   : > { %s288_s28 = sadd.f32 1e-08, %s412_s27 }
 0x263   : > { %v289_v14 = vstv %s288_s28 }
 0x264   : > { %429 = vrcp.f32 %v289_v14  ;;  %v301_v18 = vand.u32 2147483648, %v289_v14  ;;  %v299_v20 = vand.u32 2147483647, %v289_v14  ;;  %vm295_vm7 = vweird.f32 %v289_v14 }
 0x266   : > { %v302_v22 = vor.u32 1.1754944e-38, %v301_v18  ;;  %vm300_vm9 = vcmp.eq.f32.partialorder %v299_v20, 8.507059e+37 }
 0x26a   : > { %v430_v15 = vpop.eup %429 }
 0x26b   : > { %v291_v16 = vmul.f32 %v430_v15, %v289_v14  ;;  %vm296_vm6 = vweird.f32 %v430_v15 }
 0x26c   : > { %vm297_vm8 = vmor %vm295_vm7, %vm296_vm6 }
 0x26d   : > { %v292_v17 = vsub.f32 1.0, %v291_v16 }
 0x26f   : > { %v293_v19 = vmul.f32 %v430_v15, %v292_v17 }
 0x271   : > { %v294_v21 = vadd.f32 %v430_v15, %v293_v19 }
 0x273   : > { %v298_v23 = vsel %vm297_vm8, %v430_v15, %v294_v21 }
 0x274   : > { %v303_v24 = vsel %vm300_vm9, %v302_v22, %v298_v23 }
 0x275   : > { %v304_v25 = vmul.f32 %v303_v24, %v520_v46  ;;  %v305_v26 = vmul.f32 %v303_v24, %v522_v47 }
 0x277   : > { %306 = vst.msk [vmem:[%s143_s4] sm:$0xff] %vm226_vm1, %v304_v25 }
 0x278   : > { %307 = vst.msk [vmem:[%s143_s4 + $0x8] sm:$0xff] %vm226_vm1, %v305_v26 }
 0x279 PF: > { %s12_s9 = sadd.s32 1, %s437_s9  }
 0x27a   : > { %p9_p4 = scmp.ge.s32.totalorder %s12_s9, 4  }
 0x27c   :  { %11 = sbr.rel (!%p9_p4) target bundleno = 1 (0x1), region = 59 }

// kernel: model_forward.5
= control target key start
LH: loop header
LB: loop body
LE: loop exit
PB: predicated region body
PF: predicated region fallthrough
CT: control target
= control target key end

     0   :  { %s1770_s19 = smov 0   ;;  %s2184_s0 = inlined_call_operand.vmem [shape: f32[2,16,32], index: 0, kind: input, shape index: {}]   ;;  %s2185_s1 = inlined_call_operand.vmem [shape: f32[16,33], index: 1, kind: input, shape index: {}]   ;;  %s2186_s2 = inlined_call_operand.vmem [shape: f32[65,32], index: 2, kind: input, shape index: {}]   ;;  %s2187_s3 = inlined_call_operand.vmem [shape: f32[1,32], index: 3, kind: input, shape index: {}]   ;;  %s2188_s4 = inlined_call_operand.vmem [shape: f32[5,3,32,32], index: 4, kind: input, shape index: {}]   ;;  %s2189_s5 = inlined_call_operand.vmem [shape: f32[5,1,32], index: 5, kind: input, shape index: {}]   ;;  %s2190_s6 = inlined_call_operand.vmem [shape: f32[5,32,32], index: 6, kind: input, shape index: {}]   ;;  %s2191_s7 = inlined_call_operand.vmem [shape: f32[5,1,32], index: 7, kind: input, shape index: {}]   ;;  %s2192_s8 = inlined_call_operand.vmem [shape: f32[32,1], index: 8, kind: input, shape index: {}]   ;;  %s2193_s9 = inlined_call_operand.<no memory space> [shape: f32[1,1], index: 9, kind: input, shape index: {}]   ;;  %s2194_s10 = inlined_call_operand.vmem [shape: f32[2,16,32], index: 10, kind: output, shape index: {0}]   ;;  %s2195_s11 = inlined_call_operand.vmem [shape: f32[2,16,1], index: 11, kind: output, shape index: {1}]  }
   0x1   :  { %v17_v0 = vstv %s2193_s9 }
   0x2   :  { %18 = vst [vmem:[#allocation3] sm:$0x1] %v17_v0 }
   0x3 LB: > { %s1510_s20 = sadd.s32 4294967295, %s1701_s19   ;;  %p1514_p0 = scmp.ge.s32.totalorder %s1701_s19, 1  ;;  %s1701_s19 = sphi %s1770_s19, %s24_s19  }
   0x4   : > { %p342_p1 = scmp.lt.s32.totalorder %s1701_s19, 3 }
   0x6   : > { %p343_p2 = pnand %p1514_p0, %p342_p1 }
   0x7   : > { %p387_p3 = scmp.lt.s32.totalorder (!%p343_p2), %s1510_s20, 1 }
   0x8   : > { %346 = sbr.rel (%p343_p2) target bundleno = 2381 (0x94d), region = 60 }
   0xd   : > { %v414_v1 = vld [vmem:[%s2186_s2 + $0x40] sm:$0x1]  ;;  %vm422_vm0 = vcmask 1040384   ;;  %v413_v2 = vld [vmem:[%s2186_s2 + $0x38] sm:$0xff]  ;;  %v406_v4 = vld [vmem:[%s2186_s2 + $0x10] sm:$0xff]  ;;  %s2197_s20 = smov (!%p387_p3, %s1510_s20), 1 }
   0xe   : > { %v407_v3 = vld [vmem:[%s2186_s2 + $0x18] sm:$0xff]  ;;  %1521 = vmatpush.msk.msra.mxu0 %vm422_vm0, %v414_v1  ;;  %v412_v5 = vld [vmem:[%s2186_s2 + $0x30] sm:$0xff]  ;;  %v405_v6 = vld [vmem:[%s2186_s2 + $0x8] sm:$0xff]  ;;  %vm449_vm1 = vcmask 261120   ;;  %s1808_s9 = sshll.u32 %s2197_s20, 4  ;;  %vm415_vm2 = vcmask 269312  }
   0xf   : > { %468 = vmatpush.msra.mxu1 %v407_v3  ;;  %1641 = vmatpush.msra.mxu2 %v407_v3  ;;  %v411_v7 = vld [vmem:[%s2186_s2 + $0x28] sm:$0xff]  ;;  %v404_v8 = vld [vmem:[%s2186_s2] sm:$0xff]  ;;  %s391_s25 = scalar_lea.vmem %s2184_s0, %s1808_s9  ;;  %v1529_v14 = vld [vmem:[%s2188_s4 + $0x38] sm:$0xff]  ;;  %v1703_v17 = vmov 0.0  }
  0x10   : > { %438 = vmatpush.msra.mxu0 %v413_v2  ;;  %v410_v9 = vld [vmem:[%s2186_s2 + $0x20] sm:$0xff]  ;;  %v403_v12 = vld [vmem:[%s391_s25 + $0x8] sm:$0xff]  ;;  %v504_v15 = vld [vmem:[%s2188_s4 + $0x18] sm:$0xff]  ;;  %488 = vst.msk [vmem:[#allocation2 + $0x18] sm:$0xff] %vm449_vm1, %v1703_v17 }
  0x11   : > { %469 = vmatpush.msra.mxu1 %v406_v4  ;;  %1642 = vmatpush.msra.mxu2 %v406_v4  ;;  %v408_v10 = vld [vmem:[%s2185_s1] sm:$0xff]  ;;  %v409_v13 = vld [vmem:[%s2185_s1 + $0x8] sm:$0xff]  ;;  %v1528_v16 = vld [vmem:[%s2188_s4 + $0x30] sm:$0xff]  ;;  %489 = vst.msk [vmem:[#allocation2 + $0x20] sm:$0xff] %vm449_vm1, %v1703_v17 }
  0x12   : > { %439 = vmatpush.msra.mxu0 %v412_v5  ;;  %v402_v11 = vld [vmem:[%s391_s25] sm:$0xff]  ;;  %557 = vmatpush.msra.mxu3 %v504_v15  ;;  %v503_v18 = vld [vmem:[%s2188_s4 + $0x10] sm:$0xff]  ;;  %v1527_v19 = vld [vmem:[%s2188_s4 + $0x28] sm:$0xff]  ;;  %487 = vst.msk [vmem:[#allocation2 + $0x10] sm:$0xff] %vm449_vm1, %v1703_v17 }
  0x13   : > { %470 = vmatpush.msra.mxu1 %v405_v6  ;;  %1643 = vmatpush.msra.mxu2 %v405_v6  ;;  %v502_v20 = vld [vmem:[%s2188_s4 + $0x8] sm:$0xff]  ;;  %490 = vst.msk [vmem:[#allocation2 + $0x28] sm:$0xff] %vm449_vm1, %v1703_v17  ;;  %v1526_v21 = vld [vmem:[%s2188_s4 + $0x20] sm:$0xff]  ;;  %v1537_v23 = vld [vmem:[%s2188_s4 + $0x58] sm:$0xff] }
  0x14   : > { %440 = vmatpush.msra.mxu0 %v411_v7  ;;  %558 = vmatpush.msra.mxu3 %v503_v18  ;;  %v501_v22 = vld [vmem:[%s2188_s4] sm:$0xff]  ;;  %491 = vst.msk [vmem:[#allocation2 + $0x30] sm:$0xff] %vm449_vm1, %v1703_v17  ;;  %v1536_v24 = vld [vmem:[%s2188_s4 + $0x50] sm:$0xff]  ;;  %v1535_v25 = vld [vmem:[%s2188_s4 + $0x48] sm:$0xff] }
  0x15   : > { %471 = vmatpush.msra.mxu1 %v404_v8  ;;  %1644 = vmatpush.msra.mxu2 %v404_v8  ;;  %v1534_v26 = vld [vmem:[%s2188_s4 + $0x40] sm:$0xff]  ;;  %v615_v28 = vld [vmem:[%s2190_s6 + $0x18] sm:$0xff]  ;;  %v614_v29 = vld [vmem:[%s2190_s6 + $0x10] sm:$0xff] }
  0x16   : > { %1524 = vmatmul.msk.f32.vlgmr.msra.gmra.mxu1 %vm449_vm1, %v402_v11  ;;  %441 = vmatpush.msra.mxu0 %v410_v9  ;;  %v1669_v30 = vld [vmem:[%s2187_s3] ss:$0 sm:$0xff]  ;;  %v613_v32 = vld [vmem:[%s2190_s6 + $0x8] sm:$0xff]  ;;  %v1549_v59 = vld [vmem:[%s2188_s4 + $0x98] sm:$0xff] }
  0x17   : > { %1525 = vmatmul.msk.f32.vlgmr.msra.gmra.mxu2 %vm449_vm1, %v403_v12  ;;  %1522 = vmatmul.msk.f32.vlgmr.msra.gmra.mxu0 %vm415_vm2, %v408_v10  ;;  %v612_v45 = vld [vmem:[%s2190_s6] sm:$0xff]  ;;  %v1548_v60 = vld [vmem:[%s2188_s4 + $0x90] sm:$0xff]  ;;  %v1545_v61 = vld [vmem:[%s2188_s4 + $0x78] sm:$0xff] }
  0x18   : > { %528 = vmatpush.msrb.mxu2 %v1529_v14  ;;  %559 = vmatpush.msra.mxu3 %v502_v20  ;;  %v1670_v49 = vld [vmem:[%s2189_s5] ss:$0 sm:$0xff]  ;;  %v1544_v62 = vld [vmem:[%s2188_s4 + $0x70] sm:$0xff]  ;;  %v1547_v63 = vld [vmem:[%s2188_s4 + $0x88] sm:$0xff] }
  0x19   : > { %593 = vmatpush.msrb.mxu1 %v1537_v23  ;;  %720 = vmatpush.msrb.mxu0 %v1545_v61  ;;  %v1543_v0 = vld [vmem:[%s2188_s4 + $0x68] sm:$0xff]  ;;  %v1546_v1 = vld [vmem:[%s2188_s4 + $0x80] sm:$0xff]  ;;  %v1557_v3 = vld [vmem:[%s2188_s4 + $0xb8] sm:$0xff] }
  0x1a   : > { %529 = vmatpush.msrb.mxu2 %v1528_v16  ;;  %560 = vmatpush.msra.mxu3 %v501_v22  ;;  %v1542_v2 = vld [vmem:[%s2188_s4 + $0x60] sm:$0xff]  ;;  %v1556_v4 = vld [vmem:[%s2188_s4 + $0xb0] sm:$0xff]  ;;  %v1555_v5 = vld [vmem:[%s2188_s4 + $0xa8] sm:$0xff] }
  0x1b   : > { %594 = vmatpush.msrb.mxu1 %v1536_v24  ;;  %721 = vmatpush.msrb.mxu0 %v1544_v62  ;;  %v1554_v6 = vld [vmem:[%s2188_s4 + $0xa0] sm:$0xff]  ;;  %v1564_v10 = vld [vmem:[%s2190_s6 + $0x38] sm:$0xff] }
  0x1c   : > { %530 = vmatpush.msrb.mxu2 %v1527_v19  ;;  %691 = vmatpush.msrb.mxu3 %v1549_v59  ;;  %v1671_v7 = vld [vmem:[%s2191_s7] ss:$0 sm:$0xff] }
  0x1d   : > { %595 = vmatpush.msrb.mxu1 %v1535_v25  ;;  %722 = vmatpush.msrb.mxu0 %v1543_v0  ;;  %v1563_v25 = vld [vmem:[%s2190_s6 + $0x30] sm:$0xff] }
  0x1e   : > { %531 = vmatpush.msrb.mxu2 %v1526_v21  ;;  %692 = vmatpush.msrb.mxu3 %v1548_v60 }
  0x1f   : > { %1523 = vmatmul.msk.f32.gmra.mxu0 %vm415_vm2, %v409_v13  ;;  %596 = vmatpush.msrb.mxu1 %v1534_v26  ;;  %v1562_v26 = vld [vmem:[%s2190_s6 + $0x28] sm:$0xff] }
  0x20   : > { %638 = vmatpush.msra.mxu2 %v615_v28  ;;  %693 = vmatpush.msrb.mxu3 %v1547_v63 }
  0x21   : > { %723 = vmatpush.msrb.mxu0 %v1542_v2  ;;  %756 = vmatpush.msra.mxu1 %v1557_v3 }
  0x22   : > { %639 = vmatpush.msra.mxu2 %v614_v29  ;;  %694 = vmatpush.msrb.mxu3 %v1546_v1 }
  0x23   : > { %757 = vmatpush.msra.mxu1 %v1556_v4 }
  0x24   : > { %640 = vmatpush.msra.mxu2 %v613_v32 }
  0x25   : > { %758 = vmatpush.msra.mxu1 %v1555_v5  ;;  %v898_v5 = vld [vmem:[#allocation2 + $0x2c] sm:$0xff] }
  0x26   : > { %641 = vmatpush.msra.mxu2 %v612_v45  ;;  %v827_v45 = vld [vmem:[#allocation2 + $0x12] sm:$0xff] }
  0x27   : > { %759 = vmatpush.msra.mxu1 %v1554_v6  ;;  %v1590_v6 = vld [vmem:[%s2190_s6 + $0x58] sm:$0xff] }
  0x93   : > { %v473_v27 = vpop.f32.mrf.mxu1 }
  0x94   : > { %v443_v31 = vpop.f32.mrf.mxu0 }
  0x95   : > { %v474_v33 = vadd.f32 %v473_v27, %v443_v31  ;;  %v1561_v27 = vld [vmem:[%s2190_s6 + $0x20] sm:$0xff] }
  0x96   : > { %v1672_v31 = vld [vmem:[%s2189_s5 + $0x1] ss:$0 sm:$0xff] }
  0x97   : > { %v483_v34 = vadd.f32 %v1669_v30, %v474_v33 }
  0x99   : > { %495 = vst.msk [vmem:[#allocation2 + $0x1b] sm:$0xff] %vm449_vm1, %v483_v34 }
  0x9a   : > { %v476_v35 = vpop.f32.mrf.mxu2 }
  0x9c   : > { %v446_v36 = vpop.f32.mrf.mxu0 }
  0x9d   : > { %v477_v37 = vadd.f32 %v476_v35, %v446_v36 }
  0x9f   : > { %v484_v38 = vadd.f32 %v1669_v30, %v477_v37 }
  0xa0   : > { %v497_v39 = vld [vmem:[#allocation2 + $0x1b] sm:$0xff] }
  0xa1   : > { %v499_v40 = vld [vmem:[#allocation2 + $0x1a] sm:$0xff]  ;;  %496 = vst.msk [vmem:[#allocation2 + $0x23] sm:$0xff] %vm449_vm1, %v484_v38  ;;  %1530 = vmatmul.msk.f32.vlgmr.msrb.gmra.mxu2 %vm449_vm1, %v497_v39 }
  0xa2   : > { %1532 = vmatmul.msk.f32.vlgmr.msra.gmra.mxu3 %vm449_vm1, %v499_v40  ;;  %804 = vmatpush.msrb.mxu2 %v1564_v10 }
  0xa4   : > { %805 = vmatpush.msrb.mxu2 %v1563_v25  ;;  %v1595_v25 = vld [vmem:[%s2188_s4 + $0x148] sm:$0xff] }
  0xa6   : > { %806 = vmatpush.msrb.mxu2 %v1562_v26  ;;  %v1594_v26 = vld [vmem:[%s2188_s4 + $0x140] sm:$0xff] }
  0xa8   : > { %v498_v41 = vld [vmem:[#allocation2 + $0x23] sm:$0xff]  ;;  %807 = vmatpush.msrb.mxu2 %v1561_v27  ;;  %v1604_v27 = vld [vmem:[%s2190_s6 + $0x78] sm:$0xff] }
  0xa9   : > { %v500_v42 = vld [vmem:[#allocation2 + $0x22] sm:$0xff]  ;;  %1531 = vmatmul.msk.f32.gmra.mxu2 %vm449_vm1, %v498_v41 }
  0xaa   : > { %v568_v43 = vld [vmem:[#allocation2 + $0x1c] sm:$0xff]  ;;  %1533 = vmatmul.msk.f32.gmra.mxu3 %vm449_vm1, %v500_v42  ;;  %v569_v44 = vld [vmem:[#allocation2 + $0x24] sm:$0xff]  ;;  %v1570_v42 = vld [vmem:[%s2188_s4 + $0xd0] sm:$0xff] }
  0xab   : > { %1538 = vmatmul.msk.f32.vlgmr.msrb.gmra.mxu1 %vm449_vm1, %v568_v43  ;;  %v1569_v43 = vld [vmem:[%s2188_s4 + $0xc8] sm:$0xff] }
  0xb3   : > { %1539 = vmatmul.msk.f32.gmra.mxu1 %vm449_vm1, %v569_v44  ;;  %v1568_v44 = vld [vmem:[%s2188_s4 + $0xc0] sm:$0xff] }
 0x124   : > { %v533_v46 = vpop.f32.mrf.mxu2 }
 0x125   : > { %v562_v47 = vpop.f32.mrf.mxu3 }
 0x126   : > { %v563_v48 = vadd.f32 %v562_v47, %v533_v46  ;;  %v1575_v46 = vld [vmem:[%s2188_s4 + $0xf8] sm:$0xff]  ;;  %v1574_v47 = vld [vmem:[%s2188_s4 + $0xf0] sm:$0xff] }
 0x127   : > { %857 = vmatpush.msra.mxu3 %v1575_v46 }
 0x128   : > { %v598_v50 = vpop.f32.mrf.mxu1 }
 0x129   : > { %v604_v51 = vadd.f32 %v598_v50, %v563_v48  ;;  %858 = vmatpush.msra.mxu3 %v1574_v47  ;;  %v1573_v48 = vld [vmem:[%s2188_s4 + $0xe8] sm:$0xff]  ;;  %v1583_v50 = vld [vmem:[%s2188_s4 + $0x118] sm:$0xff] }
 0x12a   : > { %922 = vmatpush.msrb.mxu1 %v1583_v50  ;;  %v1615_v50 = vld [vmem:[%s2188_s4 + $0x1b8] sm:$0xff] }
 0x12b   : > { %v610_v52 = vadd.f32 %v1670_v49, %v604_v51  ;;  %859 = vmatpush.msra.mxu3 %v1573_v48  ;;  %v1582_v51 = vld [vmem:[%s2188_s4 + $0x110] sm:$0xff] }
 0x12c   : > { %v536_v53 = vpop.f32.mrf.mxu2  ;;  %923 = vmatpush.msrb.mxu1 %v1582_v51  ;;  %v1610_v51 = vld [vmem:[%s2188_s4 + $0x190] sm:$0xff] }
 0x12d   : > { %1540 = vmatmul.msk.f32.vlgmr.msra.gmra.mxu2 %vm449_vm1, %v610_v52  ;;  %v565_v54 = vpop.f32.mrf.mxu3  ;;  %v1581_v52 = vld [vmem:[%s2188_s4 + $0x108] sm:$0xff] }
 0x12e   : > { %v566_v55 = vadd.f32 %v565_v54, %v536_v53  ;;  %v1580_v53 = vld [vmem:[%s2188_s4 + $0x100] sm:$0xff]  ;;  %924 = vmatpush.msrb.mxu1 %v1581_v52  ;;  %970 = vmatpush.msra.mxu2 %v1590_v6  ;;  %v1614_v52 = vld [vmem:[%s2188_s4 + $0x1b0] sm:$0xff] }
 0x12f   : > { %v1673_v54 = vld [vmem:[%s2191_s7 + $0x1] ss:$0 sm:$0xff] }
 0x130   : > { %v601_v56 = vpop.f32.mrf.mxu1  ;;  %925 = vmatpush.msrb.mxu1 %v1580_v53  ;;  %v1613_v53 = vld [vmem:[%s2188_s4 + $0x1a8] sm:$0xff] }
 0x131   : > { %v605_v57 = vadd.f32 %v601_v56, %v566_v55 }
 0x133   : > { %v611_v58 = vadd.f32 %v1670_v49, %v605_v57  ;;  %v1572_v49 = vld [vmem:[%s2188_s4 + $0xe0] sm:$0xff] }
 0x134   : > { %860 = vmatpush.msra.mxu3 %v1572_v49  ;;  %v1611_v49 = vld [vmem:[%s2188_s4 + $0x198] sm:$0xff] }
 0x135   : > { %1541 = vmatmul.msk.f32.gmra.mxu2 %vm449_vm1, %v611_v58 }
 0x1b0   : > { %v643_v8 = vpop.f32.mrf.mxu2 }
 0x1b1   : > { %v644_v9 = vadd.f32 %v1671_v7, %v643_v8  ;;  %v1588_v8 = vld [vmem:[%s2190_s6 + $0x48] sm:$0xff] }
 0x1b3   : > { %v649_v11 = vadd.f32 %v644_v9, %v497_v39  ;;  %v1587_v9 = vld [vmem:[%s2190_s6 + $0x40] sm:$0xff] }
 0x1b5   : > { %vm651_vm3 = vcmp.gt.f32.partialorder %v649_v11, 0.0  ;;  %v653_v12 = vmul.f32 0.2, %v649_v11 }
 0x1b7   : > { %v655_v13 = vsel %vm651_vm3, %v649_v11, %v653_v12 }
 0x1b8   : > { %657 = vst.msk [vmem:[#allocation2 + $0x1b] sm:$0xff] %vm449_vm1, %v655_v13  ;;  %v646_v14 = vpop.f32.mrf.mxu2  ;;  %v1674_v13 = vld [vmem:[%s2189_s5 + $0x2] ss:$0 sm:$0xff] }
 0x1b9   : > { %v647_v15 = vadd.f32 %v1671_v7, %v646_v14  ;;  %v1589_v7 = vld [vmem:[%s2190_s6 + $0x50] sm:$0xff] }
 0x1ba   : > { %971 = vmatpush.msra.mxu2 %v1589_v7 }
 0x1bb   : > { %v650_v16 = vadd.f32 %v647_v15, %v498_v41  ;;  %v1571_v41 = vld [vmem:[%s2188_s4 + $0xd8] sm:$0xff] }
 0x1bc   : > { %886 = vmatpush.msra.mxu0 %v1571_v41  ;;  %972 = vmatpush.msra.mxu2 %v1588_v8 }
 0x1bd   : > { %vm652_vm4 = vcmp.gt.f32.partialorder %v650_v16, 0.0  ;;  %v654_v17 = vmul.f32 0.2, %v650_v16 }
 0x1be   : > { %887 = vmatpush.msra.mxu0 %v1570_v42  ;;  %973 = vmatpush.msra.mxu2 %v1587_v9 }
 0x1bf   : > { %v656_v18 = vsel %vm652_vm4, %v650_v16, %v654_v17  ;;  %v1931_v19 = vld [vmem:[#allocation2 + $0x1b] sm:$0xff] }
 0x1c0   : > { %v661_v20 = vld [vmem:[#allocation2 + $0x18] sm:$0xff]  ;;  %658 = vst.msk [vmem:[#allocation2 + $0x23] sm:$0xff] %vm449_vm1, %v656_v18  ;;  %1550 = vmatmul.msk.f32.vlgmr.msrb.gmra.mxu3 %vm449_vm1, %v1931_v19  ;;  %888 = vmatpush.msra.mxu0 %v1569_v43 }
 0x1c1   : > { %1552 = vmatmul.msk.f32.vlgmr.msrb.gmra.mxu0 %vm449_vm1, %v661_v20 }
 0x1c2   : > { %889 = vmatpush.msra.mxu0 %v1568_v44  ;;  %v1676_v44 = vld [vmem:[%s2189_s5 + $0x3] ss:$0 sm:$0xff] }
 0x1c4   : > { %1060 = vmatpush.msrb.mxu0 %v1604_v27 }
 0x1c7   : > { %v1937_v21 = vld [vmem:[#allocation2 + $0x23] sm:$0xff] }
 0x1c8   : > { %v662_v22 = vld [vmem:[#allocation2 + $0x20] sm:$0xff]  ;;  %1551 = vmatmul.msk.f32.gmra.mxu3 %vm449_vm1, %v1937_v21 }
 0x1c9   : > { %v731_v23 = vld [vmem:[#allocation2 + $0x1e] sm:$0xff]  ;;  %1553 = vmatmul.msk.f32.gmra.mxu0 %vm449_vm1, %v662_v22  ;;  %v732_v24 = vld [vmem:[#allocation2 + $0x26] sm:$0xff] }
 0x1ca   : > { %1558 = vmatmul.msk.f32.vlgmr.msra.gmra.mxu1 %vm449_vm1, %v731_v23  ;;  %v1597_v23 = vld [vmem:[%s2188_s4 + $0x158] sm:$0xff] }
 0x1cb   : > { %1021 = vmatpush.msrb.mxu3 %v1597_v23  ;;  %1113 = vmatpush.msra.mxu1 %v1615_v50 }
 0x1cd   : > { %1114 = vmatpush.msra.mxu1 %v1614_v52 }
 0x1cf   : > { %1115 = vmatpush.msra.mxu1 %v1613_v53 }
 0x1d1   : > { %1578 = vmatmul.msk.f32.vlgmr.msra.gmra.mxu0 %vm449_vm1, %v827_v45 }
 0x1d2   : > { %1559 = vmatmul.msk.f32.gmra.mxu1 %vm449_vm1, %v732_v24  ;;  %v1596_v24 = vld [vmem:[%s2188_s4 + $0x150] sm:$0xff] }
 0x1d3   : > { %1022 = vmatpush.msrb.mxu3 %v1596_v24 }
 0x1d5   : > { %1023 = vmatpush.msrb.mxu3 %v1595_v25 }
 0x1d7   : > { %1024 = vmatpush.msrb.mxu3 %v1594_v26 }
 0x23e   : > { %v725_v28 = vpop.f32.mrf.mxu0 }
 0x243   : > { %v696_v29 = vpop.f32.mrf.mxu3 }
 0x244   : > { %v726_v30 = vadd.f32 %v725_v28, %v696_v29  ;;  %v1603_v28 = vld [vmem:[%s2190_s6 + $0x70] sm:$0xff]  ;;  %v1602_v29 = vld [vmem:[%s2190_s6 + $0x68] sm:$0xff] }
 0x245   : > { %1061 = vmatpush.msrb.mxu0 %v1603_v28 }
 0x246   : > { %v728_v35 = vpop.f32.mrf.mxu0 }
 0x247   : > { %v761_v32 = vpop.f32.mrf.mxu1  ;;  %1062 = vmatpush.msrb.mxu0 %v1602_v29 }
 0x248   : > { %v767_v33 = vadd.f32 %v761_v32, %v726_v30  ;;  %v1601_v30 = vld [vmem:[%s2190_s6 + $0x60] sm:$0xff] }
 0x249   : > { %1063 = vmatpush.msrb.mxu0 %v1601_v30 }
 0x24a   : > { %v774_v34 = vadd.f32 %v1672_v31, %v767_v33 }
 0x24b   : > { %v699_v36 = vpop.f32.mrf.mxu3 }
 0x24c   : > { %1566 = vmatmul.msk.f32.vlgmr.msrb.gmra.mxu2 %vm449_vm1, %v774_v34  ;;  %v729_v37 = vadd.f32 %v728_v35, %v699_v36 }
 0x24d   : > { %1142 = vmatpush.msrb.mxu2 %v1611_v49 }
 0x24e   : > { %v891_v10 = vpop.f32.mrf.mxu0 }
 0x24f   : > { %v764_v38 = vpop.f32.mrf.mxu1  ;;  %1143 = vmatpush.msrb.mxu2 %v1610_v51 }
 0x250   : > { %v768_v39 = vadd.f32 %v764_v38, %v729_v37 }
 0x252   : > { %v775_v40 = vadd.f32 %v1672_v31, %v768_v39  ;;  %v1675_v31 = vld [vmem:[%s2191_s7 + $0x2] ss:$0 sm:$0xff] }
 0x254   : > { %1567 = vmatmul.msk.f32.gmra.mxu2 %vm449_vm1, %v775_v40 }
 0x2cf   : > { %v809_v55 = vpop.f32.mrf.mxu2 }
 0x2d0   : > { %v810_v56 = vadd.f32 %v1673_v54, %v809_v55  ;;  %v1612_v55 = vld [vmem:[%s2188_s4 + $0x1a0] sm:$0xff] }
 0x2d1   : > { %1116 = vmatpush.msra.mxu1 %v1612_v55 }
 0x2d2   : > { %v815_v57 = vadd.f32 %v810_v56, %v1931_v19  ;;  %v1608_v56 = vld [vmem:[%s2188_s4 + $0x180] sm:$0xff] }
 0x2d4   : > { %vm817_vm5 = vcmp.gt.f32.partialorder %v815_v57, 0.0  ;;  %v819_v58 = vmul.f32 0.2, %v815_v57 }
 0x2d6   : > { %v821_v59 = vsel %vm817_vm5, %v815_v57, %v819_v58  ;;  %v1623_v57 = vld [vmem:[%s2188_s4 + $0x1d8] sm:$0xff]  ;;  %v1622_v58 = vld [vmem:[%s2188_s4 + $0x1d0] sm:$0xff] }
 0x2d7   : > { %823 = vst.msk [vmem:[#allocation2 + $0x1b] sm:$0xff] %vm449_vm1, %v821_v59  ;;  %v812_v60 = vpop.f32.mrf.mxu2  ;;  %v1621_v59 = vld [vmem:[%s2188_s4 + $0x1c8] sm:$0xff] }
 0x2d8   : > { %v813_v61 = vadd.f32 %v1673_v54, %v812_v60  ;;  %v1609_v54 = vld [vmem:[%s2188_s4 + $0x188] sm:$0xff]  ;;  %v1620_v60 = vld [vmem:[%s2188_s4 + $0x1c0] sm:$0xff] }
 0x2d9   : > { %1144 = vmatpush.msrb.mxu2 %v1609_v54 }
 0x2da   : > { %v816_v62 = vadd.f32 %v813_v61, %v1937_v21  ;;  %v1677_v61 = vld [vmem:[%s2191_s7 + $0x3] ss:$0 sm:$0xff] }
 0x2db   : > { %1145 = vmatpush.msrb.mxu2 %v1608_v56 }
 0x2dc   : > { %vm818_vm6 = vcmp.gt.f32.partialorder %v816_v62, 0.0  ;;  %v820_v63 = vmul.f32 0.2, %v816_v62 }
 0x2de   : > { %v822_v0 = vsel %vm818_vm6, %v816_v62, %v820_v63  ;;  %v825_v1 = vld [vmem:[#allocation2 + $0x1b] sm:$0xff]  ;;  %vm1365_vm6 = vcmask 7168  }
 0x2df   : > { %v828_v2 = vld [vmem:[#allocation2 + $0x1a] sm:$0xff]  ;;  %824 = vst.msk [vmem:[#allocation2 + $0x23] sm:$0xff] %vm449_vm1, %v822_v0  ;;  %1576 = vmatmul.msk.f32.vlgmr.msra.gmra.mxu3 %vm449_vm1, %v825_v1 }
 0x2e0   : > { %1579 = vmatmul.msk.f32.gmra.mxu0 %vm449_vm1, %v828_v2  ;;  %1178 = vmatpush.msra.mxu3 %v1623_v57 }
 0x2e2   : > { %1179 = vmatpush.msra.mxu3 %v1622_v58 }
 0x2e4   : > { %1180 = vmatpush.msra.mxu3 %v1621_v59 }
 0x2e6   : > { %v826_v3 = vld [vmem:[#allocation2 + $0x23] sm:$0xff]  ;;  %1181 = vmatpush.msra.mxu3 %v1620_v60 }
 0x2e7   : > { %v897_v4 = vld [vmem:[#allocation2 + $0x24] sm:$0xff]  ;;  %1577 = vmatmul.msk.f32.gmra.mxu3 %vm449_vm1, %v826_v3 }
 0x2e8   : > { %1584 = vmatmul.msk.f32.vlgmr.msrb.gmra.mxu1 %vm449_vm1, %v897_v4 }
 0x2f0   : > { %1585 = vmatmul.msk.f32.gmra.mxu1 %vm449_vm1, %v898_v5 }
 0x35d   : > { %v894_v17 = vpop.f32.mrf.mxu0 }
 0x362   : > { %v862_v11 = vpop.f32.mrf.mxu3 }
 0x363   : > { %v892_v12 = vadd.f32 %v891_v10, %v862_v11 }
 0x365   : > { %v927_v14 = vpop.f32.mrf.mxu1 }
 0x366   : > { %v933_v15 = vadd.f32 %v927_v14, %v892_v12  ;;  %v1630_v14 = vld [vmem:[%s2190_s6 + $0x98] sm:$0xff] }
 0x367   : > { %1226 = vmatpush.msra.mxu0 %v1630_v14 }
 0x368   : > { %v940_v16 = vadd.f32 %v1674_v13, %v933_v15  ;;  %v1629_v15 = vld [vmem:[%s2190_s6 + $0x90] sm:$0xff] }
 0x369   : > { %1227 = vmatpush.msra.mxu0 %v1629_v15 }
 0x36a   : > { %1592 = vmatmul.msk.f32.vlgmr.msra.gmra.mxu2 %vm449_vm1, %v940_v16  ;;  %v865_v18 = vpop.f32.mrf.mxu3  ;;  %v1628_v16 = vld [vmem:[%s2190_s6 + $0x88] sm:$0xff] }
 0x36b   : > { %v895_v19 = vadd.f32 %v894_v17, %v865_v18  ;;  %1228 = vmatpush.msra.mxu0 %v1628_v16  ;;  %v1627_v17 = vld [vmem:[%s2190_s6 + $0x80] sm:$0xff] }
 0x36d   : > { %v930_v20 = vpop.f32.mrf.mxu1  ;;  %1229 = vmatpush.msra.mxu0 %v1627_v17 }
 0x36e   : > { %v934_v21 = vadd.f32 %v930_v20, %v895_v19 }
 0x370   : > { %v941_v22 = vadd.f32 %v1674_v13, %v934_v21  ;;  %v1678_v21 = vld [vmem:[%s2189_s5 + $0x4] ss:$0 sm:$0xff] }
 0x372   : > { %1593 = vmatmul.msk.f32.gmra.mxu2 %vm449_vm1, %v941_v22 }
 0x3ed   : > { %v975_v32 = vpop.f32.mrf.mxu2 }
 0x3ee   : > { %v976_v33 = vadd.f32 %v1675_v31, %v975_v32 }
 0x3f0   : > { %v981_v34 = vadd.f32 %v976_v33, %v825_v1 }
 0x3f2   : > { %vm983_vm7 = vcmp.gt.f32.partialorder %v981_v34, 0.0  ;;  %v985_v35 = vmul.f32 0.2, %v981_v34 }
 0x3f4   : > { %v987_v36 = vsel %vm983_vm7, %v981_v34, %v985_v35 }
 0x3f5   : > { %989 = vst.msk [vmem:[#allocation2 + $0x1b] sm:$0xff] %vm449_vm1, %v987_v36  ;;  %v978_v37 = vpop.f32.mrf.mxu2 }
 0x3f6   : > { %v979_v38 = vadd.f32 %v1675_v31, %v978_v37  ;;  %v1679_v31 = vld [vmem:[%s2191_s7 + $0x4] ss:$0 sm:$0xff] }
 0x3f8   : > { %v982_v39 = vadd.f32 %v979_v38, %v826_v3 }
 0x3fa   : > { %vm984_vm8 = vcmp.gt.f32.partialorder %v982_v39, 0.0  ;;  %v986_v40 = vmul.f32 0.2, %v982_v39 }
 0x3fc   : > { %v988_v41 = vsel %vm984_vm8, %v982_v39, %v986_v40  ;;  %v991_v42 = vld [vmem:[#allocation2 + $0x1b] sm:$0xff] }
 0x3fd   : > { %990 = vst.msk [vmem:[#allocation2 + $0x23] sm:$0xff] %vm449_vm1, %v988_v41  ;;  %1599 = vmatmul.msk.f32.vlgmr.msrb.gmra.mxu3 %vm449_vm1, %v991_v42 }
 0x404   : > { %v992_v43 = vld [vmem:[#allocation2 + $0x23] sm:$0xff] }
 0x405   : > { %1600 = vmatmul.msk.f32.gmra.mxu3 %vm449_vm1, %v992_v43 }
 0x480   : > { %v1026_v45 = vpop.f32.mrf.mxu3 }
 0x481   : > { %v1027_v46 = vadd.f32 %v1676_v44, %v1026_v45 }
 0x483   : > { %1606 = vmatmul.msk.f32.vlgmr.msrb.gmra.mxu0 %vm449_vm1, %v1027_v46 }
 0x488   : > { %v1029_v47 = vpop.f32.mrf.mxu3 }
 0x489   : > { %v1030_v48 = vadd.f32 %v1676_v44, %v1029_v47  ;;  %v1704_v47 = vmov 512.0  }
 0x48a   : > { %1681 = vrcp.f32 %v1704_v47 }
 0x48b   : > { %1607 = vmatmul.msk.f32.gmra.mxu0 %vm449_vm1, %v1030_v48 }
 0x490   : > { %v1682_v48 = vpop.eup %1681 }
 0x491   : > { %v1262_v49 = vmul.f32 512.0, %v1682_v48  ;;  %vm1266_vm13 = vweird.f32 %v1682_v48 }
 0x493   : > { %v1263_v50 = vsub.f32 1.0, %v1262_v49 }
 0x495   : > { %v1264_v54 = vmul.f32 %v1682_v48, %v1263_v50 }
 0x497   : > { %v1265_v57 = vadd.f32 %v1682_v48, %v1264_v54 }
 0x499   : > { %v1267_v60 = vsel %vm1266_vm13, %v1682_v48, %v1265_v57  ;;  %v1680_v48 = vld [vmem:[#allocation3] ss:$0 sm:$0xff] }
 0x500   : > { %v1065_v62 = vpop.f32.mrf.mxu0 }
 0x501   : > { %v1066_v63 = vadd.f32 %v1677_v61, %v1065_v62 }
 0x503   : > { %v1071_v0 = vadd.f32 %v1066_v63, %v991_v42 }
 0x505   : > { %vm1073_vm9 = vcmp.gt.f32.partialorder %v1071_v0, 0.0  ;;  %v1075_v1 = vmul.f32 0.2, %v1071_v0 }
 0x507   : > { %v1077_v2 = vsel %vm1073_vm9, %v1071_v0, %v1075_v1 }
 0x508   : > { %1079 = vst.msk [vmem:[#allocation2 + $0x1b] sm:$0xff] %vm449_vm1, %v1077_v2  ;;  %v1068_v3 = vpop.f32.mrf.mxu0 }
 0x509   : > { %v1069_v4 = vadd.f32 %v1677_v61, %v1068_v3 }
 0x50b   : > { %v1072_v5 = vadd.f32 %v1069_v4, %v992_v43 }
 0x50d   : > { %vm1074_vm10 = vcmp.gt.f32.partialorder %v1072_v5, 0.0  ;;  %v1076_v6 = vmul.f32 0.2, %v1072_v5 }
 0x50f   : > { %v1078_v7 = vsel %vm1074_vm10, %v1072_v5, %v1076_v6  ;;  %v1081_v8 = vld [vmem:[#allocation2 + $0x1b] sm:$0xff]  ;;  %v1705_v5 = vmov 511.0  }
 0x510   : > { %v1083_v9 = vld [vmem:[#allocation2 + $0x1a] sm:$0xff]  ;;  %1080 = vst.msk [vmem:[#allocation2 + $0x23] sm:$0xff] %vm449_vm1, %v1078_v7  ;;  %1616 = vmatmul.msk.f32.vlgmr.msra.gmra.mxu1 %vm449_vm1, %v1081_v8  ;;  %1683 = vrcp.f32 %v1705_v5 }
 0x511   : > { %1618 = vmatmul.msk.f32.vlgmr.msrb.gmra.mxu2 %vm449_vm1, %v1083_v9 }
 0x516   : > { %v1684_v6 = vpop.eup %1683 }
 0x517   : > { %v1082_v10 = vld [vmem:[#allocation2 + $0x23] sm:$0xff]  ;;  %v1288_v7 = vmul.f32 511.0, %v1684_v6  ;;  %vm1292_vm14 = vweird.f32 %v1684_v6 }
 0x518   : > { %v1084_v11 = vld [vmem:[#allocation2 + $0x22] sm:$0xff]  ;;  %1617 = vmatmul.msk.f32.gmra.mxu1 %vm449_vm1, %v1082_v10 }
 0x519   : > { %v1153_v12 = vld [vmem:[#allocation2 + $0x1c] sm:$0xff]  ;;  %1619 = vmatmul.msk.f32.gmra.mxu2 %vm449_vm1, %v1084_v11  ;;  %v1154_v13 = vld [vmem:[#allocation2 + $0x24] sm:$0xff] }
 0x51a   : > { %1624 = vmatmul.msk.f32.vlgmr.msra.gmra.mxu3 %vm449_vm1, %v1153_v12 }
 0x522   : > { %1625 = vmatmul.msk.f32.gmra.mxu3 %vm449_vm1, %v1154_v13 }
 0x58d   : > { %v1118_v19 = vpop.f32.mrf.mxu1 }
 0x594   : > { %v1147_v18 = vpop.f32.mrf.mxu2 }
 0x595   : > { %v1148_v20 = vadd.f32 %v1147_v18, %v1118_v19  ;;  %v1121_v26 = vpop.f32.mrf.mxu1 }
 0x59c   : > { %v1150_v25 = vpop.f32.mrf.mxu2 }
 0x59d   : > { %v1183_v22 = vpop.f32.mrf.mxu3  ;;  %v1151_v27 = vadd.f32 %v1150_v25, %v1121_v26 }
 0x59e   : > { %v1189_v23 = vadd.f32 %v1183_v22, %v1148_v20 }
 0x5a0   : > { %v1196_v24 = vadd.f32 %v1678_v21, %v1189_v23 }
 0x5a2   : > { %1632 = vmatmul.msk.f32.vlgmr.msra.gmra.mxu0 %vm449_vm1, %v1196_v24 }
 0x5a5   : > { %v1186_v28 = vpop.f32.mrf.mxu3 }
 0x5a6   : > { %v1190_v29 = vadd.f32 %v1186_v28, %v1151_v27 }
 0x5a8   : > { %v1197_v30 = vadd.f32 %v1678_v21, %v1190_v29 }
 0x5aa   : > { %1633 = vmatmul.msk.f32.gmra.mxu0 %vm449_vm1, %v1197_v30  ;;  %v1331_v30 = vld [vmem:[%s2192_s8 + $0x18] sm:$0xff] }
 0x5ab   : > { %1354 = vmatpush.msrb.mxu1 %v1331_v30 }
 0x61f   : > { %v1231_v32 = vpop.f32.mrf.mxu0 }
 0x620   : > { %v1232_v33 = vadd.f32 %v1679_v31, %v1231_v32  ;;  %v1329_v32 = vld [vmem:[%s2192_s8 + $0x8] sm:$0xff] }
 0x622   : > { %v1237_v34 = vadd.f32 %v1232_v33, %v1081_v8  ;;  %v1289_v8 = vsub.f32 1.0, %v1288_v7  ;;  %v1328_v33 = vld [vmem:[%s2192_s8] sm:$0xff] }
 0x624   : > { %vm1239_vm11 = vcmp.gt.f32.partialorder %v1237_v34, 0.0  ;;  %v1241_v35 = vmul.f32 0.2, %v1237_v34  ;;  %v1290_v12 = vmul.f32 %v1684_v6, %v1289_v8 }
 0x626   : > { %v1243_v36 = vsel %vm1239_vm11, %v1237_v34, %v1241_v35  ;;  %v1291_v15 = vadd.f32 %v1684_v6, %v1290_v12 }
 0x627   : > { %1245 = vst.msk [vmem:[#allocation2 + $0x1b] sm:$0xff] %vm449_vm1, %v1243_v36  ;;  %v1234_v37 = vpop.f32.mrf.mxu0 }
 0x628   : > { %v1235_v38 = vadd.f32 %v1679_v31, %v1234_v37  ;;  %v1293_v18 = vsel %vm1292_vm14, %v1684_v6, %v1291_v15  ;;  %v1330_v31 = vld [vmem:[%s2192_s8 + $0x10] sm:$0xff] }
 0x629   : > { %1355 = vmatpush.msrb.mxu1 %v1330_v31 }
 0x62a   : > { %v1238_v39 = vadd.f32 %v1235_v38, %v1082_v10 }
 0x62b   : > { %1356 = vmatpush.msrb.mxu1 %v1329_v32 }
 0x62c   : > { %vm1240_vm12 = vcmp.gt.f32.partialorder %v1238_v39, 0.0  ;;  %v1242_v40 = vmul.f32 0.2, %v1238_v39 }
 0x62d   : > { %1357 = vmatpush.msrb.mxu1 %v1328_v33 }
 0x62e   : > { %v1244_v41 = vsel %vm1240_vm12, %v1238_v39, %v1242_v40  ;;  %v1247_v42 = vld [vmem:[#allocation2 + $0x1b] sm:$0xff] }
 0x62f   : > { %1246 = vst.msk [vmem:[#allocation2 + $0x23] sm:$0xff] %vm449_vm1, %v1244_v41  ;;  %v1249_v44 = vsel %vm449_vm1, %v1247_v42, 0.0 }
 0x636   : > { %v1248_v43 = vld [vmem:[#allocation2 + $0x23] sm:$0xff] }
 0x637   : > { %v1250_v45 = vsel %vm449_vm1, %v1248_v43, 0.0 }
 0x638   : > { %v1251_v46 = vadd.f32 %v1250_v45, %v1249_v44 }
 0x63a   : > { %1252 = vadd.xlane.f32.xlu0 %v1251_v46 }
 0x6ad   : > { %v1253_v51 = vpop.xlane.xlu0 %1252 }
 0x6ae   : > { %v1254_v52 = vrot.slane %v1253_v51, 4 }
 0x6b0   : > { %v1255_v53 = vadd.f32 %v1254_v52, %v1253_v51 }
 0x6b2   : > { %v1256_v55 = vrot.slane %v1255_v53, 2 }
 0x6b4   : > { %v1257_v56 = vadd.f32 %v1256_v55, %v1255_v53 }
 0x6b6   : > { %v1258_v58 = vrot.slane %v1257_v56, 1 }
 0x6b8   : > { %v1259_v59 = vadd.f32 %v1258_v58, %v1257_v56 }
 0x6ba   : > { %1645 = vpush %v1259_v59 }
 0x6bb   : > { %1647 = vpush %v1267_v60  ;;  %v1706_v60 = vmov 0  }
 0x6bc   : > { %1667 = vset.pattern.permute.xlu1 %v1706_v60  ;;  %1668 = vset.pattern.permute.xlu0 %v1706_v60 }
 0x6eb   : > { %s1646_s12 = spop %1645 }
 0x6ec   : > { %s1648_s13 = spop %1647 }
 0x6ed   : > { %s1269_s14 = smul.f32 %s1648_s13, %s1646_s12  ;;  %s401_s12 = scalar_lea.vmem %s2195_s11, %s1808_s9 }
 0x6ef   : > { %v1270_v61 = vstv %s1269_s14 }
 0x6f0   : > { %v2131_v62 = vsub.f32 %v1247_v42, %v1270_v61  ;;  %v2133_v63 = vsub.f32 %v1248_v43, %v1270_v61 }
 0x6f2   : > { %v1273_v0 = vmul.f32 %v2131_v62, %v2131_v62  ;;  %v1274_v1 = vmul.f32 %v2133_v63, %v2133_v63 }
 0x6f4   : > { %v1275_v2 = vsel %vm449_vm1, %v1273_v0, 0.0  ;;  %v1276_v3 = vsel %vm449_vm1, %v1274_v1, 0.0 }
 0x6f5   : > { %v1277_v4 = vadd.f32 %v1276_v3, %v1275_v2 }
 0x6f7   : > { %1278 = vadd.xlane.f32.xlu0 %v1277_v4 }
 0x76a   : > { %v1279_v9 = vpop.xlane.xlu0 %1278 }
 0x76b   : > { %v1280_v10 = vrot.slane %v1279_v9, 4 }
 0x76d   : > { %v1281_v11 = vadd.f32 %v1280_v10, %v1279_v9 }
 0x76f   : > { %v1282_v13 = vrot.slane %v1281_v11, 2 }
 0x771   : > { %v1283_v14 = vadd.f32 %v1282_v13, %v1281_v11 }
 0x773   : > { %v1284_v16 = vrot.slane %v1283_v14, 1 }
 0x775   : > { %v1285_v17 = vadd.f32 %v1284_v16, %v1283_v14 }
 0x777   : > { %1649 = vpush %v1285_v17 }
 0x778   : > { %1651 = vpush %v1293_v18 }
 0x7a8   : > { %s1650_s15 = spop %1649 }
 0x7a9   : > { %s1652_s16 = spop %1651 }
 0x7aa   : > { %s1295_s17 = smul.f32 %s1652_s16, %s1650_s15  ;;  %s396_s15 = scalar_lea.vmem %s2194_s10, %s1808_s9 }
 0x7ac   : > { %v1296_v19 = vstv %s1295_s17 }
 0x7ad   : > { %1685 = vrsqrt.f32 %v1296_v19  ;;  %vm1304_vm15 = vcmp.eq.f32.partialorder %v1296_v19, inf  ;;  %v1307_v27 = vand.u32 2147483648, %v1296_v19  ;;  %vm1306_vm0 = vcmp.eq.f32.partialorder %v1296_v19, 0.0 }
 0x7b3   : > { %v1686_v20 = vpop.eup %1685 }
 0x7b4   : > { %v1298_v21 = vmul.f32 %v1686_v20, %v1296_v19 }
 0x7b6   : > { %v1299_v22 = vmul.f32 %v1686_v20, %v1298_v21 }
 0x7b8   : > { %v1300_v23 = vmul.f32 0.5, %v1299_v22 }
 0x7ba   : > { %v1301_v24 = vsub.f32 1.5, %v1300_v23 }
 0x7bc   : > { %v1302_v25 = vmul.f32 %v1686_v20, %v1301_v24 }
 0x7be   : > { %v1303_v26 = vmul.f32 %v1302_v25, %v1296_v19 }
 0x7c0   : > { %v1305_v28 = vsel %vm1304_vm15, %v1296_v19, %v1303_v26 }
 0x7c1   : > { %v1308_v29 = vsel %vm1306_vm0, %v1307_v27, %v1305_v28 }
 0x7c2   : > { %1653 = vpush %v1308_v29 }
 0x7f3   : > { %s1654_s27 = spop %1653 }
 0x7f4   : > { %s1310_s28 = sadd.f32 1e-08, %s1654_s27 }
 0x7f6   : > { %v1311_v34 = vstv %s1310_s28 }
 0x7f7   : > { %1687 = vrcp.f32 %v1311_v34  ;;  %v1323_v38 = vand.u32 2147483648, %v1311_v34  ;;  %v1321_v40 = vand.u32 2147483647, %v1311_v34  ;;  %vm1317_vm3 = vweird.f32 %v1311_v34 }
 0x7f9   : > { %v1324_v42 = vor.u32 1.1754944e-38, %v1323_v38  ;;  %vm1322_vm5 = vcmp.eq.f32.partialorder %v1321_v40, 8.507059e+37 }
 0x7fd   : > { %v1688_v35 = vpop.eup %1687 }
 0x7fe   : > { %v1313_v36 = vmul.f32 %v1688_v35, %v1311_v34  ;;  %vm1318_vm2 = vweird.f32 %v1688_v35 }
 0x7ff   : > { %vm1319_vm4 = vmor %vm1317_vm3, %vm1318_vm2 }
 0x800   : > { %v1314_v37 = vsub.f32 1.0, %v1313_v36 }
 0x802   : > { %v1315_v39 = vmul.f32 %v1688_v35, %v1314_v37 }
 0x804   : > { %v1316_v41 = vadd.f32 %v1688_v35, %v1315_v39 }
 0x806   : > { %v1320_v43 = vsel %vm1319_vm4, %v1688_v35, %v1316_v41 }
 0x807   : > { %v1325_v44 = vsel %vm1322_vm5, %v1324_v42, %v1320_v43 }
 0x808   : > { %v2154_v45 = vmul.f32 %v1325_v44, %v2131_v62  ;;  %v2159_v46 = vmul.f32 %v1325_v44, %v2133_v63 }
 0x80a   : > { %1634 = vmatmul.msk.f32.vlgmr.msrb.gmra.mxu1 %vm449_vm1, %v2154_v45 }
 0x812   : > { %1635 = vmatmul.msk.f32.gmra.mxu1 %vm449_vm1, %v2159_v46 }
 0x887   : > { %v1359_v47 = vpop.f32.mrf.mxu1 }
 0x888   : > { %v1360_v49 = vadd.f32 %v1680_v48, %v1359_v47 }
 0x88a   : > { %v1366_v52 = vsel %vm1365_vm6, %v1360_v49, -inf }
 0x88f   : > { %v1362_v50 = vpop.f32.mrf.mxu1 }
 0x890   : > { %v1363_v51 = vadd.f32 %v1680_v48, %v1362_v50 }
 0x892   : > { %v1367_v53 = vsel %vm1365_vm6, %v1363_v51, -inf }
 0x893   : > { %v1368_v54 = vmax.f32 %v1366_v52, %v1367_v53 }
 0x895   : > { %v1369_v55 = vrot.slane %v1368_v54, 4 }
 0x897   : > { %v1370_v56 = vmax.f32 %v1368_v54, %v1369_v55 }
 0x899   : > { %v1371_v57 = vrot.slane %v1370_v56, 2 }
 0x89b   : > { %v1372_v58 = vmax.f32 %v1370_v56, %v1371_v57 }
 0x89d   : > { %v1373_v59 = vrot.slane %v1372_v58, 1 }
 0x89f   : > { %v1374_v61 = vmax.f32 %v1372_v58, %v1373_v59 }
 0x8a1   : > { %v1375_v62 = vsub.f32 %v1360_v49, %v1374_v61  ;;  %v1376_v63 = vsub.f32 %v1363_v51, %v1374_v61 }
 0x8a3   : > { %v1377_v0 = vmul.f32 1.442695, %v1375_v62  ;;  %v1379_v1 = vmul.f32 1.442695, %v1376_v63 }
 0x8a5   : > { %1689 = vpow2.f32 %v1377_v0 }
 0x8a6   : > { %1691 = vpow2.f32 %v1379_v1 }
 0x8ab   : > { %v1690_v2 = vpop.eup %1689 }
 0x8ac   : > { %v1692_v3 = vpop.eup %1691  ;;  %v1381_v4 = vsel %vm1365_vm6, %v1690_v2, 0.0 }
 0x8ad   : > { %v1382_v5 = vsel %vm1365_vm6, %v1692_v3, 0.0 }
 0x8ae   : > { %v1383_v6 = vadd.f32 %v1382_v5, %v1381_v4 }
 0x8b0   : > { %v1384_v7 = vrot.slane %v1383_v6, 4 }
 0x8b2   : > { %v1385_v8 = vadd.f32 %v1384_v7, %v1383_v6 }
 0x8b4   : > { %v1386_v9 = vrot.slane %v1385_v8, 2 }
 0x8b6   : > { %v1387_v10 = vadd.f32 %v1386_v9, %v1385_v8 }
 0x8b8   : > { %v1388_v11 = vrot.slane %v1387_v10, 1 }
 0x8ba   : > { %v1389_v12 = vadd.f32 %v1388_v11, %v1387_v10 }
 0x8bc   : > { %1693 = vrcp.f32 %v1389_v12  ;;  %v1401_v16 = vand.u32 2147483648, %v1389_v12  ;;  %v1399_v18 = vand.u32 2147483647, %v1389_v12  ;;  %vm1395_vm8 = vweird.f32 %v1389_v12 }
 0x8be   : > { %v1402_v20 = vor.u32 1.1754944e-38, %v1401_v16  ;;  %vm1400_vm10 = vcmp.eq.f32.partialorder %v1399_v18, 8.507059e+37 }
 0x8c2   : > { %v1694_v13 = vpop.eup %1693 }
 0x8c3   : > { %v1391_v14 = vmul.f32 %v1694_v13, %v1389_v12  ;;  %vm1396_vm7 = vweird.f32 %v1694_v13 }
 0x8c4   : > { %vm1397_vm9 = vmor %vm1395_vm8, %vm1396_vm7 }
 0x8c5   : > { %v1392_v15 = vsub.f32 1.0, %v1391_v14 }
 0x8c7   : > { %v1393_v17 = vmul.f32 %v1694_v13, %v1392_v15 }
 0x8c9   : > { %v1394_v19 = vadd.f32 %v1694_v13, %v1393_v17 }
 0x8cb   : > { %v1398_v21 = vsel %vm1397_vm9, %v1694_v13, %v1394_v19 }
 0x8cc   : > { %v1403_v22 = vsel %vm1400_vm10, %v1402_v20, %v1398_v21 }
 0x8cd   : > { %v1404_v23 = vmul.f32 %v1690_v2, %v1403_v22  ;;  %v1405_v24 = vmul.f32 %v1692_v3, %v1403_v22 }
 0x8cf   : > { %1407 = vst.msk [vmem:[%s401_s12 + $0x8] sm:$0xff] %vm1365_vm6, %v1405_v24  ;;  %1410 = vperm.xlu1 %1667, %v1404_v23  }
 0x8d0   : > { %1406 = vst.msk [vmem:[%s401_s12] sm:$0xff] %vm1365_vm6, %v1404_v23 }
 0x8d7   : > { %1415 = vperm.xlu1 %1667, %v1405_v24  }
 0x941   : > { %v1411_v25 = vpop.permute.xlu1 %1410 }
 0x942   : > { %v1418_v26 = vmul.f32 %v1411_v25, %v2154_v45 }
 0x944   : > { %1420 = vst.msk [vmem:[%s396_s15] sm:$0xff] %vm449_vm1, %v1418_v26 }
 0x949   : > { %v1416_v27 = vpop.permute.xlu1 %1415 }
 0x94a   : > { %v1419_v28 = vmul.f32 %v1416_v27, %v2159_v46 }
 0x94c   : > { %1421 = vst.msk [vmem:[%s396_s15 + $0x8] sm:$0xff] %vm449_vm1, %v1419_v28 }
 0x94d PF: > { %s24_s19 = sadd.s32 1, %s1701_s19  }
 0x94e   : > { %p21_p4 = scmp.ge.s32.totalorder %s24_s19, 4  }
 0x950   :  { %23 = sbr.rel (!%p21_p4) target bundleno = 3 (0x3), region = 126 }

// kernel: model_forward.7
= control target key start
LH: loop header
LB: loop body
LE: loop exit
PB: predicated region body
PF: predicated region fallthrough
CT: control target
= control target key end

     0   :  { %s1553_s20 = smov 0   ;;  %s1851_s0 = inlined_call_operand.vmem [shape: f32[8,1,32], index: 0, kind: input, shape index: {}]   ;;  %s1852_s1 = inlined_call_operand.vmem [shape: f32[32,32], index: 1, kind: input, shape index: {}]   ;;  %s1853_s2 = inlined_call_operand.vmem [shape: f32[1,32], index: 2, kind: input, shape index: {}]   ;;  %s1854_s3 = inlined_call_operand.vmem [shape: f32[32,32], index: 3, kind: input, shape index: {}]   ;;  %s1855_s4 = inlined_call_operand.vmem [shape: f32[1,32], index: 4, kind: input, shape index: {}]   ;;  %s1856_s5 = inlined_call_operand.vmem [shape: f32[4,32,32], index: 5, kind: input, shape index: {}]   ;;  %s1857_s6 = inlined_call_operand.vmem [shape: f32[4,32], index: 6, kind: input, shape index: {}]   ;;  %s1858_s7 = inlined_call_operand.vmem [shape: f32[2,3,32,32], index: 7, kind: input, shape index: {}]   ;;  %s1859_s8 = inlined_call_operand.vmem [shape: f32[2,1,32], index: 8, kind: input, shape index: {}]   ;;  %s1860_s9 = inlined_call_operand.vmem [shape: f32[3,8,4], index: 9, kind: input, shape index: {}]   ;;  %s1861_s10 = inlined_call_operand.vmem [shape: f32[3,16,8], index: 10, kind: input, shape index: {}]   ;;  %s1862_s11 = inlined_call_operand.vmem [shape: f32[3,16,16], index: 11, kind: input, shape index: {}]   ;;  %s1863_s12 = inlined_call_operand.vmem [shape: f32[3,32,1], index: 12, kind: input, shape index: {}]   ;;  %s1864_s13 = inlined_call_operand.<no memory space> [shape: f32[1,1], index: 13, kind: input, shape index: {}]   ;;  %s1865_s14 = inlined_call_operand.vmem [shape: f32[8,1,32], index: 14, kind: output, shape index: {0}]   ;;  %s1866_s15 = inlined_call_operand.vmem [shape: f32[8,16,1], index: 15, kind: output, shape index: {1}]  }
   0x1   :  { %v21_v0 = vstv %s1864_s13 }
   0x2   :  { %22 = vst [vmem:[#allocation2] sm:$0x1] %v21_v0 }
   0x3 LB: > { %s1351_s21 = sadd.s32 4294967295, %s1468_s20   ;;  %p1355_p0 = scmp.ge.s32.totalorder %s1468_s20, 1  ;;  %s1468_s20 = sphi %s1553_s20, %s28_s20  }
   0x4   : > { %p440_p1 = scmp.lt.s32.totalorder %s1468_s20, 9 }
   0x6   : > { %p441_p2 = pnand %p1355_p0, %p440_p1 }
   0x7   : > { %p489_p3 = scmp.lt.s32.totalorder (!%p441_p2), %s1351_s21, 7 }
   0x8   : > { %444 = sbr.rel (%p441_p2) target bundleno = 1279 (0x4ff), region = 76 }
   0xd   : > { %v504_v1 = vld [vmem:[%s1852_s1 + $0x18] sm:$0xff]  ;;  %v503_v2 = vld [vmem:[%s1852_s1 + $0x10] sm:$0xff]  ;;  %v502_v4 = vld [vmem:[%s1852_s1 + $0x8] sm:$0xff]  ;;  %s1868_s21 = smov (!%p489_p3, %s1351_s21), 7  ;;  %vm506_vm0 = vcmask 261120   ;;  %vm561_vm2 = vcmask 253952  }
   0xe   : > { %522 = vmatpush.msra.mxu0 %v504_v1  ;;  %v536_v3 = vld [vmem:[%s1854_s3 + $0x18] sm:$0xff]  ;;  %v501_v5 = vld [vmem:[%s1852_s1] sm:$0xff]  ;;  %s491_s18 = scalar_lea.vmem %s1851_s0, %s1868_s21  ;;  %v535_v7 = vld [vmem:[%s1854_s3 + $0x10] sm:$0xff]  ;;  %s494_s23 = scalar_lea.vmem %s1865_s14, %s1868_s21  ;;  %vm674_vm3 = vcmask 1040384   ;;  %vm676_vm4 = vcmask 1041408   ;;  %vm678_vm5 = vcmask 1042432  }
   0xf   : > { %553 = vmatpush.msra.mxu1 %v536_v3  ;;  %v500_v6 = vld [vmem:[%s491_s18] sm:$0x1]  ;;  %v534_v8 = vld [vmem:[%s1854_s3 + $0x8] sm:$0xff]  ;;  %v566_v10 = vld [vmem:[%s1856_s5 + $0x18] sm:$0xff]  ;;  %vm687_vm6 = vcmask 1043456   ;;  %vm683_vm7 = vcmask 31744  }
  0x10   : > { %523 = vmatpush.msra.mxu0 %v503_v2  ;;  %v533_v9 = vld [vmem:[%s1854_s3] sm:$0xff]  ;;  %v1364_v11 = vld [vmem:[%s1856_s5 + $0x38] sm:$0xff]  ;;  %582 = vmatpush.msra.mxu2 %v566_v10  ;;  %v565_v14 = vld [vmem:[%s1856_s5 + $0x10] sm:$0xff]  ;;  %vm855_vm9 = vcmask 64512   ;;  %vm1068_vm12 = vcmask 130048   ;;  %s1450_s18 = sshll.u32 %s1868_s21, 4 }
  0x11   : > { %554 = vmatpush.msra.mxu1 %v535_v7  ;;  %v1369_v12 = vld [vmem:[%s1856_s5 + $0x58] sm:$0xff]  ;;  %607 = vmatpush.msra.mxu3 %v1364_v11  ;;  %v1363_v15 = vld [vmem:[%s1856_s5 + $0x30] sm:$0xff]  ;;  %v505_v18 = vld [vmem:[%s1853_s2] sm:$0x1]  ;;  %vm1271_vm13 = vcmask 7168  }
  0x12   : > { %524 = vmatpush.msra.mxu0 %v502_v4  ;;  %v1374_v13 = vld [vmem:[%s1856_s5 + $0x78] sm:$0xff]  ;;  %v1368_v16 = vld [vmem:[%s1856_s5 + $0x50] sm:$0xff]  ;;  %583 = vmatpush.msra.mxu2 %v565_v14  ;;  %v564_v23 = vld [vmem:[%s1856_s5 + $0x8] sm:$0xff] }
  0x13   : > { %555 = vmatpush.msra.mxu1 %v534_v8  ;;  %v1373_v17 = vld [vmem:[%s1856_s5 + $0x70] sm:$0xff]  ;;  %608 = vmatpush.msra.mxu3 %v1363_v15  ;;  %v1362_v24 = vld [vmem:[%s1856_s5 + $0x28] sm:$0xff]  ;;  %v563_v27 = vld [vmem:[%s1856_s5] sm:$0xff] }
  0x14   : > { %525 = vmatpush.msra.mxu0 %v501_v5  ;;  %v1367_v25 = vld [vmem:[%s1856_s5 + $0x48] sm:$0xff]  ;;  %584 = vmatpush.msra.mxu2 %v564_v23  ;;  %v1361_v28 = vld [vmem:[%s1856_s5 + $0x20] sm:$0xff]  ;;  %v1384_v34 = vld [vmem:[%s1858_s7 + $0x38] sm:$0xff] }
  0x15   : > { %1358 = vmatmul.msk.f32.vlgmr.msra.gmra.mxu0 %vm506_vm0, %v500_v6  ;;  %556 = vmatpush.msra.mxu1 %v533_v9  ;;  %v1372_v26 = vld [vmem:[%s1856_s5 + $0x68] sm:$0xff]  ;;  %v1366_v29 = vld [vmem:[%s1856_s5 + $0x40] sm:$0xff]  ;;  %v714_v35 = vld [vmem:[%s1858_s7 + $0x18] sm:$0xff] }
  0x16   : > { %632 = vmatpush.msrb.mxu0 %v1369_v12  ;;  %609 = vmatpush.msra.mxu3 %v1362_v24  ;;  %v1371_v30 = vld [vmem:[%s1856_s5 + $0x60] sm:$0xff]  ;;  %v1383_v36 = vld [vmem:[%s1858_s7 + $0x30] sm:$0xff]  ;;  %v1382_v38 = vld [vmem:[%s1858_s7 + $0x28] sm:$0xff] }
  0x17   : > { %657 = vmatpush.msrb.mxu1 %v1374_v13  ;;  %585 = vmatpush.msra.mxu2 %v563_v27  ;;  %v537_v31 = vld [vmem:[%s1855_s4] sm:$0x1]  ;;  %v713_v37 = vld [vmem:[%s1858_s7 + $0x10] sm:$0xff]  ;;  %v712_v39 = vld [vmem:[%s1858_s7 + $0x8] sm:$0xff] }
  0x18   : > { %633 = vmatpush.msrb.mxu0 %v1368_v16  ;;  %610 = vmatpush.msra.mxu3 %v1361_v28  ;;  %v680_v48 = vld [vmem:[%s1857_s6] sm:$0xf]  ;;  %v1378_v53 = vld [vmem:[%s1860_s9 + $0x8] sm:$0xff]  ;;  %v1387_v54 = vld [vmem:[%s1860_s9 + $0x10] sm:$0xff] }
  0x19   : > { %658 = vmatpush.msrb.mxu1 %v1373_v17  ;;  %v682_v52 = vld [vmem:[%s1860_s9] sm:$0xff]  ;;  %v1393_v57 = vld [vmem:[%s1858_s7 + $0x58] sm:$0xff]  ;;  %v1392_v58 = vld [vmem:[%s1858_s7 + $0x50] sm:$0xff] }
  0x1a   : > { %634 = vmatpush.msrb.mxu0 %v1367_v25  ;;  %v1381_v55 = vld [vmem:[%s1858_s7 + $0x20] sm:$0xff]  ;;  %v1391_v59 = vld [vmem:[%s1858_s7 + $0x48] sm:$0xff]  ;;  %v1408_v6 = vld [vmem:[%s1858_s7 + $0x98] sm:$0xff] }
  0x1b   : > { %659 = vmatpush.msrb.mxu1 %v1372_v26  ;;  %v711_v56 = vld [vmem:[%s1858_s7] sm:$0xff]  ;;  %v1400_v7 = vld [vmem:[%s1858_s7 + $0x78] sm:$0xff]  ;;  %v1407_v8 = vld [vmem:[%s1858_s7 + $0x90] sm:$0xff] }
  0x1c   : > { %635 = vmatpush.msrb.mxu0 %v1366_v29  ;;  %v1390_v60 = vld [vmem:[%s1858_s7 + $0x40] sm:$0xff]  ;;  %v1399_v9 = vld [vmem:[%s1858_s7 + $0x70] sm:$0xff]  ;;  %v1406_v11 = vld [vmem:[%s1858_s7 + $0x88] sm:$0xff] }
  0x1d   : > { %660 = vmatpush.msrb.mxu1 %v1371_v30  ;;  %v1459_v3 = vld [vmem:[%s1859_s8] ss:$0 sm:$0xff]  ;;  %v1398_v12 = vld [vmem:[%s1858_s7 + $0x68] sm:$0xff]  ;;  %v1401_v15 = vld [vmem:[%s1861_s10 + $0x10] sm:$0xff] }
  0x1e   : > { %760 = vmatpush.msra.mxu0 %v1384_v34  ;;  %v853_v14 = vld [vmem:[%s1861_s10] sm:$0xff]  ;;  %v854_v17 = vld [vmem:[%s1861_s10 + $0x8] sm:$0xff]  ;;  %v1420_v23 = vld [vmem:[%s1858_s7 + $0xb8] sm:$0xff] }
  0x1f   : > { %v1419_v24 = vld [vmem:[%s1858_s7 + $0xb0] sm:$0xff]  ;;  %v1418_v25 = vld [vmem:[%s1858_s7 + $0xa8] sm:$0xff]  ;;  %v1417_v26 = vld [vmem:[%s1858_s7 + $0xa0] sm:$0xff] }
  0x20   : > { %761 = vmatpush.msra.mxu0 %v1383_v36 }
  0x22   : > { %762 = vmatpush.msra.mxu0 %v1382_v38 }
  0x24   : > { %763 = vmatpush.msra.mxu0 %v1381_v55  ;;  %v1439_v55 = vld [vmem:[%s1862_s11 + $0x28] sm:$0xff] }
  0x92   : > { %v527_v19 = vpop.f32.mrf.mxu0 }
  0x93   : > { %v528_v20 = vadd.f32 %v527_v19, %v505_v18  ;;  %v1402_v18 = vld [vmem:[%s1861_s10 + $0x18] sm:$0xff]  ;;  %v1413_v19 = vld [vmem:[%s1861_s10 + $0x20] sm:$0xff] }
  0x95   : > { %v531_v21 = vmul.f32 0.2, %v528_v20  ;;  %vm530_vm1 = vcmp.gt.f32.partialorder %v528_v20, 0.0 }
  0x97   : > { %v532_v22 = vsel %vm530_vm1, %v528_v20, %v531_v21  ;;  %v1414_v20 = vld [vmem:[%s1861_s10 + $0x28] sm:$0xff]  ;;  %v1405_v21 = vld [vmem:[%s1858_s7 + $0x80] sm:$0xff] }
  0x98   : > { %1359 = vmatmul.msk.f32.vlgmr.msra.gmra.mxu1 %vm506_vm0, %v532_v22  ;;  %v1397_v22 = vld [vmem:[%s1858_s7 + $0x60] sm:$0xff] }
  0x99   : > { %783 = vmatpush.msra.mxu1 %v714_v35 }
  0x9b   : > { %784 = vmatpush.msra.mxu1 %v713_v37 }
  0x9d   : > { %785 = vmatpush.msra.mxu1 %v712_v39 }
  0x9f   : > { %786 = vmatpush.msra.mxu1 %v711_v56  ;;  %v1433_v56 = vld [vmem:[%s1863_s12 + $0x38] sm:$0xff] }
 0x115   : > { %v558_v32 = vpop.f32.mrf.mxu1 }
 0x116   : > { %v559_v33 = vadd.f32 %v558_v32, %v537_v31 }
 0x118   : > { %562 = vst.msk [vmem:[%s494_s23] sm:$0x1] %vm561_vm2, %v559_v33  ;;  %1360 = vmatmul.msk.f32.vlgmr.msra.gmra.mxu2 %vm506_vm0, %v559_v33  ;;  %1365 = vmatmul.msk.f32.vlgmr.msra.gmra.mxu3 %vm506_vm0, %v559_v33  ;;  %s499_s23 = scalar_lea.vmem %s1866_s15, %s1450_s18 }
 0x119   : > { %1370 = vmatmul.msk.f32.vlgmr.msrb.gmra.mxu0 %vm506_vm0, %v559_v33  ;;  %1375 = vmatmul.msk.f32.vlgmr.msrb.gmra.mxu1 %vm506_vm0, %v559_v33 }
 0x196   : > { %v637_v40 = vpop.f32.mrf.mxu0  ;;  %v662_v41 = vpop.f32.mrf.mxu1 }
 0x197   : > { %v669_v44 = vrot.slane %v637_v40, 6  ;;  %v672_v46 = vrot.slane %v662_v41, 5  ;;  %v1460_v40 = vld [vmem:[%s1859_s8 + $0x1] ss:$0 sm:$0xff] }
 0x19b   : > { %v612_v42 = vpop.f32.mrf.mxu3  ;;  %v587_v45 = vpop.f32.mrf.mxu2 }
 0x19c   : > { %v666_v43 = vrot.slane %v612_v42, 7 }
 0x19e   : > { %v675_v47 = vsel %vm674_vm3, %v587_v45, %v666_v43 }
 0x19f   : > { %v677_v49 = vsel %vm676_vm4, %v675_v47, %v669_v44 }
 0x1a0   : > { %v679_v50 = vsel %vm678_vm5, %v677_v49, %v672_v46  ;;  %v1066_v49 = vld [vmem:[%s1862_s11] sm:$0xff] }
 0x1a1   : > { %v681_v51 = vadd.f32 %v680_v48, %v679_v50  ;;  %v1426_v50 = vld [vmem:[%s1862_s11 + $0x10] sm:$0xff] }
 0x1a3   : > { %1376 = vmatpush.msk.msrb.mxu2 %vm687_vm6, %v681_v51  ;;  %1379 = vmatpush.msk.msrb.mxu3 %vm687_vm6, %v681_v51 }
 0x1a4   : > { %1377 = vmatmul.msk.f32.vlgmr.msrb.gmra.mxu2 %vm683_vm7, %v682_v52  ;;  %1380 = vmatmul.msk.f32.vlgmr.msrb.gmra.mxu3 %vm683_vm7, %v1378_v53  ;;  %v1067_v52 = vld [vmem:[%s1862_s11 + $0x8] sm:$0xff]  ;;  %v1427_v53 = vld [vmem:[%s1862_s11 + $0x18] sm:$0xff] }
 0x1a5   : > { %1388 = vmatpush.msk.msra.mxu2 %vm687_vm6, %v681_v51  ;;  %836 = vmatpush.msra.mxu3 %v1393_v57  ;;  %v1101_v57 = vld [vmem:[%s1863_s12 + $0x18] sm:$0xff] }
 0x1a7   : > { %837 = vmatpush.msra.mxu3 %v1392_v58  ;;  %945 = vmatpush.msrb.mxu2 %v1408_v6  ;;  %v1432_v58 = vld [vmem:[%s1863_s12 + $0x30] sm:$0xff] }
 0x1a9   : > { %838 = vmatpush.msra.mxu3 %v1391_v59  ;;  %946 = vmatpush.msrb.mxu2 %v1407_v8  ;;  %v1100_v59 = vld [vmem:[%s1863_s12 + $0x10] sm:$0xff] }
 0x1ab   : > { %839 = vmatpush.msra.mxu3 %v1390_v60  ;;  %947 = vmatpush.msrb.mxu2 %v1406_v11  ;;  %v1431_v60 = vld [vmem:[%s1863_s12 + $0x28] sm:$0xff] }
 0x1ac   : > { %1389 = vmatmul.msk.f32.vlgmr.msra.gmra.mxu2 %vm683_vm7, %v1387_v54  ;;  %v1438_v54 = vld [vmem:[%s1862_s11 + $0x20] sm:$0xff] }
 0x1ad   : > { %974 = vmatpush.msrb.mxu3 %v1400_v7  ;;  %948 = vmatpush.msrb.mxu2 %v1405_v21 }
 0x1af   : > { %975 = vmatpush.msrb.mxu3 %v1399_v9 }
 0x1b1   : > { %976 = vmatpush.msrb.mxu3 %v1398_v12 }
 0x1b3   : > { %977 = vmatpush.msrb.mxu3 %v1397_v22 }
 0x227   : > { %v708_v61 = vpop.f32.mrf.mxu2  ;;  %v737_v62 = vpop.f32.mrf.mxu3 }
 0x228   : > { %1385 = vmatmul.msk.f32.vlgmr.msra.gmra.mxu0 %vm506_vm0, %v737_v62  ;;  %1386 = vmatmul.msk.f32.vlgmr.msra.gmra.mxu1 %vm506_vm0, %v708_v61  ;;  %v1099_v61 = vld [vmem:[%s1863_s12 + $0x8] sm:$0xff]  ;;  %v1430_v62 = vld [vmem:[%s1863_s12 + $0x20] sm:$0xff] }
 0x22f   : > { %v813_v63 = vpop.f32.mrf.mxu2 }
 0x230   : > { %1394 = vmatmul.msk.f32.vlgmr.msra.gmra.mxu3 %vm506_vm0, %v813_v63  ;;  %v1098_v63 = vld [vmem:[%s1863_s12] sm:$0xff] }
 0x2a5   : > { %v765_v0 = vpop.f32.mrf.mxu0  ;;  %v788_v1 = vpop.f32.mrf.mxu1 }
 0x2a6   : > { %v789_v2 = vadd.f32 %v788_v1, %v765_v0  ;;  %v1445_v0 = vld [vmem:[%s1863_s12 + $0x58] sm:$0xff]  ;;  %v1444_v1 = vld [vmem:[%s1863_s12 + $0x50] sm:$0xff] }
 0x2b3   : > { %v841_v4 = vpop.f32.mrf.mxu3 }
 0x2b4   : > { %v844_v5 = vadd.f32 %v841_v4, %v789_v2  ;;  %v1443_v2 = vld [vmem:[%s1863_s12 + $0x48] sm:$0xff] }
 0x2b6   : > { %v849_v10 = vadd.f32 %v1459_v3, %v844_v5  ;;  %v1442_v3 = vld [vmem:[%s1863_s12 + $0x40] sm:$0xff] }
 0x2b8   : > { %v851_v13 = vmul.f32 0.2, %v849_v10  ;;  %vm850_vm8 = vcmp.gt.f32.partialorder %v849_v10, 0.0 }
 0x2ba   : > { %v852_v16 = vsel %vm850_vm8, %v849_v10, %v851_v13  ;;  %v1461_v13 = vld [vmem:[#allocation2] ss:$0 sm:$0xff] }
 0x2bb   : > { %877 = vmatpush.msrb.mxu0 %v852_v16  ;;  %914 = vmatpush.msrb.mxu1 %v852_v16 }
 0x2bc   : > { %1395 = vmatmul.msk.f32.vlgmr.msrb.gmra.mxu0 %vm855_vm9, %v853_v14  ;;  %1403 = vmatmul.msk.f32.vlgmr.msrb.gmra.mxu1 %vm855_vm9, %v1401_v15 }
 0x2bd   : > { %1009 = vmatpush.msra.mxu0 %v852_v16  ;;  %1040 = vmatpush.msra.mxu1 %v1420_v23 }
 0x2bf   : > { %1041 = vmatpush.msra.mxu1 %v1419_v24  ;;  %1157 = vmatpush.msrb.mxu0 %v1433_v56 }
 0x2c1   : > { %1042 = vmatpush.msra.mxu1 %v1418_v25  ;;  %1158 = vmatpush.msrb.mxu0 %v1432_v58 }
 0x2c3   : > { %1043 = vmatpush.msra.mxu1 %v1417_v26  ;;  %1159 = vmatpush.msrb.mxu0 %v1431_v60 }
 0x2c4   : > { %1396 = vmatmul.msk.f32.gmra.mxu0 %vm855_vm9, %v854_v17  ;;  %1404 = vmatmul.msk.f32.gmra.mxu1 %vm855_vm9, %v1402_v18 }
 0x2c5   : > { %1186 = vmatpush.msrb.mxu1 %v1101_v57  ;;  %1160 = vmatpush.msrb.mxu0 %v1430_v62 }
 0x2c7   : > { %1187 = vmatpush.msrb.mxu1 %v1100_v59 }
 0x2c9   : > { %1188 = vmatpush.msrb.mxu1 %v1099_v61 }
 0x2cb   : > { %1189 = vmatpush.msrb.mxu1 %v1098_v63 }
 0x2cc   : > { %1415 = vmatmul.msk.f32.vlgmr.msra.gmra.mxu0 %vm855_vm9, %v1413_v19 }
 0x2d4   : > { %1416 = vmatmul.msk.f32.gmra.mxu0 %vm855_vm9, %v1414_v20 }
 0x339   : > { %v879_v27 = vpop.f32.mrf.mxu0  ;;  %v916_v28 = vpop.f32.mrf.mxu1 }
 0x33a   : > { %1409 = vmatmul.msk.f32.vlgmr.msrb.gmra.mxu2 %vm506_vm0, %v916_v28  ;;  %1411 = vmatmul.msk.f32.vlgmr.msrb.gmra.mxu3 %vm506_vm0, %v879_v27 }
 0x341   : > { %v882_v29 = vpop.f32.mrf.mxu0  ;;  %v919_v30 = vpop.f32.mrf.mxu1 }
 0x342   : > { %1410 = vmatmul.msk.f32.gmra.mxu2 %vm506_vm0, %v919_v30  ;;  %1412 = vmatmul.msk.f32.gmra.mxu3 %vm506_vm0, %v882_v29 }
 0x349   : > { %v1011_v31 = vpop.f32.mrf.mxu0 }
 0x34a   : > { %1421 = vmatmul.msk.f32.vlgmr.msra.gmra.mxu1 %vm506_vm0, %v1011_v31 }
 0x351   : > { %v1014_v32 = vpop.f32.mrf.mxu0 }
 0x352   : > { %1422 = vmatmul.msk.f32.gmra.mxu1 %vm506_vm0, %v1014_v32 }
 0x3bd   : > { %v950_v33 = vpop.f32.mrf.mxu2  ;;  %v979_v34 = vpop.f32.mrf.mxu3 }
 0x3be   : > { %v980_v36 = vadd.f32 %v979_v34, %v950_v33 }
 0x3c5   : > { %v953_v37 = vpop.f32.mrf.mxu2  ;;  %v982_v38 = vpop.f32.mrf.mxu3 }
 0x3c6   : > { %v983_v41 = vadd.f32 %v982_v38, %v953_v37 }
 0x3c7   : > { %v1045_v35 = vpop.f32.mrf.mxu1 }
 0x3c8   : > { %v1051_v39 = vadd.f32 %v1045_v35, %v980_v36 }
 0x3ca   : > { %v1058_v43 = vadd.f32 %v1460_v40, %v1051_v39 }
 0x3cc   : > { %v1062_v47 = vmul.f32 0.2, %v1058_v43  ;;  %vm1060_vm11 = vcmp.gt.f32.partialorder %v1058_v43, 0.0 }
 0x3ce   : > { %v1064_v51 = vsel %vm1060_vm11, %v1058_v43, %v1062_v47 }
 0x3cf   : > { %v1048_v42 = vpop.f32.mrf.mxu1 }
 0x3d0   : > { %v1052_v44 = vadd.f32 %v1048_v42, %v983_v41 }
 0x3d2   : > { %v1059_v45 = vadd.f32 %v1460_v40, %v1052_v44 }
 0x3d4   : > { %v1063_v46 = vmul.f32 0.2, %v1059_v45  ;;  %vm1061_vm10 = vcmp.gt.f32.partialorder %v1059_v45, 0.0 }
 0x3d6   : > { %v1065_v48 = vsel %vm1061_vm10, %v1059_v45, %v1063_v46 }
 0x3d7   : > { %1089 = vmatpush.msra.mxu2 %v1065_v48  ;;  %1125 = vmatpush.msra.mxu3 %v1065_v48 }
 0x3d9   : > { %1090 = vmatpush.msra.mxu2 %v1064_v51  ;;  %1126 = vmatpush.msra.mxu3 %v1064_v51 }
 0x3da   : > { %1424 = vmatmul.msk.f32.vlgmr.msra.gmra.mxu2 %vm1068_vm12, %v1066_v49  ;;  %1428 = vmatmul.msk.f32.vlgmr.msra.gmra.mxu3 %vm1068_vm12, %v1426_v50 }
 0x3db   : > { %1220 = vmatpush.msrb.mxu2 %v1065_v48  ;;  %1252 = vmatpush.msrb.mxu3 %v1445_v0 }
 0x3dd   : > { %1221 = vmatpush.msrb.mxu2 %v1064_v51  ;;  %1253 = vmatpush.msrb.mxu3 %v1444_v1 }
 0x3df   : > { %1254 = vmatpush.msrb.mxu3 %v1443_v2 }
 0x3e1   : > { %1255 = vmatpush.msrb.mxu3 %v1442_v3 }
 0x3e2   : > { %1425 = vmatmul.msk.f32.gmra.mxu2 %vm1068_vm12, %v1067_v52  ;;  %1429 = vmatmul.msk.f32.gmra.mxu3 %vm1068_vm12, %v1427_v53 }
 0x3ea   : > { %1440 = vmatmul.msk.f32.vlgmr.msrb.gmra.mxu2 %vm1068_vm12, %v1438_v54 }
 0x3f2   : > { %1441 = vmatmul.msk.f32.gmra.mxu2 %vm1068_vm12, %v1439_v55 }
 0x45d   : > { %v1092_v4 = vpop.f32.mrf.mxu2  ;;  %v1128_v5 = vpop.f32.mrf.mxu3 }
 0x45e   : > { %1434 = vmatmul.msk.f32.vlgmr.msrb.gmra.mxu0 %vm506_vm0, %v1128_v5  ;;  %1436 = vmatmul.msk.f32.vlgmr.msrb.gmra.mxu1 %vm506_vm0, %v1092_v4 }
 0x465   : > { %v1095_v6 = vpop.f32.mrf.mxu2  ;;  %v1131_v7 = vpop.f32.mrf.mxu3 }
 0x466   : > { %1435 = vmatmul.msk.f32.gmra.mxu0 %vm506_vm0, %v1131_v7  ;;  %1437 = vmatmul.msk.f32.gmra.mxu1 %vm506_vm0, %v1095_v6 }
 0x46d   : > { %v1223_v8 = vpop.f32.mrf.mxu2 }
 0x46e   : > { %1446 = vmatmul.msk.f32.vlgmr.msrb.gmra.mxu3 %vm506_vm0, %v1223_v8 }
 0x475   : > { %v1226_v9 = vpop.f32.mrf.mxu2 }
 0x476   : > { %1447 = vmatmul.msk.f32.gmra.mxu3 %vm506_vm0, %v1226_v9 }
 0x4db   : > { %v1162_v10 = vpop.f32.mrf.mxu0  ;;  %v1191_v11 = vpop.f32.mrf.mxu1 }
 0x4dc   : > { %v1192_v12 = vadd.f32 %v1191_v11, %v1162_v10 }
 0x4e3   : > { %v1165_v17 = vpop.f32.mrf.mxu0  ;;  %v1194_v18 = vpop.f32.mrf.mxu1 }
 0x4e4   : > { %v1195_v19 = vadd.f32 %v1194_v18, %v1165_v17 }
 0x4f1   : > { %v1257_v14 = vpop.f32.mrf.mxu3 }
 0x4f2   : > { %v1263_v15 = vadd.f32 %v1257_v14, %v1192_v12 }
 0x4f4   : > { %v1269_v16 = vadd.f32 %v1461_v13, %v1263_v15 }
 0x4f6   : > { %1272 = vst.msk [vmem:[%s499_s23] sm:$0xff] %vm1271_vm13, %v1269_v16 }
 0x4f9   : > { %v1260_v20 = vpop.f32.mrf.mxu3 }
 0x4fa   : > { %v1264_v21 = vadd.f32 %v1260_v20, %v1195_v19 }
 0x4fc   : > { %v1270_v22 = vadd.f32 %v1461_v13, %v1264_v21 }
 0x4fe   : > { %1273 = vst.msk [vmem:[%s499_s23 + $0x8] sm:$0xff] %vm1271_vm13, %v1270_v22 }
 0x4ff PF: > { %s28_s20 = sadd.s32 1, %s1468_s20  }
 0x500   : > { %p25_p4 = scmp.ge.s32.totalorder %s28_s20, 10  }
 0x502   :  { %27 = sbr.rel (!%p25_p4) target bundleno = 3 (0x3), region = 135 }

// kernel: model_forward.6
= control target key start
LH: loop header
LB: loop body
LE: loop exit
PB: predicated region body
PF: predicated region fallthrough
CT: control target
= control target key end

     0   :  { %s1658_s24 = smov 0   ;;  %s1976_s0 = inlined_call_operand.vmem [shape: f32[8,1,32], index: 0, kind: input, shape index: {}]   ;;  %s1977_s1 = inlined_call_operand.vmem [shape: f32[32,32], index: 1, kind: input, shape index: {}]   ;;  %s1978_s2 = inlined_call_operand.vmem [shape: f32[1,32], index: 2, kind: input, shape index: {}]   ;;  %s1979_s3 = inlined_call_operand.vmem [shape: f32[32,32], index: 3, kind: input, shape index: {}]   ;;  %s1980_s4 = inlined_call_operand.vmem [shape: f32[1,32], index: 4, kind: input, shape index: {}]   ;;  %s1981_s5 = inlined_call_operand.vmem [shape: f32[4,32,32], index: 5, kind: input, shape index: {}]   ;;  %s1982_s6 = inlined_call_operand.vmem [shape: f32[4,32], index: 6, kind: input, shape index: {}]   ;;  %s1983_s7 = inlined_call_operand.vmem [shape: f32[2,3,32,32], index: 7, kind: input, shape index: {}]   ;;  %s1984_s8 = inlined_call_operand.vmem [shape: f32[2,1,32], index: 8, kind: input, shape index: {}]   ;;  %s1985_s9 = inlined_call_operand.vmem [shape: f32[3,8,4], index: 9, kind: input, shape index: {}]   ;;  %s1986_s10 = inlined_call_operand.vmem [shape: f32[3,16,8], index: 10, kind: input, shape index: {}]   ;;  %s1987_s11 = inlined_call_operand.vmem [shape: f32[3,16,16], index: 11, kind: input, shape index: {}]   ;;  %s1988_s12 = inlined_call_operand.vmem [shape: f32[3,32,32], index: 12, kind: input, shape index: {}]   ;;  %s1989_s13 = inlined_call_operand.vmem [shape: f32[1,32], index: 13, kind: input, shape index: {}]   ;;  %s1990_s14 = inlined_call_operand.vmem [shape: f32[32,64], index: 14, kind: input, shape index: {}]   ;;  %s1991_s15 = inlined_call_operand.vmem [shape: f32[1,64], index: 15, kind: input, shape index: {}]   ;;  %s1992_s16 = inlined_call_operand.vmem [shape: f32[8,1,32], index: 16, kind: output, shape index: {0}]   ;;  %s1993_s17 = inlined_call_operand.vmem [shape: f32[8,16,64], index: 17, kind: output, shape index: {1}]  }
   0x1   :  { %1995 = sst [smem:[#allocation2_spill]] %s1976_s0 }
   0x2   :  { %1996 = sst [smem:[#allocation3_spill]] %s1977_s1 }
   0x3 LB: > { %s1442_s25 = sadd.s32 4294967295, %s1566_s24   ;;  %p1446_p0 = scmp.ge.s32.totalorder %s1566_s24, 1  ;;  %s1566_s24 = sphi %s1658_s24, %s28_s24  }
   0x4   : > { %p488_p1 = scmp.lt.s32.totalorder %s1566_s24, 9 }
   0x6   : > { %p489_p2 = pnand %p1446_p0, %p488_p1 }
   0x7   : > { %s1997_s28 = sld [smem:[#allocation3_spill]] (!%p489_p2)  ;;  %p541_p3 = scmp.lt.s32.totalorder (!%p489_p2), %s1442_s25, 7 }
   0x8   : > { %492 = sbr.rel (%p489_p2) target bundleno = 1414 (0x586), region = 84  ;;  %s1998_s22 = sld [smem:[#allocation2_spill]] (!%p489_p2) }
   0xd   : > { %v556_v0 = vld [vmem:[%s1997_s28 + $0x18] sm:$0xff]  ;;  %v555_v1 = vld [vmem:[%s1997_s28 + $0x10] sm:$0xff]  ;;  %v554_v2 = vld [vmem:[%s1997_s28 + $0x8] sm:$0xff]  ;;  %s2000_s25 = smov (!%p541_p3, %s1442_s25), 7  ;;  %vm558_vm0 = vcmask 261120   ;;  %vm613_vm2 = vcmask 253952  }
   0xe   : > { %574 = vmatpush.msra.mxu1 %v556_v0  ;;  %v553_v3 = vld [vmem:[%s1997_s28] sm:$0xff]  ;;  %s543_s23 = scalar_lea.vmem %s1998_s22, %s2000_s25  ;;  %v588_v5 = vld [vmem:[%s1979_s3 + $0x18] sm:$0xff]  ;;  %v587_v6 = vld [vmem:[%s1979_s3 + $0x10] sm:$0xff]  ;;  %s546_s22 = scalar_lea.vmem %s1992_s16, %s2000_s25  ;;  %vm726_vm3 = vcmask 1040384   ;;  %vm728_vm4 = vcmask 1041408   ;;  %vm730_vm5 = vcmask 1042432  }
   0xf   : > { %v552_v4 = vld [vmem:[%s543_s23] sm:$0x1]  ;;  %v586_v7 = vld [vmem:[%s1979_s3 + $0x8] sm:$0xff]  ;;  %v618_v9 = vld [vmem:[%s1981_s5 + $0x18] sm:$0xff]  ;;  %vm739_vm6 = vcmask 1043456   ;;  %vm735_vm7 = vcmask 31744  }
  0x10   : > { %575 = vmatpush.msra.mxu1 %v555_v1  ;;  %v585_v8 = vld [vmem:[%s1979_s3] sm:$0xff]  ;;  %v1455_v10 = vld [vmem:[%s1981_s5 + $0x38] sm:$0xff]  ;;  %634 = vmatpush.msra.mxu2 %v618_v9  ;;  %v617_v13 = vld [vmem:[%s1981_s5 + $0x10] sm:$0xff]  ;;  %vm907_vm9 = vcmask 64512   ;;  %vm1120_vm12 = vcmask 130048   ;;  %s1543_s23 = sshll.u32 %s2000_s25, 4 }
  0x11   : > { %v1460_v11 = vld [vmem:[%s1981_s5 + $0x58] sm:$0xff]  ;;  %659 = vmatpush.msra.mxu3 %v1455_v10  ;;  %v1454_v14 = vld [vmem:[%s1981_s5 + $0x30] sm:$0xff]  ;;  %v557_v17 = vld [vmem:[%s1978_s2] sm:$0x1]  ;;  %s551_s29 = scalar_lea.vmem %s1993_s17, %s1543_s23  ;;  %vm1362_vm13 = vcmask 523264  }
  0x12   : > { %576 = vmatpush.msra.mxu1 %v554_v2  ;;  %v1465_v12 = vld [vmem:[%s1981_s5 + $0x78] sm:$0xff]  ;;  %684 = vmatpush.msra.mxu0 %v1460_v11  ;;  %v1459_v15 = vld [vmem:[%s1981_s5 + $0x50] sm:$0xff]  ;;  %v616_v22 = vld [vmem:[%s1981_s5 + $0x8] sm:$0xff] }
  0x13   : > { %v1464_v16 = vld [vmem:[%s1981_s5 + $0x70] sm:$0xff]  ;;  %635 = vmatpush.msra.mxu2 %v617_v13  ;;  %660 = vmatpush.msra.mxu3 %v1454_v14  ;;  %v1453_v23 = vld [vmem:[%s1981_s5 + $0x28] sm:$0xff]  ;;  %v615_v26 = vld [vmem:[%s1981_s5] sm:$0xff] }
  0x14   : > { %577 = vmatpush.msra.mxu1 %v553_v3  ;;  %685 = vmatpush.msra.mxu0 %v1459_v15  ;;  %v1458_v24 = vld [vmem:[%s1981_s5 + $0x48] sm:$0xff]  ;;  %v1452_v27 = vld [vmem:[%s1981_s5 + $0x20] sm:$0xff]  ;;  %v1475_v33 = vld [vmem:[%s1983_s7 + $0x38] sm:$0xff] }
  0x15   : > { %1449 = vmatmul.msk.f32.vlgmr.msra.gmra.mxu1 %vm558_vm0, %v552_v4  ;;  %636 = vmatpush.msra.mxu2 %v616_v22  ;;  %v1463_v25 = vld [vmem:[%s1981_s5 + $0x68] sm:$0xff]  ;;  %v1457_v28 = vld [vmem:[%s1981_s5 + $0x40] sm:$0xff]  ;;  %v766_v34 = vld [vmem:[%s1983_s7 + $0x18] sm:$0xff] }
  0x16   : > { %605 = vmatpush.msrb.mxu1 %v588_v5  ;;  %661 = vmatpush.msra.mxu3 %v1453_v23  ;;  %v1462_v29 = vld [vmem:[%s1981_s5 + $0x60] sm:$0xff]  ;;  %v1474_v35 = vld [vmem:[%s1983_s7 + $0x30] sm:$0xff]  ;;  %v1473_v37 = vld [vmem:[%s1983_s7 + $0x28] sm:$0xff] }
  0x17   : > { %686 = vmatpush.msra.mxu0 %v1458_v24  ;;  %637 = vmatpush.msra.mxu2 %v615_v26  ;;  %v589_v30 = vld [vmem:[%s1980_s4] sm:$0x1]  ;;  %v765_v36 = vld [vmem:[%s1983_s7 + $0x10] sm:$0xff]  ;;  %v764_v38 = vld [vmem:[%s1983_s7 + $0x8] sm:$0xff] }
  0x18   : > { %606 = vmatpush.msrb.mxu1 %v587_v6  ;;  %662 = vmatpush.msra.mxu3 %v1452_v27  ;;  %v732_v47 = vld [vmem:[%s1982_s6] sm:$0xf]  ;;  %v1469_v52 = vld [vmem:[%s1985_s9 + $0x8] sm:$0xff]  ;;  %v1478_v53 = vld [vmem:[%s1985_s9 + $0x10] sm:$0xff] }
  0x19   : > { %687 = vmatpush.msra.mxu0 %v1457_v28  ;;  %v734_v51 = vld [vmem:[%s1985_s9] sm:$0xff]  ;;  %v1484_v56 = vld [vmem:[%s1983_s7 + $0x58] sm:$0xff]  ;;  %v1483_v57 = vld [vmem:[%s1983_s7 + $0x50] sm:$0xff] }
  0x1a   : > { %607 = vmatpush.msrb.mxu1 %v586_v7  ;;  %v1472_v54 = vld [vmem:[%s1983_s7 + $0x20] sm:$0xff]  ;;  %v1482_v58 = vld [vmem:[%s1983_s7 + $0x48] sm:$0xff]  ;;  %v1499_v5 = vld [vmem:[%s1983_s7 + $0x98] sm:$0xff] }
  0x1b   : > { %812 = vmatpush.msrb.mxu0 %v1475_v33  ;;  %v763_v55 = vld [vmem:[%s1983_s7] sm:$0xff]  ;;  %v1491_v6 = vld [vmem:[%s1983_s7 + $0x78] sm:$0xff]  ;;  %v1498_v7 = vld [vmem:[%s1983_s7 + $0x90] sm:$0xff] }
  0x1c   : > { %608 = vmatpush.msrb.mxu1 %v585_v8  ;;  %v1481_v59 = vld [vmem:[%s1983_s7 + $0x40] sm:$0xff]  ;;  %v1490_v8 = vld [vmem:[%s1983_s7 + $0x70] sm:$0xff]  ;;  %v1497_v10 = vld [vmem:[%s1983_s7 + $0x88] sm:$0xff] }
  0x1d   : > { %813 = vmatpush.msrb.mxu0 %v1474_v35  ;;  %v1552_v2 = vld [vmem:[%s1984_s8] ss:$0 sm:$0xff]  ;;  %v1489_v11 = vld [vmem:[%s1983_s7 + $0x68] sm:$0xff]  ;;  %v1492_v14 = vld [vmem:[%s1986_s10 + $0x10] sm:$0xff] }
  0x1e   : > { %709 = vmatpush.msra.mxu1 %v1465_v12  ;;  %v905_v13 = vld [vmem:[%s1986_s10] sm:$0xff]  ;;  %v1511_v22 = vld [vmem:[%s1983_s7 + $0xb8] sm:$0xff]  ;;  %v1510_v23 = vld [vmem:[%s1983_s7 + $0xb0] sm:$0xff] }
  0x1f   : > { %814 = vmatpush.msrb.mxu0 %v1473_v37  ;;  %v1509_v24 = vld [vmem:[%s1983_s7 + $0xa8] sm:$0xff] }
  0x20   : > { %710 = vmatpush.msra.mxu1 %v1464_v16  ;;  %v906_v16 = vld [vmem:[%s1986_s10 + $0x8] sm:$0xff] }
  0x21   : > { %815 = vmatpush.msrb.mxu0 %v1472_v54  ;;  %v1530_v54 = vld [vmem:[%s1987_s11 + $0x28] sm:$0xff] }
  0x22   : > { %711 = vmatpush.msra.mxu1 %v1463_v25  ;;  %v1508_v25 = vld [vmem:[%s1983_s7 + $0xa0] sm:$0xff] }
  0x24   : > { %712 = vmatpush.msra.mxu1 %v1462_v29 }
  0x92   : > { %v579_v18 = vpop.f32.mrf.mxu1 }
  0x93   : > { %v580_v19 = vadd.f32 %v579_v18, %v557_v17  ;;  %v1493_v17 = vld [vmem:[%s1986_s10 + $0x18] sm:$0xff]  ;;  %v1504_v18 = vld [vmem:[%s1986_s10 + $0x20] sm:$0xff] }
  0x95   : > { %vm582_vm1 = vcmp.gt.f32.partialorder %v580_v19, 0.0  ;;  %v583_v20 = vmul.f32 0.2, %v580_v19 }
  0x97   : > { %v584_v21 = vsel %vm582_vm1, %v580_v19, %v583_v20  ;;  %v1505_v19 = vld [vmem:[%s1986_s10 + $0x28] sm:$0xff]  ;;  %v1496_v20 = vld [vmem:[%s1983_s7 + $0x80] sm:$0xff] }
  0x98   : > { %1450 = vmatmul.msk.f32.vlgmr.msrb.gmra.mxu1 %vm558_vm0, %v584_v21  ;;  %v1488_v21 = vld [vmem:[%s1983_s7 + $0x60] sm:$0xff] }
  0x99   : > { %835 = vmatpush.msrb.mxu1 %v766_v34 }
  0x9b   : > { %836 = vmatpush.msrb.mxu1 %v765_v36 }
  0x9d   : > { %837 = vmatpush.msrb.mxu1 %v764_v38 }
  0x9f   : > { %838 = vmatpush.msrb.mxu1 %v763_v55  ;;  %v1524_v55 = vld [vmem:[%s1988_s12 + $0x38] sm:$0xff] }
 0x115   : > { %v610_v31 = vpop.f32.mrf.mxu1 }
 0x116   : > { %v611_v32 = vadd.f32 %v610_v31, %v589_v30 }
 0x118   : > { %614 = vst.msk [vmem:[%s546_s22] sm:$0x1] %vm613_vm2, %v611_v32  ;;  %1451 = vmatmul.msk.f32.vlgmr.msra.gmra.mxu2 %vm558_vm0, %v611_v32  ;;  %1456 = vmatmul.msk.f32.vlgmr.msra.gmra.mxu3 %vm558_vm0, %v611_v32 }
 0x119   : > { %1461 = vmatmul.msk.f32.vlgmr.msra.gmra.mxu0 %vm558_vm0, %v611_v32  ;;  %1466 = vmatmul.msk.f32.vlgmr.msra.gmra.mxu1 %vm558_vm0, %v611_v32 }
 0x196   : > { %v689_v39 = vpop.f32.mrf.mxu0  ;;  %v714_v40 = vpop.f32.mrf.mxu1 }
 0x197   : > { %v721_v43 = vrot.slane %v689_v39, 6  ;;  %v724_v45 = vrot.slane %v714_v40, 5  ;;  %v1553_v39 = vld [vmem:[%s1984_s8 + $0x1] ss:$0 sm:$0xff] }
 0x19b   : > { %v664_v41 = vpop.f32.mrf.mxu3  ;;  %v639_v44 = vpop.f32.mrf.mxu2 }
 0x19c   : > { %v718_v42 = vrot.slane %v664_v41, 7 }
 0x19e   : > { %v727_v46 = vsel %vm726_vm3, %v639_v44, %v718_v42 }
 0x19f   : > { %v729_v48 = vsel %vm728_vm4, %v727_v46, %v721_v43 }
 0x1a0   : > { %v731_v49 = vsel %vm730_vm5, %v729_v48, %v724_v45  ;;  %v1118_v48 = vld [vmem:[%s1987_s11] sm:$0xff] }
 0x1a1   : > { %v733_v50 = vadd.f32 %v732_v47, %v731_v49  ;;  %v1517_v49 = vld [vmem:[%s1987_s11 + $0x10] sm:$0xff] }
 0x1a3   : > { %1467 = vmatpush.msk.msrb.mxu2 %vm739_vm6, %v733_v50  ;;  %1470 = vmatpush.msk.msrb.mxu3 %vm739_vm6, %v733_v50 }
 0x1a4   : > { %1468 = vmatmul.msk.f32.vlgmr.msrb.gmra.mxu2 %vm735_vm7, %v734_v51  ;;  %1471 = vmatmul.msk.f32.vlgmr.msrb.gmra.mxu3 %vm735_vm7, %v1469_v52  ;;  %v1119_v51 = vld [vmem:[%s1987_s11 + $0x8] sm:$0xff]  ;;  %v1518_v52 = vld [vmem:[%s1987_s11 + $0x18] sm:$0xff] }
 0x1a5   : > { %1479 = vmatpush.msk.msra.mxu2 %vm739_vm6, %v733_v50  ;;  %888 = vmatpush.msra.mxu3 %v1484_v56  ;;  %v1153_v56 = vld [vmem:[%s1988_s12 + $0x18] sm:$0xff] }
 0x1a7   : > { %889 = vmatpush.msra.mxu3 %v1483_v57  ;;  %997 = vmatpush.msrb.mxu2 %v1499_v5  ;;  %v1523_v57 = vld [vmem:[%s1988_s12 + $0x30] sm:$0xff] }
 0x1a9   : > { %890 = vmatpush.msra.mxu3 %v1482_v58  ;;  %998 = vmatpush.msrb.mxu2 %v1498_v7  ;;  %v1152_v58 = vld [vmem:[%s1988_s12 + $0x10] sm:$0xff] }
 0x1ab   : > { %891 = vmatpush.msra.mxu3 %v1481_v59  ;;  %999 = vmatpush.msrb.mxu2 %v1497_v10  ;;  %v1522_v59 = vld [vmem:[%s1988_s12 + $0x28] sm:$0xff]  ;;  %v1325_v10 = vld [vmem:[%s1990_s14 + $0x10] sm:$0xff] }
 0x1ac   : > { %1480 = vmatmul.msk.f32.vlgmr.msra.gmra.mxu2 %vm735_vm7, %v1478_v53  ;;  %v1529_v53 = vld [vmem:[%s1987_s11 + $0x20] sm:$0xff] }
 0x1ad   : > { %1026 = vmatpush.msrb.mxu3 %v1491_v6  ;;  %1000 = vmatpush.msrb.mxu2 %v1496_v20 }
 0x1af   : > { %1027 = vmatpush.msrb.mxu3 %v1490_v8 }
 0x1b1   : > { %1028 = vmatpush.msrb.mxu3 %v1489_v11  ;;  %v1324_v11 = vld [vmem:[%s1990_s14 + $0x8] sm:$0xff] }
 0x1b3   : > { %1029 = vmatpush.msrb.mxu3 %v1488_v21 }
 0x227   : > { %v760_v60 = vpop.f32.mrf.mxu2  ;;  %v789_v61 = vpop.f32.mrf.mxu3 }
 0x228   : > { %1476 = vmatmul.msk.f32.vlgmr.msrb.gmra.mxu0 %vm558_vm0, %v789_v61  ;;  %1477 = vmatmul.msk.f32.vlgmr.msrb.gmra.mxu1 %vm558_vm0, %v760_v60  ;;  %v1151_v60 = vld [vmem:[%s1988_s12 + $0x8] sm:$0xff]  ;;  %v1521_v61 = vld [vmem:[%s1988_s12 + $0x20] sm:$0xff] }
 0x22f   : > { %v865_v62 = vpop.f32.mrf.mxu2 }
 0x230   : > { %1485 = vmatmul.msk.f32.vlgmr.msra.gmra.mxu3 %vm558_vm0, %v865_v62  ;;  %v1150_v62 = vld [vmem:[%s1988_s12] sm:$0xff] }
 0x2a5   : > { %v817_v63 = vpop.f32.mrf.mxu0  ;;  %v840_v0 = vpop.f32.mrf.mxu1 }
 0x2a6   : > { %v841_v1 = vadd.f32 %v840_v0, %v817_v63  ;;  %v1536_v63 = vld [vmem:[%s1988_s12 + $0x58] sm:$0xff]  ;;  %v1535_v0 = vld [vmem:[%s1988_s12 + $0x50] sm:$0xff] }
 0x2b3   : > { %v893_v3 = vpop.f32.mrf.mxu3 }
 0x2b4   : > { %v896_v4 = vadd.f32 %v893_v3, %v841_v1  ;;  %v1534_v1 = vld [vmem:[%s1988_s12 + $0x48] sm:$0xff] }
 0x2b6   : > { %v901_v9 = vadd.f32 %v1552_v2, %v896_v4  ;;  %v1533_v2 = vld [vmem:[%s1988_s12 + $0x40] sm:$0xff] }
 0x2b8   : > { %v903_v12 = vmul.f32 0.2, %v901_v9  ;;  %vm902_vm8 = vcmp.gt.f32.partialorder %v901_v9, 0.0 }
 0x2ba   : > { %v904_v15 = vsel %vm902_vm8, %v901_v9, %v903_v12  ;;  %v1326_v9 = vld [vmem:[%s1990_s14 + $0x18] sm:$0xff]  ;;  %v1323_v12 = vld [vmem:[%s1990_s14] sm:$0xff] }
 0x2bb   : > { %929 = vmatpush.msra.mxu0 %v904_v15  ;;  %966 = vmatpush.msra.mxu1 %v904_v15 }
 0x2bc   : > { %1486 = vmatmul.msk.f32.vlgmr.msra.gmra.mxu0 %vm907_vm9, %v905_v13  ;;  %1494 = vmatmul.msk.f32.vlgmr.msra.gmra.mxu1 %vm907_vm9, %v1492_v14 }
 0x2bd   : > { %1061 = vmatpush.msrb.mxu0 %v904_v15  ;;  %1092 = vmatpush.msrb.mxu1 %v1511_v22 }
 0x2bf   : > { %1093 = vmatpush.msrb.mxu1 %v1510_v23  ;;  %1209 = vmatpush.msra.mxu0 %v1524_v55 }
 0x2c1   : > { %1094 = vmatpush.msrb.mxu1 %v1509_v24  ;;  %1210 = vmatpush.msra.mxu0 %v1523_v57 }
 0x2c3   : > { %1095 = vmatpush.msrb.mxu1 %v1508_v25  ;;  %1211 = vmatpush.msra.mxu0 %v1522_v59 }
 0x2c4   : > { %1487 = vmatmul.msk.f32.gmra.mxu0 %vm907_vm9, %v906_v16  ;;  %1495 = vmatmul.msk.f32.gmra.mxu1 %vm907_vm9, %v1493_v17  ;;  %v1554_v16 = vld [vmem:[%s1989_s13] ss:$0 sm:$0xff] }
 0x2c5   : > { %1238 = vmatpush.msra.mxu1 %v1153_v56  ;;  %1212 = vmatpush.msra.mxu0 %v1521_v61 }
 0x2c7   : > { %1239 = vmatpush.msra.mxu1 %v1152_v58 }
 0x2c9   : > { %1240 = vmatpush.msra.mxu1 %v1151_v60 }
 0x2cb   : > { %1241 = vmatpush.msra.mxu1 %v1150_v62 }
 0x2cc   : > { %1506 = vmatmul.msk.f32.vlgmr.msrb.gmra.mxu0 %vm907_vm9, %v1504_v18 }
 0x2cd   : > { %1349 = vmatpush.msrb.mxu0 %v1326_v9 }
 0x2cf   : > { %1350 = vmatpush.msrb.mxu0 %v1325_v10 }
 0x2d1   : > { %1351 = vmatpush.msrb.mxu0 %v1324_v11 }
 0x2d3   : > { %1352 = vmatpush.msrb.mxu0 %v1323_v12 }
 0x2d4   : > { %1507 = vmatmul.msk.f32.gmra.mxu0 %vm907_vm9, %v1505_v19 }
 0x339   : > { %v931_v26 = vpop.f32.mrf.mxu0  ;;  %v968_v27 = vpop.f32.mrf.mxu1 }
 0x33a   : > { %1500 = vmatmul.msk.f32.vlgmr.msrb.gmra.mxu2 %vm558_vm0, %v968_v27  ;;  %1502 = vmatmul.msk.f32.vlgmr.msrb.gmra.mxu3 %vm558_vm0, %v931_v26  ;;  %v1555_v26 = vld [vmem:[%s1991_s15] ss:$0 sm:$0xff] }
 0x341   : > { %v934_v28 = vpop.f32.mrf.mxu0  ;;  %v971_v29 = vpop.f32.mrf.mxu1 }
 0x342   : > { %1501 = vmatmul.msk.f32.gmra.mxu2 %vm558_vm0, %v971_v29  ;;  %1503 = vmatmul.msk.f32.gmra.mxu3 %vm558_vm0, %v934_v28 }
 0x349   : > { %v1063_v30 = vpop.f32.mrf.mxu0 }
 0x34a   : > { %1512 = vmatmul.msk.f32.vlgmr.msrb.gmra.mxu1 %vm558_vm0, %v1063_v30 }
 0x351   : > { %v1066_v31 = vpop.f32.mrf.mxu0 }
 0x352   : > { %1513 = vmatmul.msk.f32.gmra.mxu1 %vm558_vm0, %v1066_v31 }
 0x3bd   : > { %v1002_v32 = vpop.f32.mrf.mxu2  ;;  %v1031_v33 = vpop.f32.mrf.mxu3 }
 0x3be   : > { %v1032_v35 = vadd.f32 %v1031_v33, %v1002_v32 }
 0x3c5   : > { %v1005_v36 = vpop.f32.mrf.mxu2  ;;  %v1034_v37 = vpop.f32.mrf.mxu3 }
 0x3c6   : > { %v1035_v40 = vadd.f32 %v1034_v37, %v1005_v36 }
 0x3c7   : > { %v1097_v34 = vpop.f32.mrf.mxu1 }
 0x3c8   : > { %v1103_v38 = vadd.f32 %v1097_v34, %v1032_v35 }
 0x3ca   : > { %v1110_v42 = vadd.f32 %v1553_v39, %v1103_v38 }
 0x3cc   : > { %v1114_v46 = vmul.f32 0.2, %v1110_v42  ;;  %vm1112_vm11 = vcmp.gt.f32.partialorder %v1110_v42, 0.0 }
 0x3ce   : > { %v1116_v50 = vsel %vm1112_vm11, %v1110_v42, %v1114_v46 }
 0x3cf   : > { %v1100_v41 = vpop.f32.mrf.mxu1 }
 0x3d0   : > { %v1104_v43 = vadd.f32 %v1100_v41, %v1035_v40 }
 0x3d2   : > { %v1111_v44 = vadd.f32 %v1553_v39, %v1104_v43 }
 0x3d4   : > { %v1115_v45 = vmul.f32 0.2, %v1111_v44  ;;  %vm1113_vm10 = vcmp.gt.f32.partialorder %v1111_v44, 0.0 }
 0x3d6   : > { %v1117_v47 = vsel %vm1113_vm10, %v1111_v44, %v1115_v45 }
 0x3d7   : > { %1141 = vmatpush.msra.mxu2 %v1117_v47  ;;  %1177 = vmatpush.msra.mxu3 %v1117_v47 }
 0x3d9   : > { %1142 = vmatpush.msra.mxu2 %v1116_v50  ;;  %1178 = vmatpush.msra.mxu3 %v1116_v50 }
 0x3da   : > { %1515 = vmatmul.msk.f32.vlgmr.msra.gmra.mxu2 %vm1120_vm12, %v1118_v48  ;;  %1519 = vmatmul.msk.f32.vlgmr.msra.gmra.mxu3 %vm1120_vm12, %v1517_v49 }
 0x3db   : > { %1272 = vmatpush.msrb.mxu2 %v1117_v47  ;;  %1304 = vmatpush.msrb.mxu3 %v1536_v63 }
 0x3dd   : > { %1273 = vmatpush.msrb.mxu2 %v1116_v50  ;;  %1305 = vmatpush.msrb.mxu3 %v1535_v0 }
 0x3df   : > { %1306 = vmatpush.msrb.mxu3 %v1534_v1 }
 0x3e1   : > { %1307 = vmatpush.msrb.mxu3 %v1533_v2 }
 0x3e2   : > { %1516 = vmatmul.msk.f32.gmra.mxu2 %vm1120_vm12, %v1119_v51  ;;  %1520 = vmatmul.msk.f32.gmra.mxu3 %vm1120_vm12, %v1518_v52 }
 0x3ea   : > { %1531 = vmatmul.msk.f32.vlgmr.msrb.gmra.mxu2 %vm1120_vm12, %v1529_v53 }
 0x3f2   : > { %1532 = vmatmul.msk.f32.gmra.mxu2 %vm1120_vm12, %v1530_v54 }
 0x45d   : > { %v1144_v3 = vpop.f32.mrf.mxu2  ;;  %v1180_v4 = vpop.f32.mrf.mxu3 }
 0x45e   : > { %1525 = vmatmul.msk.f32.vlgmr.msra.gmra.mxu0 %vm558_vm0, %v1180_v4  ;;  %1527 = vmatmul.msk.f32.vlgmr.msra.gmra.mxu1 %vm558_vm0, %v1144_v3 }
 0x465   : > { %v1147_v5 = vpop.f32.mrf.mxu2  ;;  %v1183_v6 = vpop.f32.mrf.mxu3 }
 0x466   : > { %1526 = vmatmul.msk.f32.gmra.mxu0 %vm558_vm0, %v1183_v6  ;;  %1528 = vmatmul.msk.f32.gmra.mxu1 %vm558_vm0, %v1147_v5 }
 0x46d   : > { %v1275_v7 = vpop.f32.mrf.mxu2 }
 0x46e   : > { %1537 = vmatmul.msk.f32.vlgmr.msrb.gmra.mxu3 %vm558_vm0, %v1275_v7 }
 0x475   : > { %v1278_v8 = vpop.f32.mrf.mxu2 }
 0x476   : > { %1538 = vmatmul.msk.f32.gmra.mxu3 %vm558_vm0, %v1278_v8 }
 0x4db   : > { %v1214_v13 = vpop.f32.mrf.mxu0  ;;  %v1243_v14 = vpop.f32.mrf.mxu1 }
 0x4dc   : > { %v1244_v15 = vadd.f32 %v1243_v14, %v1214_v13 }
 0x4e3   : > { %v1217_v20 = vpop.f32.mrf.mxu0  ;;  %v1246_v21 = vpop.f32.mrf.mxu1 }
 0x4e4   : > { %v1247_v22 = vadd.f32 %v1246_v21, %v1217_v20 }
 0x4f1   : > { %v1309_v17 = vpop.f32.mrf.mxu3 }
 0x4f2   : > { %v1315_v18 = vadd.f32 %v1309_v17, %v1244_v15 }
 0x4f4   : > { %v1321_v19 = vadd.f32 %v1554_v16, %v1315_v18 }
 0x4f6   : > { %1539 = vmatmul.msk.f32.vlgmr.msrb.gmra.mxu0 %vm558_vm0, %v1321_v19 }
 0x4f9   : > { %v1312_v23 = vpop.f32.mrf.mxu3 }
 0x4fa   : > { %v1316_v24 = vadd.f32 %v1312_v23, %v1247_v22 }
 0x4fc   : > { %v1322_v25 = vadd.f32 %v1554_v16, %v1316_v24 }
 0x4fe   : > { %1540 = vmatmul.msk.f32.gmra.mxu0 %vm558_vm0, %v1322_v25 }
 0x573   : > { %v1354_v27 = vpop.f32.mrf.mxu0 }
 0x574   : > { %v1355_v28 = vadd.f32 %v1555_v26, %v1354_v27 }
 0x576   : > { %1556 = vtanh.f32 %v1355_v28 }
 0x57b   : > { %v1357_v29 = vpop.f32.mrf.mxu0 }
 0x57c   : > { %v1557_v30 = vpop.eup %1556  ;;  %v1358_v31 = vadd.f32 %v1555_v26, %v1357_v29 }
 0x57d   : > { %1363 = vst.msk [vmem:[%s551_s29] sm:$0xff] %vm1362_vm13, %v1557_v30 }
 0x57e   : > { %1558 = vtanh.f32 %v1358_v31 }
 0x584   : > { %v1559_v32 = vpop.eup %1558 }
 0x585   : > { %1364 = vst.msk [vmem:[%s551_s29 + $0x8] sm:$0xff] %vm1362_vm13, %v1559_v32 }
 0x586 PF: > { %s28_s24 = sadd.s32 1, %s1566_s24  }
 0x587   : > { %p25_p4 = scmp.ge.s32.totalorder %s28_s24, 10  }
 0x589   :  { %27 = sbr.rel (!%p25_p4) target bundleno = 3 (0x3), region = 143 }

// kernel: reverse.3
= control target key start
LH: loop header
LB: loop body
LE: loop exit
PB: predicated region body
PF: predicated region fallthrough
CT: control target
= control target key end

     0   :  { %v2_v0 = vlaneseq  ;;  %s320_s0 = inlined_call_operand.vmem [shape: f32[8,1,1024], index: 0, kind: input, shape index: {}]   ;;  %s321_s1 = inlined_call_operand.vmem [shape: f32[8,1,1024], index: 1, kind: output, shape index: {}]  }
   0x2   :  { %v3_v1 = vsub.s32 127, %v2_v0 }
   0x4   :  { %4 = vset.pattern.permute.xlu0 %v3_v1 }
   0x5   :  { %s283_s6 = smov 0   ;;  %s285_s7 = smov 0  }
   0x6   :  { %s287_s8 = smov 0  }
   0x7 LB: > { %s213_s9 = sadd.s32 4294967295, %s271_s8   ;;  %s22_s10 = sadd.s32 1, %s267_s7  ;;  %s271_s8 = sphi %s287_s8, %s10_s8   ;;  %s267_s7 = sphi %s285_s7, %s323_s7   ;;  %s263_s6 = sphi %s283_s6, %s322_s6  }
   0x8   : > { %p23_p0 = scmp.ge.s32.totalorder %s22_s10, 8  ;;  %p215_p1 = scmp.ge.s32.totalorder %s271_s8, 8 }
   0x9   : > { %s45_s11 = sand.u32 (!%p215_p1), 1, %s271_s8   ;;  %s48_s12 = ssub.s32 (!%p215_p1), 7, %s267_s7 }
   0xa   : > { %s325_s10 = smov (%p23_p0, %s22_s10), 0  ;;  %43 = sbr.rel (%p215_p1) target bundleno = 17 (0x11), region = 16 }
   0xb   : > { %s216_s13 = sshll.u32 (!%p215_p1), %s45_s11, 3  ;;  %s217_s14 = sshll.u32 (!%p215_p1), %s48_s12, 3 }
   0xc   : > { %s54_s17 = scalar_lea.vmem (!%p215_p1), %s320_s0, %s217_s14  ;;  %s47_s18 = scalar_lea.vmem (!%p215_p1), [#allocation0], %s216_s13 }
   0xf   : > { %v83_v2 = vld [vmem:[%s54_s17] sm:$0xff] }
  0x10   : > { %84 = vst [vmem:[%s47_s18] sm:$0xff] %v83_v2 }
  0x11 PF: > { %p218_p2 = scmp.ge.s32.totalorder %s271_s8, 1  ;;  %p89_p3 = scmp.lt.s32.totalorder %s271_s8, 9 }
  0x13   : > { %p90_p4 = pnand %p218_p2, %p89_p3 }
  0x14   : > { %s96_s19 = sand.u32 (!%p90_p4), 1, %s213_s9   ;;  %s222_s22 = sshll.u32 (!%p90_p4), %s263_s6, 3 }
  0x15   : > { %93 = sbr.rel (%p90_p4) target bundleno = 143 (0x8f), region = 54  ;;  %s219_s20 = sshll.u32 (!%p90_p4), %s96_s19, 3 }
  0x16   : > { %s98_s21 = scalar_lea.vmem (!%p90_p4), [#allocation0], %s219_s20  ;;  %s121_s25 = scalar_lea.vmem (!%p90_p4), %s321_s1, %s222_s22 }
  0x1a   : > { %v108_v3 = vld [vmem:[%s98_s21] sm:$0xff] }
  0x1b   : > { %109 = vperm.xlu0 %4, %v108_v3  }
  0x8d   : > { %v110_v4 = vpop.permute.xlu0 %109 }
  0x8e   : > { %151 = vst [vmem:[%s121_s25] sm:$0xff] %v110_v4 }
  0x8f PF: > { %s10_s8 = sadd.s32 1, %s271_s8   ;;  %s322_s6 = smov %s267_s7 }
  0x90   : > { %p7_p5 = scmp.ge.s32.totalorder %s10_s8, 10   ;;  %s323_s7 = smov %s325_s10 }
  0x92   :  { %9 = sbr.rel (!%p7_p5) target bundleno = 7 (0x7), region = 118 }

</bundles_post_ra>
